<compile_context>
chip_gen: v7x
topology: tpu7x:2x2x1
jax: 0.10.0
libtpu: 0.0.40
codegen_flags: <defaults>
</compile_context>

<pallas_src>
import functools

import jax
import jax.numpy as jnp
from jax.experimental import pallas as pl
from jax.experimental.pallas import tpu as pltpu

BP = 8  # batch padded to one sublane tile


# ----------------------------------------------------------------------------
# Fused Pallas kernel
# ----------------------------------------------------------------------------
def _make_encoder_kernel(num_layers, T, B, H, E, layer_meta):
    """Build the fused encoder kernel (straight-line, everything VMEM resident).

    layer_meta: per layer (off_f, off_b, d_in) static row offsets into the packed W_ih buffer.
    """
    L = num_layers
    H4 = 4 * H

    def kernel(tgt_ref, x_ref, wih_ref, whh_ref, b_ref, hc0_ref, fc_ref, o_ref, *scratch):
        tgt = tgt_ref[...]                                  # (BP, 1) int32, padded rows = -1

        def run_layer(l, inp_f, inp_b):
            """One bidirectional layer with fused fwd/bwd recurrence.

            Layer 0: inp_f = (T*BP, D) raw input rows (row = t*BP + b), inp_b = None.
            Layers >=1: inp_f / inp_b = (T*BP, H) fwd / bwd hidden histories.
            Returns (last_f, last_b) for the final layer, else None (history in scratch).
            """
            off_f, off_b, din = layer_meta[l]
            bias_f = b_ref[2 * l + 0:2 * l + 1, :]          # (1, 4H)
            bias_b = b_ref[2 * l + 1:2 * l + 2, :]

            # Hoisted input projection (all T*BP rows in one MXU pass per direction).
            if inp_b is None:
                wf = wih_ref[off_f:off_f + din, :]
                wb = wih_ref[off_b:off_b + din, :]
                gi_f = jnp.dot(inp_f, wf, preferred_element_type=jnp.float32) + bias_f
                gi_b = jnp.dot(inp_f, wb, preferred_element_type=jnp.float32) + bias_b
            else:
                wf = wih_ref[off_f:off_f + din, :]          # (2H, 4H); rows [:H] = fwd feats
                wb = wih_ref[off_b:off_b + din, :]
                gi_f = (jnp.dot(inp_f, wf[:H, :], preferred_element_type=jnp.float32)
                        + jnp.dot(inp_b, wf[H:, :], preferred_element_type=jnp.float32)
                        + bias_f)
                gi_b = (jnp.dot(inp_f, wb[:H, :], preferred_element_type=jnp.float32)
                        + jnp.dot(inp_b, wb[H:, :], preferred_element_type=jnp.float32)
                        + bias_b)

            whh = whh_ref[2 * H * l:2 * H * (l + 1), :]     # (2H, 8H) block-diagonal

            h_f = hc0_ref[2 * l + 0]                        # (BP, H)
            h_b = hc0_ref[2 * l + 1]
            c_f = hc0_ref[2 * L + 2 * l + 0]
            c_b = hc0_ref[2 * L + 2 * l + 1]

            is_last = (l == L - 1)
            if is_last:
                last_f = jnp.zeros((BP, H), jnp.float32)
                last_b = jnp.zeros((BP, H), jnp.float32)
            else:
                scr_f = scratch[2 * l + 0]                  # (T, BP, H)
                scr_b = scratch[2 * l + 1]

            for s in range(T):                              # fully unrolled fused time loop
                tb = T - 1 - s                              # bwd direction's time index
                gf = gi_f[s * BP:(s + 1) * BP, :]           # tile-aligned (BP, 4H)
                gb = gi_b[tb * BP:(tb + 1) * BP, :]

                h_cat = jnp.concatenate([h_f, h_b], axis=1)         # (BP, 2H)
                hh = jnp.dot(h_cat, whh,
                             preferred_element_type=jnp.float32)    # ONE MXU pass, (BP, 8H)
                g_f = gf + hh[:, :H4]
                g_b = gb + hh[:, H4:]

                # Two full-vreg EUP pushes per direction; gates = lane slices.
                sig_f = jax.nn.sigmoid(g_f)
                tan_f = jnp.tanh(g_f)
                sig_b = jax.nn.sigmoid(g_b)
                tan_b = jnp.tanh(g_b)

                # PyTorch gate order [i, f, g, o].
                c_f = sig_f[:, H:2 * H] * c_f + sig_f[:, :H] * tan_f[:, 2 * H:3 * H]
                c_b = sig_b[:, H:2 * H] * c_b + sig_b[:, :H] * tan_b[:, 2 * H:3 * H]
                h_f = sig_f[:, 3 * H:] * jnp.tanh(c_f)
                h_b = sig_b[:, 3 * H:] * jnp.tanh(c_b)

                if is_last:
                    # Running masked select of the last valid timestep.
                    last_f = jnp.where(tgt == s, h_f, last_f)
                    last_b = jnp.where(tgt == tb, h_b, last_b)
                else:
                    scr_f[s] = h_f                          # tile-aligned (8, H) store
                    scr_b[tb] = h_b

            return (last_f, last_b) if is_last else None

        # Layer 0 from the raw input.
        # TODO(synk): nn.LSTM inter-layer dropout is training-only; identity at inference.
        res = run_layer(0, x_ref[...], None)
        for l in range(1, L):
            prev_f = scratch[2 * (l - 1) + 0][...].reshape(T * BP, H)
            prev_b = scratch[2 * (l - 1) + 1][...].reshape(T * BP, H)
            res = run_layer(l, prev_f, prev_b)
        last_f, last_b = res

        # TODO(synk): nn.Dropout(0.5) before fc1 is stochastic in training; identity here.
        fcw_f = fc_ref[:H, :]                               # (H, E)
        fcw_b = fc_ref[H:2 * H, :]
        fcb = fc_ref[2 * H:2 * H + 1, :]                    # (1, E)
        y = (jnp.dot(last_f, fcw_f, preferred_element_type=jnp.float32)
             + jnp.dot(last_b, fcw_b, preferred_element_type=jnp.float32)
             + fcb)
        o_ref[...] = jnp.maximum(y[:B, :], 0.0).astype(o_ref.dtype)

    return kernel


# ----------------------------------------------------------------------------
# Wrapper (argument packing + pallas_call plumbing)
# ----------------------------------------------------------------------------
def encoder_rnn_forward(params, x, stroke_lengths, src_mask, h0, c0,
                        *, num_layers, hidden_size, encoder_dim):
    # src_mask is unused in the reference forward pass.
    del src_mask
    T, B, D = x.shape
    H, E, L = hidden_size, encoder_dim, num_layers
    f32 = jnp.float32
    assert B <= BP, "batch padded to one sublane tile"

    # --- pad batch to BP=8 (tile alignment of every per-step slice/store) ---------------
    x_p = jnp.zeros((T, BP, D), f32).at[:, :B, :].set(x.astype(f32))
    x_flat = x_p.reshape(T * BP, D)
    h0_p = jnp.zeros((2 * L, BP, H), f32).at[:, :B, :].set(h0)
    c0_p = jnp.zeros((2 * L, BP, H), f32).at[:, :B, :].set(c0)
    hc0 = jnp.concatenate([h0_p, c0_p], axis=0)             # (4L, BP, H)

    # Last-valid timestep; mod T maps len==0 -> T-1 (PyTorch negative-index semantics).
    tgt = jnp.mod(stroke_lengths.astype(jnp.int32) - 1, T)
    tgt_p = jnp.full((BP, 1), -1, jnp.int32).at[:B, 0].set(tgt)   # padded rows never match

    # --- pack W_ih^T blocks (rows padded to multiples of 8), fwd then bwd per layer -----
    wih_parts, layer_meta, off = [], [], 0
    for l in range(L):
        din = D if l == 0 else 2 * H
        din_p = ((din + 7) // 8) * 8
        offs = []
        for sfx in ("", "_rev"):
            w = params[f"w_ih_l{l}{sfx}"]                    # (din, 4H)
            wih_parts.append(jnp.zeros((din_p, 4 * H), f32).at[:din].set(w))
            offs.append(off)
            off += din_p
        layer_meta.append((offs[0], offs[1], din))
    wih_all = jnp.concatenate(wih_parts, axis=0)

    # --- block-diagonal W_hh per layer, stacked along rows ------------------------------
    whh_parts = []
    for l in range(L):
        blk = jnp.zeros((2 * H, 8 * H), f32)
        blk = blk.at[:H, :4 * H].set(params[f"w_hh_l{l}"])
        blk = blk.at[H:, 4 * H:].set(params[f"w_hh_l{l}_rev"])
        whh_parts.append(blk)
    whh_all = jnp.concatenate(whh_parts, axis=0)             # (2H*L, 8H)

    bias_all = jnp.concatenate(
        [params[f"b_l{l}{sfx}"] for l in range(L) for sfx in ("", "_rev")], axis=0)  # (2L, 4H)

    fc_all = jnp.zeros((2 * H + 8, E), f32)
    fc_all = fc_all.at[:2 * H].set(params["fc_w_t"])
    fc_all = fc_all.at[2 * H].set(params["fc_b"][0])

    args = (tgt_p, x_flat, wih_all, whh_all, bias_all, hc0, fc_all)
    in_specs = [pl.BlockSpec(memory_space=pltpu.MemorySpace.VMEM)] * len(args)
    scratch_shapes = [pltpu.VMEM((T, BP, H), f32)] * (2 * (L - 1))

    kernel = _make_encoder_kernel(L, T, B, H, E, tuple(layer_meta))

    return pl.pallas_call(
        kernel,
        out_shape=jax.ShapeDtypeStruct((B, E), jnp.float32),
        in_specs=in_specs,
        out_specs=pl.BlockSpec(memory_space=pltpu.MemorySpace.VMEM),
        scratch_shapes=scratch_shapes,
    )(*args)


# ----------------------------------------------------------------------------
# Parameter construction (deterministic, matches module __init__ shapes)
# ----------------------------------------------------------------------------
def init_params(key, input_size, hidden_size, encoder_dim, num_layers):
    params = {}
    k = 1.0 / jnp.sqrt(hidden_size)
    for layer in range(num_layers):
        d_in = input_size if layer == 0 else 2 * hidden_size
        for suffix in ("", "_rev"):
            key, k1, k2, k3, k4 = jax.random.split(key, 5)
            w_ih = jax.random.uniform(k1, (4 * hidden_size, d_in),
                                      minval=-k, maxval=k, dtype=jnp.float32)
            w_hh = jax.random.uniform(k2, (4 * hidden_size, hidden_size),
                                      minval=-k, maxval=k, dtype=jnp.float32)
            b_ih = jax.random.uniform(k3, (4 * hidden_size,),
                                      minval=-k, maxval=k, dtype=jnp.float32)
            b_hh = jax.random.uniform(k4, (4 * hidden_size,),
                                      minval=-k, maxval=k, dtype=jnp.float32)
            params[f"w_ih_l{layer}{suffix}"] = w_ih.T            # (d_in, 4H)
            params[f"w_hh_l{layer}{suffix}"] = w_hh.T            # (H, 4H)
            params[f"b_l{layer}{suffix}"] = (b_ih + b_hh)[None]  # (1, 4H)

    # fc1: kaiming_normal_ (fan_in = 2H, gain = sqrt(2))
    key, k1, k2 = jax.random.split(key, 3)
    fan_in = 2 * hidden_size
    std = jnp.sqrt(2.0 / fan_in)
    fc_w = std * jax.random.normal(k1, (encoder_dim, fan_in), dtype=jnp.float32)
    fc_b = jax.random.uniform(k2, (encoder_dim,),
                              minval=-1.0 / jnp.sqrt(fan_in),
                              maxval=1.0 / jnp.sqrt(fan_in), dtype=jnp.float32)
    params["fc_w_t"] = fc_w.T           # (2H, E)
    params["fc_b"] = fc_b[None]         # (1, E)
    return params


# ----------------------------------------------------------------------------
# Pure-JAX reference (mirrors EncoderRNN.forward literally; for correctness check)
# ----------------------------------------------------------------------------
def encoder_rnn_reference(params, x, stroke_lengths, h0, c0, *, num_layers, hidden_size):
    hp = jax.lax.Precision.HIGHEST
    T, B, _ = x.shape
    H = hidden_size
    out = x
    for layer in range(num_layers):
        dir_outs = []
        for d, suffix in enumerate(("", "_rev")):
            wih = params[f"w_ih_l{layer}{suffix}"]
            whh = params[f"w_hh_l{layer}{suffix}"]
            bias = params[f"b_l{layer}{suffix}"]
            h = h0[2 * layer + d]
            c = c0[2 * layer + d]
            ys = [None] * T
            order = range(T - 1, -1, -1) if d == 1 else range(T)
            for t in order:
                g = (jnp.dot(out[t], wih, precision=hp)
                     + jnp.dot(h, whh, precision=hp) + bias)
                i = jax.nn.sigmoid(g[:, :H])
                f = jax.nn.sigmoid(g[:, H:2 * H])
                gg = jnp.tanh(g[:, 2 * H:3 * H])
                o = jax.nn.sigmoid(g[:, 3 * H:])
                c = f * c + i * gg
                h = o * jnp.tanh(c)
                ys[t] = h
            dir_outs.append(jnp.stack(ys))
        out = jnp.concatenate(dir_outs, axis=-1)             # (T, B, 2H)
    enc = jnp.transpose(out, (1, 0, 2))                      # (B, T, 2H)
    last = enc[jnp.arange(B), stroke_lengths - 1, :]         # (B, 2H)
    y = jnp.dot(last, params["fc_w_t"], precision=hp) + params["fc_b"]
    return jnp.maximum(y, 0.0)


if __name__ == "__main__":
    # Small shapes consistent with the module's forward.
    T, B = 8, 2
    input_size, hidden_size, encoder_dim, num_layers = 8, 32, 16, 2

    key = jax.random.PRNGKey(0)
    key, kx, kh, kc = jax.random.split(key, 4)

    x = jax.random.normal(kx, (T, B, input_size), dtype=jnp.float32)
    stroke_lengths = jnp.array([T, 5], dtype=jnp.int32)
    src_mask = jnp.ones((B, T), dtype=jnp.float32)  # unused by forward

    # h0/c0 are torch.randn in the reference forward; generated deterministically here.
    h0 = jax.random.normal(kh, (num_layers * 2, B, hidden_size), dtype=jnp.float32)
    c0 = jax.random.normal(kc, (num_layers * 2, B, hidden_size), dtype=jnp.float32)

    params = init_params(key, input_size, hidden_size, encoder_dim, num_layers)

    fwd = functools.partial(encoder_rnn_forward, num_layers=num_layers,
                            hidden_size=hidden_size, encoder_dim=encoder_dim)
    out = jax.jit(fwd)(params, x, stroke_lengths, src_mask, h0, c0)
    out = jax.block_until_ready(out)

    ref = encoder_rnn_reference(params, x, stroke_lengths, h0, c0,
                                num_layers=num_layers, hidden_size=hidden_size)

    assert out.shape == (B, encoder_dim), out.shape
    assert bool(jnp.all(out >= 0.0))                       # ReLU output
    assert bool(jnp.allclose(out, ref, atol=1e-2, rtol=1e-2)), (
        float(jnp.max(jnp.abs(out - ref))))
    print("KERNEL_OK")
</pallas_src>

<mosaic_0001>
module attributes {stable_mosaic.version = 11 : i64} {
  func.func @kernel(%arg0: memref<8x1xi32, #tpu.memory_space<vmem>>, %arg1: memref<64x8xf32, #tpu.memory_space<vmem>>, %arg2: memref<144x128xf32, #tpu.memory_space<vmem>>, %arg3: memref<128x256xf32, #tpu.memory_space<vmem>>, %arg4: memref<4x128xf32, #tpu.memory_space<vmem>>, %arg5: memref<8x8x32xf32, #tpu.memory_space<vmem>>, %arg6: memref<72x16xf32, #tpu.memory_space<vmem>>, %arg7: memref<2x16xf32, #tpu.memory_space<vmem>>, %arg8: memref<8x8x32xf32, #tpu.memory_space<vmem>>, %arg9: memref<8x8x32xf32, #tpu.memory_space<vmem>>) attributes {dimension_semantics = [], scalar_prefetch = 0 : i64, scratch_operands = 2 : i64, tpu.core_type = #tpu.core_type<tc>} {
    %c0 = arith.constant 0 : index
    %c0_0 = arith.constant 0 : index
    %0 = vector.load %arg0[%c0, %c0_0] : memref<8x1xi32, #tpu.memory_space<vmem>>, vector<8x1xi32>
    %c0_1 = arith.constant 0 : index
    %c0_2 = arith.constant 0 : index
    %1 = vector.load %arg1[%c0_1, %c0_2] : memref<64x8xf32, #tpu.memory_space<vmem>>, vector<64x8xf32>
    %c0_3 = arith.constant 0 : index
    %c0_4 = arith.constant 0 : index
    %2 = vector.load %arg4[%c0_3, %c0_4] : memref<4x128xf32, #tpu.memory_space<vmem>>, vector<1x128xf32>
    %c1 = arith.constant 1 : index
    %c0_5 = arith.constant 0 : index
    %3 = vector.load %arg4[%c1, %c0_5] : memref<4x128xf32, #tpu.memory_space<vmem>>, vector<1x128xf32>
    %c0_6 = arith.constant 0 : index
    %c0_7 = arith.constant 0 : index
    %4 = vector.load %arg2[%c0_6, %c0_7] : memref<144x128xf32, #tpu.memory_space<vmem>>, vector<8x128xf32>
    %c8 = arith.constant 8 : index
    %c0_8 = arith.constant 0 : index
    %5 = vector.load %arg2[%c8, %c0_8] : memref<144x128xf32, #tpu.memory_space<vmem>>, vector<8x128xf32>
    %cst = arith.constant dense<0.000000e+00> : vector<64x128xf32>
    %6 = tpu.matmul %1, %4, %cst {dimension_numbers = #tpu.dot_dimension_numbers<[1], [0], [0], [1], [0, 0, 1, 1], [], []>} : vector<64x8xf32>, vector<8x128xf32>, vector<64x128xf32> -> vector<64x128xf32>
    %7 = vector.broadcast %2 : vector<1x128xf32> to vector<64x128xf32>
    %8 = arith.addf %6, %7 : vector<64x128xf32>
    %cst_9 = arith.constant dense<0.000000e+00> : vector<64x128xf32>
    %9 = tpu.matmul %1, %5, %cst_9 {dimension_numbers = #tpu.dot_dimension_numbers<[1], [0], [0], [1], [0, 0, 1, 1], [], []>} : vector<64x8xf32>, vector<8x128xf32>, vector<64x128xf32> -> vector<64x128xf32>
    %10 = vector.broadcast %3 : vector<1x128xf32> to vector<64x128xf32>
    %11 = arith.addf %9, %10 : vector<64x128xf32>
    %c0_10 = arith.constant 0 : index
    %c0_11 = arith.constant 0 : index
    %12 = vector.load %arg3[%c0_10, %c0_11] : memref<128x256xf32, #tpu.memory_space<vmem>>, vector<64x256xf32>
    %c0_12 = arith.constant 0 : index
    %c0_13 = arith.constant 0 : index
    %c0_14 = arith.constant 0 : index
    %13 = vector.load %arg5[%c0_12, %c0_13, %c0_14] : memref<8x8x32xf32, #tpu.memory_space<vmem>>, vector<1x8x32xf32>
    %14 = vector.shape_cast %13 : vector<1x8x32xf32> to vector<8x32xf32>
    %c1_15 = arith.constant 1 : index
    %c0_16 = arith.constant 0 : index
    %c0_17 = arith.constant 0 : index
    %15 = vector.load %arg5[%c1_15, %c0_16, %c0_17] : memref<8x8x32xf32, #tpu.memory_space<vmem>>, vector<1x8x32xf32>
    %16 = vector.shape_cast %15 : vector<1x8x32xf32> to vector<8x32xf32>
    %c4 = arith.constant 4 : index
    %c0_18 = arith.constant 0 : index
    %c0_19 = arith.constant 0 : index
    %17 = vector.load %arg5[%c4, %c0_18, %c0_19] : memref<8x8x32xf32, #tpu.memory_space<vmem>>, vector<1x8x32xf32>
    %18 = vector.shape_cast %17 : vector<1x8x32xf32> to vector<8x32xf32>
    %c5 = arith.constant 5 : index
    %c0_20 = arith.constant 0 : index
    %c0_21 = arith.constant 0 : index
    %19 = vector.load %arg5[%c5, %c0_20, %c0_21] : memref<8x8x32xf32, #tpu.memory_space<vmem>>, vector<1x8x32xf32>
    %20 = vector.shape_cast %19 : vector<1x8x32xf32> to vector<8x32xf32>
    %21 = vector.extract_strided_slice %8 {offsets = [0, 0], sizes = [8, 128], strides = [1, 1]} : vector<64x128xf32> to vector<8x128xf32>
    %22 = vector.extract_strided_slice %11 {offsets = [56, 0], sizes = [8, 128], strides = [1, 1]} : vector<64x128xf32> to vector<8x128xf32>
    %23 = tpu.concatenate %14, %16 in 1 : vector<8x32xf32>, vector<8x32xf32> -> vector<8x64xf32>
    %cst_22 = arith.constant dense<0.000000e+00> : vector<8x256xf32>
    %24 = tpu.matmul %23, %12, %cst_22 {dimension_numbers = #tpu.dot_dimension_numbers<[1], [0], [0], [1], [0, 0, 1, 1], [], []>} : vector<8x64xf32>, vector<64x256xf32>, vector<8x256xf32> -> vector<8x256xf32>
    %25 = vector.extract_strided_slice %24 {offsets = [0, 0], sizes = [8, 128], strides = [1, 1]} : vector<8x256xf32> to vector<8x128xf32>
    %26 = arith.addf %21, %25 : vector<8x128xf32>
    %27 = vector.extract_strided_slice %24 {offsets = [0, 128], sizes = [8, 128], strides = [1, 1]} : vector<8x256xf32> to vector<8x128xf32>
    %28 = arith.addf %22, %27 : vector<8x128xf32>
    %29 = arith.negf %26 : vector<8x128xf32>
    %30 = math.exp %29 : vector<8x128xf32>
    %cst_23 = arith.constant 1.000000e+00 : f32
    %31 = vector.broadcast %cst_23 : f32 to vector<8x128xf32>
    %32 = arith.addf %31, %30 : vector<8x128xf32>
    %33 = arith.divf %31, %32 : vector<8x128xf32>
    %34 = math.tanh %26 : vector<8x128xf32>
    %35 = arith.negf %28 : vector<8x128xf32>
    %36 = math.exp %35 : vector<8x128xf32>
    %cst_24 = arith.constant 1.000000e+00 : f32
    %37 = vector.broadcast %cst_24 : f32 to vector<8x128xf32>
    %38 = arith.addf %37, %36 : vector<8x128xf32>
    %39 = arith.divf %37, %38 : vector<8x128xf32>
    %40 = math.tanh %28 : vector<8x128xf32>
    %41 = vector.extract_strided_slice %33 {offsets = [0, 32], sizes = [8, 32], strides = [1, 1]} : vector<8x128xf32> to vector<8x32xf32>
    %42 = arith.mulf %41, %18 : vector<8x32xf32>
    %43 = vector.extract_strided_slice %33 {offsets = [0, 0], sizes = [8, 32], strides = [1, 1]} : vector<8x128xf32> to vector<8x32xf32>
    %44 = vector.extract_strided_slice %34 {offsets = [0, 64], sizes = [8, 32], strides = [1, 1]} : vector<8x128xf32> to vector<8x32xf32>
    %45 = arith.mulf %43, %44 : vector<8x32xf32>
    %46 = arith.addf %42, %45 : vector<8x32xf32>
    %47 = vector.extract_strided_slice %39 {offsets = [0, 32], sizes = [8, 32], strides = [1, 1]} : vector<8x128xf32> to vector<8x32xf32>
    %48 = arith.mulf %47, %20 : vector<8x32xf32>
    %49 = vector.extract_strided_slice %39 {offsets = [0, 0], sizes = [8, 32], strides = [1, 1]} : vector<8x128xf32> to vector<8x32xf32>
    %50 = vector.extract_strided_slice %40 {offsets = [0, 64], sizes = [8, 32], strides = [1, 1]} : vector<8x128xf32> to vector<8x32xf32>
    %51 = arith.mulf %49, %50 : vector<8x32xf32>
    %52 = arith.addf %48, %51 : vector<8x32xf32>
    %53 = vector.extract_strided_slice %33 {offsets = [0, 96], sizes = [8, 32], strides = [1, 1]} : vector<8x128xf32> to vector<8x32xf32>
    %54 = math.tanh %46 : vector<8x32xf32>
    %55 = arith.mulf %53, %54 : vector<8x32xf32>
    %56 = vector.extract_strided_slice %39 {offsets = [0, 96], sizes = [8, 32], strides = [1, 1]} : vector<8x128xf32> to vector<8x32xf32>
    %57 = math.tanh %52 : vector<8x32xf32>
    %58 = arith.mulf %56, %57 : vector<8x32xf32>
    %c0_25 = arith.constant 0 : index
    %c0_26 = arith.constant 0 : index
    %c0_27 = arith.constant 0 : index
    %59 = vector.load %arg8[%c0_25, %c0_26, %c0_27] : memref<8x8x32xf32, #tpu.memory_space<vmem>>, vector<1x8x32xf32>
    %60 = vector.shape_cast %59 : vector<1x8x32xf32> to vector<8x32xf32>
    %61 = vector.shape_cast %55 : vector<8x32xf32> to vector<1x8x32xf32>
    tpu.vector_store %arg8[%c0_25, %c0_26, %c0_27], %61 {strides = array<i32>} : memref<8x8x32xf32, #tpu.memory_space<vmem>>, vector<1x8x32xf32>,
    %c7 = arith.constant 7 : index
    %c0_28 = arith.constant 0 : index
    %c0_29 = arith.constant 0 : index
    %62 = vector.load %arg9[%c7, %c0_28, %c0_29] : memref<8x8x32xf32, #tpu.memory_space<vmem>>, vector<1x8x32xf32>
    %63 = vector.shape_cast %62 : vector<1x8x32xf32> to vector<8x32xf32>
    %64 = vector.shape_cast %58 : vector<8x32xf32> to vector<1x8x32xf32>
    tpu.vector_store %arg9[%c7, %c0_28, %c0_29], %64 {strides = array<i32>} : memref<8x8x32xf32, #tpu.memory_space<vmem>>, vector<1x8x32xf32>,
    %65 = vector.extract_strided_slice %8 {offsets = [8, 0], sizes = [8, 128], strides = [1, 1]} : vector<64x128xf32> to vector<8x128xf32>
    %66 = vector.extract_strided_slice %11 {offsets = [48, 0], sizes = [8, 128], strides = [1, 1]} : vector<64x128xf32> to vector<8x128xf32>
    %67 = tpu.concatenate %55, %58 in 1 : vector<8x32xf32>, vector<8x32xf32> -> vector<8x64xf32>
    %cst_30 = arith.constant dense<0.000000e+00> : vector<8x256xf32>
    %68 = tpu.matmul %67, %12, %cst_30 {dimension_numbers = #tpu.dot_dimension_numbers<[1], [0], [0], [1], [0, 0, 1, 1], [], []>} : vector<8x64xf32>, vector<64x256xf32>, vector<8x256xf32> -> vector<8x256xf32>
    %69 = vector.extract_strided_slice %68 {offsets = [0, 0], sizes = [8, 128], strides = [1, 1]} : vector<8x256xf32> to vector<8x128xf32>
    %70 = arith.addf %65, %69 : vector<8x128xf32>
    %71 = vector.extract_strided_slice %68 {offsets = [0, 128], sizes = [8, 128], strides = [1, 1]} : vector<8x256xf32> to vector<8x128xf32>
    %72 = arith.addf %66, %71 : vector<8x128xf32>
    %73 = arith.negf %70 : vector<8x128xf32>
    %74 = math.exp %73 : vector<8x128xf32>
    %cst_31 = arith.constant 1.000000e+00 : f32
    %75 = vector.broadcast %cst_31 : f32 to vector<8x128xf32>
    %76 = arith.addf %75, %74 : vector<8x128xf32>
    %77 = arith.divf %75, %76 : vector<8x128xf32>
    %78 = math.tanh %70 : vector<8x128xf32>
    %79 = arith.negf %72 : vector<8x128xf32>
    %80 = math.exp %79 : vector<8x128xf32>
    %cst_32 = arith.constant 1.000000e+00 : f32
    %81 = vector.broadcast %cst_32 : f32 to vector<8x128xf32>
    %82 = arith.addf %81, %80 : vector<8x128xf32>
    %83 = arith.divf %81, %82 : vector<8x128xf32>
    %84 = math.tanh %72 : vector<8x128xf32>
    %85 = vector.extract_strided_slice %77 {offsets = [0, 32], sizes = [8, 32], strides = [1, 1]} : vector<8x128xf32> to vector<8x32xf32>
    %86 = arith.mulf %85, %46 : vector<8x32xf32>
    %87 = vector.extract_strided_slice %77 {offsets = [0, 0], sizes = [8, 32], strides = [1, 1]} : vector<8x128xf32> to vector<8x32xf32>
    %88 = vector.extract_strided_slice %78 {offsets = [0, 64], sizes = [8, 32], strides = [1, 1]} : vector<8x128xf32> to vector<8x32xf32>
    %89 = arith.mulf %87, %88 : vector<8x32xf32>
    %90 = arith.addf %86, %89 : vector<8x32xf32>
    %91 = vector.extract_strided_slice %83 {offsets = [0, 32], sizes = [8, 32], strides = [1, 1]} : vector<8x128xf32> to vector<8x32xf32>
    %92 = arith.mulf %91, %52 : vector<8x32xf32>
    %93 = vector.extract_strided_slice %83 {offsets = [0, 0], sizes = [8, 32], strides = [1, 1]} : vector<8x128xf32> to vector<8x32xf32>
    %94 = vector.extract_strided_slice %84 {offsets = [0, 64], sizes = [8, 32], strides = [1, 1]} : vector<8x128xf32> to vector<8x32xf32>
    %95 = arith.mulf %93, %94 : vector<8x32xf32>
    %96 = arith.addf %92, %95 : vector<8x32xf32>
    %97 = vector.extract_strided_slice %77 {offsets = [0, 96], sizes = [8, 32], strides = [1, 1]} : vector<8x128xf32> to vector<8x32xf32>
    %98 = math.tanh %90 : vector<8x32xf32>
    %99 = arith.mulf %97, %98 : vector<8x32xf32>
    %100 = vector.extract_strided_slice %83 {offsets = [0, 96], sizes = [8, 32], strides = [1, 1]} : vector<8x128xf32> to vector<8x32xf32>
    %101 = math.tanh %96 : vector<8x32xf32>
    %102 = arith.mulf %100, %101 : vector<8x32xf32>
    %c1_33 = arith.constant 1 : index
    %c0_34 = arith.constant 0 : index
    %c0_35 = arith.constant 0 : index
    %103 = vector.load %arg8[%c1_33, %c0_34, %c0_35] : memref<8x8x32xf32, #tpu.memory_space<vmem>>, vector<1x8x32xf32>
    %104 = vector.shape_cast %103 : vector<1x8x32xf32> to vector<8x32xf32>
    %105 = vector.shape_cast %99 : vector<8x32xf32> to vector<1x8x32xf32>
    tpu.vector_store %arg8[%c1_33, %c0_34, %c0_35], %105 {strides = array<i32>} : memref<8x8x32xf32, #tpu.memory_space<vmem>>, vector<1x8x32xf32>,
    %c6 = arith.constant 6 : index
    %c0_36 = arith.constant 0 : index
    %c0_37 = arith.constant 0 : index
    %106 = vector.load %arg9[%c6, %c0_36, %c0_37] : memref<8x8x32xf32, #tpu.memory_space<vmem>>, vector<1x8x32xf32>
    %107 = vector.shape_cast %106 : vector<1x8x32xf32> to vector<8x32xf32>
    %108 = vector.shape_cast %102 : vector<8x32xf32> to vector<1x8x32xf32>
    tpu.vector_store %arg9[%c6, %c0_36, %c0_37], %108 {strides = array<i32>} : memref<8x8x32xf32, #tpu.memory_space<vmem>>, vector<1x8x32xf32>,
    %109 = vector.extract_strided_slice %8 {offsets = [16, 0], sizes = [8, 128], strides = [1, 1]} : vector<64x128xf32> to vector<8x128xf32>
    %110 = vector.extract_strided_slice %11 {offsets = [40, 0], sizes = [8, 128], strides = [1, 1]} : vector<64x128xf32> to vector<8x128xf32>
    %111 = tpu.concatenate %99, %102 in 1 : vector<8x32xf32>, vector<8x32xf32> -> vector<8x64xf32>
    %cst_38 = arith.constant dense<0.000000e+00> : vector<8x256xf32>
    %112 = tpu.matmul %111, %12, %cst_38 {dimension_numbers = #tpu.dot_dimension_numbers<[1], [0], [0], [1], [0, 0, 1, 1], [], []>} : vector<8x64xf32>, vector<64x256xf32>, vector<8x256xf32> -> vector<8x256xf32>
    %113 = vector.extract_strided_slice %112 {offsets = [0, 0], sizes = [8, 128], strides = [1, 1]} : vector<8x256xf32> to vector<8x128xf32>
    %114 = arith.addf %109, %113 : vector<8x128xf32>
    %115 = vector.extract_strided_slice %112 {offsets = [0, 128], sizes = [8, 128], strides = [1, 1]} : vector<8x256xf32> to vector<8x128xf32>
    %116 = arith.addf %110, %115 : vector<8x128xf32>
    %117 = arith.negf %114 : vector<8x128xf32>
    %118 = math.exp %117 : vector<8x128xf32>
    %cst_39 = arith.constant 1.000000e+00 : f32
    %119 = vector.broadcast %cst_39 : f32 to vector<8x128xf32>
    %120 = arith.addf %119, %118 : vector<8x128xf32>
    %121 = arith.divf %119, %120 : vector<8x128xf32>
    %122 = math.tanh %114 : vector<8x128xf32>
    %123 = arith.negf %116 : vector<8x128xf32>
    %124 = math.exp %123 : vector<8x128xf32>
    %cst_40 = arith.constant 1.000000e+00 : f32
    %125 = vector.broadcast %cst_40 : f32 to vector<8x128xf32>
    %126 = arith.addf %125, %124 : vector<8x128xf32>
    %127 = arith.divf %125, %126 : vector<8x128xf32>
    %128 = math.tanh %116 : vector<8x128xf32>
    %129 = vector.extract_strided_slice %121 {offsets = [0, 32], sizes = [8, 32], strides = [1, 1]} : vector<8x128xf32> to vector<8x32xf32>
    %130 = arith.mulf %129, %90 : vector<8x32xf32>
    %131 = vector.extract_strided_slice %121 {offsets = [0, 0], sizes = [8, 32], strides = [1, 1]} : vector<8x128xf32> to vector<8x32xf32>
    %132 = vector.extract_strided_slice %122 {offsets = [0, 64], sizes = [8, 32], strides = [1, 1]} : vector<8x128xf32> to vector<8x32xf32>
    %133 = arith.mulf %131, %132 : vector<8x32xf32>
    %134 = arith.addf %130, %133 : vector<8x32xf32>
    %135 = vector.extract_strided_slice %127 {offsets = [0, 32], sizes = [8, 32], strides = [1, 1]} : vector<8x128xf32> to vector<8x32xf32>
    %136 = arith.mulf %135, %96 : vector<8x32xf32>
    %137 = vector.extract_strided_slice %127 {offsets = [0, 0], sizes = [8, 32], strides = [1, 1]} : vector<8x128xf32> to vector<8x32xf32>
    %138 = vector.extract_strided_slice %128 {offsets = [0, 64], sizes = [8, 32], strides = [1, 1]} : vector<8x128xf32> to vector<8x32xf32>
    %139 = arith.mulf %137, %138 : vector<8x32xf32>
    %140 = arith.addf %136, %139 : vector<8x32xf32>
    %141 = vector.extract_strided_slice %121 {offsets = [0, 96], sizes = [8, 32], strides = [1, 1]} : vector<8x128xf32> to vector<8x32xf32>
    %142 = math.tanh %134 : vector<8x32xf32>
    %143 = arith.mulf %141, %142 : vector<8x32xf32>
    %144 = vector.extract_strided_slice %127 {offsets = [0, 96], sizes = [8, 32], strides = [1, 1]} : vector<8x128xf32> to vector<8x32xf32>
    %145 = math.tanh %140 : vector<8x32xf32>
    %146 = arith.mulf %144, %145 : vector<8x32xf32>
    %c2 = arith.constant 2 : index
    %c0_41 = arith.constant 0 : index
    %c0_42 = arith.constant 0 : index
    %147 = vector.load %arg8[%c2, %c0_41, %c0_42] : memref<8x8x32xf32, #tpu.memory_space<vmem>>, vector<1x8x32xf32>
    %148 = vector.shape_cast %147 : vector<1x8x32xf32> to vector<8x32xf32>
    %149 = vector.shape_cast %143 : vector<8x32xf32> to vector<1x8x32xf32>
    tpu.vector_store %arg8[%c2, %c0_41, %c0_42], %149 {strides = array<i32>} : memref<8x8x32xf32, #tpu.memory_space<vmem>>, vector<1x8x32xf32>,
    %c5_43 = arith.constant 5 : index
    %c0_44 = arith.constant 0 : index
    %c0_45 = arith.constant 0 : index
    %150 = vector.load %arg9[%c5_43, %c0_44, %c0_45] : memref<8x8x32xf32, #tpu.memory_space<vmem>>, vector<1x8x32xf32>
    %151 = vector.shape_cast %150 : vector<1x8x32xf32> to vector<8x32xf32>
    %152 = vector.shape_cast %146 : vector<8x32xf32> to vector<1x8x32xf32>
    tpu.vector_store %arg9[%c5_43, %c0_44, %c0_45], %152 {strides = array<i32>} : memref<8x8x32xf32, #tpu.memory_space<vmem>>, vector<1x8x32xf32>,
    %153 = vector.extract_strided_slice %8 {offsets = [24, 0], sizes = [8, 128], strides = [1, 1]} : vector<64x128xf32> to vector<8x128xf32>
    %154 = vector.extract_strided_slice %11 {offsets = [32, 0], sizes = [8, 128], strides = [1, 1]} : vector<64x128xf32> to vector<8x128xf32>
    %155 = tpu.concatenate %143, %146 in 1 : vector<8x32xf32>, vector<8x32xf32> -> vector<8x64xf32>
    %cst_46 = arith.constant dense<0.000000e+00> : vector<8x256xf32>
    %156 = tpu.matmul %155, %12, %cst_46 {dimension_numbers = #tpu.dot_dimension_numbers<[1], [0], [0], [1], [0, 0, 1, 1], [], []>} : vector<8x64xf32>, vector<64x256xf32>, vector<8x256xf32> -> vector<8x256xf32>
    %157 = vector.extract_strided_slice %156 {offsets = [0, 0], sizes = [8, 128], strides = [1, 1]} : vector<8x256xf32> to vector<8x128xf32>
    %158 = arith.addf %153, %157 : vector<8x128xf32>
    %159 = vector.extract_strided_slice %156 {offsets = [0, 128], sizes = [8, 128], strides = [1, 1]} : vector<8x256xf32> to vector<8x128xf32>
    %160 = arith.addf %154, %159 : vector<8x128xf32>
    %161 = arith.negf %158 : vector<8x128xf32>
    %162 = math.exp %161 : vector<8x128xf32>
    %cst_47 = arith.constant 1.000000e+00 : f32
    %163 = vector.broadcast %cst_47 : f32 to vector<8x128xf32>
    %164 = arith.addf %163, %162 : vector<8x128xf32>
    %165 = arith.divf %163, %164 : vector<8x128xf32>
    %166 = math.tanh %158 : vector<8x128xf32>
    %167 = arith.negf %160 : vector<8x128xf32>
    %168 = math.exp %167 : vector<8x128xf32>
    %cst_48 = arith.constant 1.000000e+00 : f32
    %169 = vector.broadcast %cst_48 : f32 to vector<8x128xf32>
    %170 = arith.addf %169, %168 : vector<8x128xf32>
    %171 = arith.divf %169, %170 : vector<8x128xf32>
    %172 = math.tanh %160 : vector<8x128xf32>
    %173 = vector.extract_strided_slice %165 {offsets = [0, 32], sizes = [8, 32], strides = [1, 1]} : vector<8x128xf32> to vector<8x32xf32>
    %174 = arith.mulf %173, %134 : vector<8x32xf32>
    %175 = vector.extract_strided_slice %165 {offsets = [0, 0], sizes = [8, 32], strides = [1, 1]} : vector<8x128xf32> to vector<8x32xf32>
    %176 = vector.extract_strided_slice %166 {offsets = [0, 64], sizes = [8, 32], strides = [1, 1]} : vector<8x128xf32> to vector<8x32xf32>
    %177 = arith.mulf %175, %176 : vector<8x32xf32>
    %178 = arith.addf %174, %177 : vector<8x32xf32>
    %179 = vector.extract_strided_slice %171 {offsets = [0, 32], sizes = [8, 32], strides = [1, 1]} : vector<8x128xf32> to vector<8x32xf32>
    %180 = arith.mulf %179, %140 : vector<8x32xf32>
    %181 = vector.extract_strided_slice %171 {offsets = [0, 0], sizes = [8, 32], strides = [1, 1]} : vector<8x128xf32> to vector<8x32xf32>
    %182 = vector.extract_strided_slice %172 {offsets = [0, 64], sizes = [8, 32], strides = [1, 1]} : vector<8x128xf32> to vector<8x32xf32>
    %183 = arith.mulf %181, %182 : vector<8x32xf32>
    %184 = arith.addf %180, %183 : vector<8x32xf32>
    %185 = vector.extract_strided_slice %165 {offsets = [0, 96], sizes = [8, 32], strides = [1, 1]} : vector<8x128xf32> to vector<8x32xf32>
    %186 = math.tanh %178 : vector<8x32xf32>
    %187 = arith.mulf %185, %186 : vector<8x32xf32>
    %188 = vector.extract_strided_slice %171 {offsets = [0, 96], sizes = [8, 32], strides = [1, 1]} : vector<8x128xf32> to vector<8x32xf32>
    %189 = math.tanh %184 : vector<8x32xf32>
    %190 = arith.mulf %188, %189 : vector<8x32xf32>
    %c3 = arith.constant 3 : index
    %c0_49 = arith.constant 0 : index
    %c0_50 = arith.constant 0 : index
    %191 = vector.load %arg8[%c3, %c0_49, %c0_50] : memref<8x8x32xf32, #tpu.memory_space<vmem>>, vector<1x8x32xf32>
    %192 = vector.shape_cast %191 : vector<1x8x32xf32> to vector<8x32xf32>
    %193 = vector.shape_cast %187 : vector<8x32xf32> to vector<1x8x32xf32>
    tpu.vector_store %arg8[%c3, %c0_49, %c0_50], %193 {strides = array<i32>} : memref<8x8x32xf32, #tpu.memory_space<vmem>>, vector<1x8x32xf32>,
    %c4_51 = arith.constant 4 : index
    %c0_52 = arith.constant 0 : index
    %c0_53 = arith.constant 0 : index
    %194 = vector.load %arg9[%c4_51, %c0_52, %c0_53] : memref<8x8x32xf32, #tpu.memory_space<vmem>>, vector<1x8x32xf32>
    %195 = vector.shape_cast %194 : vector<1x8x32xf32> to vector<8x32xf32>
    %196 = vector.shape_cast %190 : vector<8x32xf32> to vector<1x8x32xf32>
    tpu.vector_store %arg9[%c4_51, %c0_52, %c0_53], %196 {strides = array<i32>} : memref<8x8x32xf32, #tpu.memory_space<vmem>>, vector<1x8x32xf32>,
    %197 = vector.extract_strided_slice %8 {offsets = [32, 0], sizes = [8, 128], strides = [1, 1]} : vector<64x128xf32> to vector<8x128xf32>
    %198 = vector.extract_strided_slice %11 {offsets = [24, 0], sizes = [8, 128], strides = [1, 1]} : vector<64x128xf32> to vector<8x128xf32>
    %199 = tpu.concatenate %187, %190 in 1 : vector<8x32xf32>, vector<8x32xf32> -> vector<8x64xf32>
    %cst_54 = arith.constant dense<0.000000e+00> : vector<8x256xf32>
    %200 = tpu.matmul %199, %12, %cst_54 {dimension_numbers = #tpu.dot_dimension_numbers<[1], [0], [0], [1], [0, 0, 1, 1], [], []>} : vector<8x64xf32>, vector<64x256xf32>, vector<8x256xf32> -> vector<8x256xf32>
    %201 = vector.extract_strided_slice %200 {offsets = [0, 0], sizes = [8, 128], strides = [1, 1]} : vector<8x256xf32> to vector<8x128xf32>
    %202 = arith.addf %197, %201 : vector<8x128xf32>
    %203 = vector.extract_strided_slice %200 {offsets = [0, 128], sizes = [8, 128], strides = [1, 1]} : vector<8x256xf32> to vector<8x128xf32>
    %204 = arith.addf %198, %203 : vector<8x128xf32>
    %205 = arith.negf %202 : vector<8x128xf32>
    %206 = math.exp %205 : vector<8x128xf32>
    %cst_55 = arith.constant 1.000000e+00 : f32
    %207 = vector.broadcast %cst_55 : f32 to vector<8x128xf32>
    %208 = arith.addf %207, %206 : vector<8x128xf32>
    %209 = arith.divf %207, %208 : vector<8x128xf32>
    %210 = math.tanh %202 : vector<8x128xf32>
    %211 = arith.negf %204 : vector<8x128xf32>
    %212 = math.exp %211 : vector<8x128xf32>
    %cst_56 = arith.constant 1.000000e+00 : f32
    %213 = vector.broadcast %cst_56 : f32 to vector<8x128xf32>
    %214 = arith.addf %213, %212 : vector<8x128xf32>
    %215 = arith.divf %213, %214 : vector<8x128xf32>
    %216 = math.tanh %204 : vector<8x128xf32>
    %217 = vector.extract_strided_slice %209 {offsets = [0, 32], sizes = [8, 32], strides = [1, 1]} : vector<8x128xf32> to vector<8x32xf32>
    %218 = arith.mulf %217, %178 : vector<8x32xf32>
    %219 = vector.extract_strided_slice %209 {offsets = [0, 0], sizes = [8, 32], strides = [1, 1]} : vector<8x128xf32> to vector<8x32xf32>
    %220 = vector.extract_strided_slice %210 {offsets = [0, 64], sizes = [8, 32], strides = [1, 1]} : vector<8x128xf32> to vector<8x32xf32>
    %221 = arith.mulf %219, %220 : vector<8x32xf32>
    %222 = arith.addf %218, %221 : vector<8x32xf32>
    %223 = vector.extract_strided_slice %215 {offsets = [0, 32], sizes = [8, 32], strides = [1, 1]} : vector<8x128xf32> to vector<8x32xf32>
    %224 = arith.mulf %223, %184 : vector<8x32xf32>
    %225 = vector.extract_strided_slice %215 {offsets = [0, 0], sizes = [8, 32], strides = [1, 1]} : vector<8x128xf32> to vector<8x32xf32>
    %226 = vector.extract_strided_slice %216 {offsets = [0, 64], sizes = [8, 32], strides = [1, 1]} : vector<8x128xf32> to vector<8x32xf32>
    %227 = arith.mulf %225, %226 : vector<8x32xf32>
    %228 = arith.addf %224, %227 : vector<8x32xf32>
    %229 = vector.extract_strided_slice %209 {offsets = [0, 96], sizes = [8, 32], strides = [1, 1]} : vector<8x128xf32> to vector<8x32xf32>
    %230 = math.tanh %222 : vector<8x32xf32>
    %231 = arith.mulf %229, %230 : vector<8x32xf32>
    %232 = vector.extract_strided_slice %215 {offsets = [0, 96], sizes = [8, 32], strides = [1, 1]} : vector<8x128xf32> to vector<8x32xf32>
    %233 = math.tanh %228 : vector<8x32xf32>
    %234 = arith.mulf %232, %233 : vector<8x32xf32>
    %c4_57 = arith.constant 4 : index
    %c0_58 = arith.constant 0 : index
    %c0_59 = arith.constant 0 : index
    %235 = vector.load %arg8[%c4_57, %c0_58, %c0_59] : memref<8x8x32xf32, #tpu.memory_space<vmem>>, vector<1x8x32xf32>
    %236 = vector.shape_cast %235 : vector<1x8x32xf32> to vector<8x32xf32>
    %237 = vector.shape_cast %231 : vector<8x32xf32> to vector<1x8x32xf32>
    tpu.vector_store %arg8[%c4_57, %c0_58, %c0_59], %237 {strides = array<i32>} : memref<8x8x32xf32, #tpu.memory_space<vmem>>, vector<1x8x32xf32>,
    %c3_60 = arith.constant 3 : index
    %c0_61 = arith.constant 0 : index
    %c0_62 = arith.constant 0 : index
    %238 = vector.load %arg9[%c3_60, %c0_61, %c0_62] : memref<8x8x32xf32, #tpu.memory_space<vmem>>, vector<1x8x32xf32>
    %239 = vector.shape_cast %238 : vector<1x8x32xf32> to vector<8x32xf32>
    %240 = vector.shape_cast %234 : vector<8x32xf32> to vector<1x8x32xf32>
    tpu.vector_store %arg9[%c3_60, %c0_61, %c0_62], %240 {strides = array<i32>} : memref<8x8x32xf32, #tpu.memory_space<vmem>>, vector<1x8x32xf32>,
    %241 = vector.extract_strided_slice %8 {offsets = [40, 0], sizes = [8, 128], strides = [1, 1]} : vector<64x128xf32> to vector<8x128xf32>
    %242 = vector.extract_strided_slice %11 {offsets = [16, 0], sizes = [8, 128], strides = [1, 1]} : vector<64x128xf32> to vector<8x128xf32>
    %243 = tpu.concatenate %231, %234 in 1 : vector<8x32xf32>, vector<8x32xf32> -> vector<8x64xf32>
    %cst_63 = arith.constant dense<0.000000e+00> : vector<8x256xf32>
    %244 = tpu.matmul %243, %12, %cst_63 {dimension_numbers = #tpu.dot_dimension_numbers<[1], [0], [0], [1], [0, 0, 1, 1], [], []>} : vector<8x64xf32>, vector<64x256xf32>, vector<8x256xf32> -> vector<8x256xf32>
    %245 = vector.extract_strided_slice %244 {offsets = [0, 0], sizes = [8, 128], strides = [1, 1]} : vector<8x256xf32> to vector<8x128xf32>
    %246 = arith.addf %241, %245 : vector<8x128xf32>
    %247 = vector.extract_strided_slice %244 {offsets = [0, 128], sizes = [8, 128], strides = [1, 1]} : vector<8x256xf32> to vector<8x128xf32>
    %248 = arith.addf %242, %247 : vector<8x128xf32>
    %249 = arith.negf %246 : vector<8x128xf32>
    %250 = math.exp %249 : vector<8x128xf32>
    %cst_64 = arith.constant 1.000000e+00 : f32
    %251 = vector.broadcast %cst_64 : f32 to vector<8x128xf32>
    %252 = arith.addf %251, %250 : vector<8x128xf32>
    %253 = arith.divf %251, %252 : vector<8x128xf32>
    %254 = math.tanh %246 : vector<8x128xf32>
    %255 = arith.negf %248 : vector<8x128xf32>
    %256 = math.exp %255 : vector<8x128xf32>
    %cst_65 = arith.constant 1.000000e+00 : f32
    %257 = vector.broadcast %cst_65 : f32 to vector<8x128xf32>
    %258 = arith.addf %257, %256 : vector<8x128xf32>
    %259 = arith.divf %257, %258 : vector<8x128xf32>
    %260 = math.tanh %248 : vector<8x128xf32>
    %261 = vector.extract_strided_slice %253 {offsets = [0, 32], sizes = [8, 32], strides = [1, 1]} : vector<8x128xf32> to vector<8x32xf32>
    %262 = arith.mulf %261, %222 : vector<8x32xf32>
    %263 = vector.extract_strided_slice %253 {offsets = [0, 0], sizes = [8, 32], strides = [1, 1]} : vector<8x128xf32> to vector<8x32xf32>
    %264 = vector.extract_strided_slice %254 {offsets = [0, 64], sizes = [8, 32], strides = [1, 1]} : vector<8x128xf32> to vector<8x32xf32>
    %265 = arith.mulf %263, %264 : vector<8x32xf32>
    %266 = arith.addf %262, %265 : vector<8x32xf32>
    %267 = vector.extract_strided_slice %259 {offsets = [0, 32], sizes = [8, 32], strides = [1, 1]} : vector<8x128xf32> to vector<8x32xf32>
    %268 = arith.mulf %267, %228 : vector<8x32xf32>
    %269 = vector.extract_strided_slice %259 {offsets = [0, 0], sizes = [8, 32], strides = [1, 1]} : vector<8x128xf32> to vector<8x32xf32>
    %270 = vector.extract_strided_slice %260 {offsets = [0, 64], sizes = [8, 32], strides = [1, 1]} : vector<8x128xf32> to vector<8x32xf32>
    %271 = arith.mulf %269, %270 : vector<8x32xf32>
    %272 = arith.addf %268, %271 : vector<8x32xf32>
    %273 = vector.extract_strided_slice %253 {offsets = [0, 96], sizes = [8, 32], strides = [1, 1]} : vector<8x128xf32> to vector<8x32xf32>
    %274 = math.tanh %266 : vector<8x32xf32>
    %275 = arith.mulf %273, %274 : vector<8x32xf32>
    %276 = vector.extract_strided_slice %259 {offsets = [0, 96], sizes = [8, 32], strides = [1, 1]} : vector<8x128xf32> to vector<8x32xf32>
    %277 = math.tanh %272 : vector<8x32xf32>
    %278 = arith.mulf %276, %277 : vector<8x32xf32>
    %c5_66 = arith.constant 5 : index
    %c0_67 = arith.constant 0 : index
    %c0_68 = arith.constant 0 : index
    %279 = vector.load %arg8[%c5_66, %c0_67, %c0_68] : memref<8x8x32xf32, #tpu.memory_space<vmem>>, vector<1x8x32xf32>
    %280 = vector.shape_cast %279 : vector<1x8x32xf32> to vector<8x32xf32>
    %281 = vector.shape_cast %275 : vector<8x32xf32> to vector<1x8x32xf32>
    tpu.vector_store %arg8[%c5_66, %c0_67, %c0_68], %281 {strides = array<i32>} : memref<8x8x32xf32, #tpu.memory_space<vmem>>, vector<1x8x32xf32>,
    %c2_69 = arith.constant 2 : index
    %c0_70 = arith.constant 0 : index
    %c0_71 = arith.constant 0 : index
    %282 = vector.load %arg9[%c2_69, %c0_70, %c0_71] : memref<8x8x32xf32, #tpu.memory_space<vmem>>, vector<1x8x32xf32>
    %283 = vector.shape_cast %282 : vector<1x8x32xf32> to vector<8x32xf32>
    %284 = vector.shape_cast %278 : vector<8x32xf32> to vector<1x8x32xf32>
    tpu.vector_store %arg9[%c2_69, %c0_70, %c0_71], %284 {strides = array<i32>} : memref<8x8x32xf32, #tpu.memory_space<vmem>>, vector<1x8x32xf32>,
    %285 = vector.extract_strided_slice %8 {offsets = [48, 0], sizes = [8, 128], strides = [1, 1]} : vector<64x128xf32> to vector<8x128xf32>
    %286 = vector.extract_strided_slice %11 {offsets = [8, 0], sizes = [8, 128], strides = [1, 1]} : vector<64x128xf32> to vector<8x128xf32>
    %287 = tpu.concatenate %275, %278 in 1 : vector<8x32xf32>, vector<8x32xf32> -> vector<8x64xf32>
    %cst_72 = arith.constant dense<0.000000e+00> : vector<8x256xf32>
    %288 = tpu.matmul %287, %12, %cst_72 {dimension_numbers = #tpu.dot_dimension_numbers<[1], [0], [0], [1], [0, 0, 1, 1], [], []>} : vector<8x64xf32>, vector<64x256xf32>, vector<8x256xf32> -> vector<8x256xf32>
    %289 = vector.extract_strided_slice %288 {offsets = [0, 0], sizes = [8, 128], strides = [1, 1]} : vector<8x256xf32> to vector<8x128xf32>
    %290 = arith.addf %285, %289 : vector<8x128xf32>
    %291 = vector.extract_strided_slice %288 {offsets = [0, 128], sizes = [8, 128], strides = [1, 1]} : vector<8x256xf32> to vector<8x128xf32>
    %292 = arith.addf %286, %291 : vector<8x128xf32>
    %293 = arith.negf %290 : vector<8x128xf32>
    %294 = math.exp %293 : vector<8x128xf32>
    %cst_73 = arith.constant 1.000000e+00 : f32
    %295 = vector.broadcast %cst_73 : f32 to vector<8x128xf32>
    %296 = arith.addf %295, %294 : vector<8x128xf32>
    %297 = arith.divf %295, %296 : vector<8x128xf32>
    %298 = math.tanh %290 : vector<8x128xf32>
    %299 = arith.negf %292 : vector<8x128xf32>
    %300 = math.exp %299 : vector<8x128xf32>
    %cst_74 = arith.constant 1.000000e+00 : f32
    %301 = vector.broadcast %cst_74 : f32 to vector<8x128xf32>
    %302 = arith.addf %301, %300 : vector<8x128xf32>
    %303 = arith.divf %301, %302 : vector<8x128xf32>
    %304 = math.tanh %292 : vector<8x128xf32>
    %305 = vector.extract_strided_slice %297 {offsets = [0, 32], sizes = [8, 32], strides = [1, 1]} : vector<8x128xf32> to vector<8x32xf32>
    %306 = arith.mulf %305, %266 : vector<8x32xf32>
    %307 = vector.extract_strided_slice %297 {offsets = [0, 0], sizes = [8, 32], strides = [1, 1]} : vector<8x128xf32> to vector<8x32xf32>
    %308 = vector.extract_strided_slice %298 {offsets = [0, 64], sizes = [8, 32], strides = [1, 1]} : vector<8x128xf32> to vector<8x32xf32>
    %309 = arith.mulf %307, %308 : vector<8x32xf32>
    %310 = arith.addf %306, %309 : vector<8x32xf32>
    %311 = vector.extract_strided_slice %303 {offsets = [0, 32], sizes = [8, 32], strides = [1, 1]} : vector<8x128xf32> to vector<8x32xf32>
    %312 = arith.mulf %311, %272 : vector<8x32xf32>
    %313 = vector.extract_strided_slice %303 {offsets = [0, 0], sizes = [8, 32], strides = [1, 1]} : vector<8x128xf32> to vector<8x32xf32>
    %314 = vector.extract_strided_slice %304 {offsets = [0, 64], sizes = [8, 32], strides = [1, 1]} : vector<8x128xf32> to vector<8x32xf32>
    %315 = arith.mulf %313, %314 : vector<8x32xf32>
    %316 = arith.addf %312, %315 : vector<8x32xf32>
    %317 = vector.extract_strided_slice %297 {offsets = [0, 96], sizes = [8, 32], strides = [1, 1]} : vector<8x128xf32> to vector<8x32xf32>
    %318 = math.tanh %310 : vector<8x32xf32>
    %319 = arith.mulf %317, %318 : vector<8x32xf32>
    %320 = vector.extract_strided_slice %303 {offsets = [0, 96], sizes = [8, 32], strides = [1, 1]} : vector<8x128xf32> to vector<8x32xf32>
    %321 = math.tanh %316 : vector<8x32xf32>
    %322 = arith.mulf %320, %321 : vector<8x32xf32>
    %c6_75 = arith.constant 6 : index
    %c0_76 = arith.constant 0 : index
    %c0_77 = arith.constant 0 : index
    %323 = vector.load %arg8[%c6_75, %c0_76, %c0_77] : memref<8x8x32xf32, #tpu.memory_space<vmem>>, vector<1x8x32xf32>
    %324 = vector.shape_cast %323 : vector<1x8x32xf32> to vector<8x32xf32>
    %325 = vector.shape_cast %319 : vector<8x32xf32> to vector<1x8x32xf32>
    tpu.vector_store %arg8[%c6_75, %c0_76, %c0_77], %325 {strides = array<i32>} : memref<8x8x32xf32, #tpu.memory_space<vmem>>, vector<1x8x32xf32>,
    %c1_78 = arith.constant 1 : index
    %c0_79 = arith.constant 0 : index
    %c0_80 = arith.constant 0 : index
    %326 = vector.load %arg9[%c1_78, %c0_79, %c0_80] : memref<8x8x32xf32, #tpu.memory_space<vmem>>, vector<1x8x32xf32>
    %327 = vector.shape_cast %326 : vector<1x8x32xf32> to vector<8x32xf32>
    %328 = vector.shape_cast %322 : vector<8x32xf32> to vector<1x8x32xf32>
    tpu.vector_store %arg9[%c1_78, %c0_79, %c0_80], %328 {strides = array<i32>} : memref<8x8x32xf32, #tpu.memory_space<vmem>>, vector<1x8x32xf32>,
    %329 = vector.extract_strided_slice %8 {offsets = [56, 0], sizes = [8, 128], strides = [1, 1]} : vector<64x128xf32> to vector<8x128xf32>
    %330 = vector.extract_strided_slice %11 {offsets = [0, 0], sizes = [8, 128], strides = [1, 1]} : vector<64x128xf32> to vector<8x128xf32>
    %331 = tpu.concatenate %319, %322 in 1 : vector<8x32xf32>, vector<8x32xf32> -> vector<8x64xf32>
    %cst_81 = arith.constant dense<0.000000e+00> : vector<8x256xf32>
    %332 = tpu.matmul %331, %12, %cst_81 {dimension_numbers = #tpu.dot_dimension_numbers<[1], [0], [0], [1], [0, 0, 1, 1], [], []>} : vector<8x64xf32>, vector<64x256xf32>, vector<8x256xf32> -> vector<8x256xf32>
    %333 = vector.extract_strided_slice %332 {offsets = [0, 0], sizes = [8, 128], strides = [1, 1]} : vector<8x256xf32> to vector<8x128xf32>
    %334 = arith.addf %329, %333 : vector<8x128xf32>
    %335 = vector.extract_strided_slice %332 {offsets = [0, 128], sizes = [8, 128], strides = [1, 1]} : vector<8x256xf32> to vector<8x128xf32>
    %336 = arith.addf %330, %335 : vector<8x128xf32>
    %337 = arith.negf %334 : vector<8x128xf32>
    %338 = math.exp %337 : vector<8x128xf32>
    %cst_82 = arith.constant 1.000000e+00 : f32
    %339 = vector.broadcast %cst_82 : f32 to vector<8x128xf32>
    %340 = arith.addf %339, %338 : vector<8x128xf32>
    %341 = arith.divf %339, %340 : vector<8x128xf32>
    %342 = math.tanh %334 : vector<8x128xf32>
    %343 = arith.negf %336 : vector<8x128xf32>
    %344 = math.exp %343 : vector<8x128xf32>
    %cst_83 = arith.constant 1.000000e+00 : f32
    %345 = vector.broadcast %cst_83 : f32 to vector<8x128xf32>
    %346 = arith.addf %345, %344 : vector<8x128xf32>
    %347 = arith.divf %345, %346 : vector<8x128xf32>
    %348 = math.tanh %336 : vector<8x128xf32>
    %349 = vector.extract_strided_slice %341 {offsets = [0, 32], sizes = [8, 32], strides = [1, 1]} : vector<8x128xf32> to vector<8x32xf32>
    %350 = arith.mulf %349, %310 : vector<8x32xf32>
    %351 = vector.extract_strided_slice %341 {offsets = [0, 0], sizes = [8, 32], strides = [1, 1]} : vector<8x128xf32> to vector<8x32xf32>
    %352 = vector.extract_strided_slice %342 {offsets = [0, 64], sizes = [8, 32], strides = [1, 1]} : vector<8x128xf32> to vector<8x32xf32>
    %353 = arith.mulf %351, %352 : vector<8x32xf32>
    %354 = arith.addf %350, %353 : vector<8x32xf32>
    %355 = vector.extract_strided_slice %347 {offsets = [0, 32], sizes = [8, 32], strides = [1, 1]} : vector<8x128xf32> to vector<8x32xf32>
    %356 = arith.mulf %355, %316 : vector<8x32xf32>
    %357 = vector.extract_strided_slice %347 {offsets = [0, 0], sizes = [8, 32], strides = [1, 1]} : vector<8x128xf32> to vector<8x32xf32>
    %358 = vector.extract_strided_slice %348 {offsets = [0, 64], sizes = [8, 32], strides = [1, 1]} : vector<8x128xf32> to vector<8x32xf32>
    %359 = arith.mulf %357, %358 : vector<8x32xf32>
    %360 = arith.addf %356, %359 : vector<8x32xf32>
    %361 = vector.extract_strided_slice %341 {offsets = [0, 96], sizes = [8, 32], strides = [1, 1]} : vector<8x128xf32> to vector<8x32xf32>
    %362 = math.tanh %354 : vector<8x32xf32>
    %363 = arith.mulf %361, %362 : vector<8x32xf32>
    %364 = vector.extract_strided_slice %347 {offsets = [0, 96], sizes = [8, 32], strides = [1, 1]} : vector<8x128xf32> to vector<8x32xf32>
    %365 = math.tanh %360 : vector<8x32xf32>
    %366 = arith.mulf %364, %365 : vector<8x32xf32>
    %c7_84 = arith.constant 7 : index
    %c0_85 = arith.constant 0 : index
    %c0_86 = arith.constant 0 : index
    %367 = vector.load %arg8[%c7_84, %c0_85, %c0_86] : memref<8x8x32xf32, #tpu.memory_space<vmem>>, vector<1x8x32xf32>
    %368 = vector.shape_cast %367 : vector<1x8x32xf32> to vector<8x32xf32>
    %369 = vector.shape_cast %363 : vector<8x32xf32> to vector<1x8x32xf32>
    tpu.vector_store %arg8[%c7_84, %c0_85, %c0_86], %369 {strides = array<i32>} : memref<8x8x32xf32, #tpu.memory_space<vmem>>, vector<1x8x32xf32>,
    %c0_87 = arith.constant 0 : index
    %c0_88 = arith.constant 0 : index
    %c0_89 = arith.constant 0 : index
    %370 = vector.load %arg9[%c0_87, %c0_88, %c0_89] : memref<8x8x32xf32, #tpu.memory_space<vmem>>, vector<1x8x32xf32>
    %371 = vector.shape_cast %370 : vector<1x8x32xf32> to vector<8x32xf32>
    %372 = vector.shape_cast %366 : vector<8x32xf32> to vector<1x8x32xf32>
    tpu.vector_store %arg9[%c0_87, %c0_88, %c0_89], %372 {strides = array<i32>} : memref<8x8x32xf32, #tpu.memory_space<vmem>>, vector<1x8x32xf32>,
    %c0_90 = arith.constant 0 : index
    %c0_91 = arith.constant 0 : index
    %c0_92 = arith.constant 0 : index
    %373 = vector.load %arg8[%c0_90, %c0_91, %c0_92] : memref<8x8x32xf32, #tpu.memory_space<vmem>>, vector<8x8x32xf32>
    %374 = vector.shape_cast %373 : vector<8x8x32xf32> to vector<64x32xf32>
    %c0_93 = arith.constant 0 : index
    %c0_94 = arith.constant 0 : index
    %c0_95 = arith.constant 0 : index
    %375 = vector.load %arg9[%c0_93, %c0_94, %c0_95] : memref<8x8x32xf32, #tpu.memory_space<vmem>>, vector<8x8x32xf32>
    %376 = vector.shape_cast %375 : vector<8x8x32xf32> to vector<64x32xf32>
    %c2_96 = arith.constant 2 : index
    %c0_97 = arith.constant 0 : index
    %377 = vector.load %arg4[%c2_96, %c0_97] : memref<4x128xf32, #tpu.memory_space<vmem>>, vector<1x128xf32>
    %c3_98 = arith.constant 3 : index
    %c0_99 = arith.constant 0 : index
    %378 = vector.load %arg4[%c3_98, %c0_99] : memref<4x128xf32, #tpu.memory_space<vmem>>, vector<1x128xf32>
    %c16 = arith.constant 16 : index
    %c0_100 = arith.constant 0 : index
    %379 = vector.load %arg2[%c16, %c0_100] : memref<144x128xf32, #tpu.memory_space<vmem>>, vector<64x128xf32>
    %c80 = arith.constant 80 : index
    %c0_101 = arith.constant 0 : index
    %380 = vector.load %arg2[%c80, %c0_101] : memref<144x128xf32, #tpu.memory_space<vmem>>, vector<64x128xf32>
    %381 = vector.extract_strided_slice %379 {offsets = [0, 0], sizes = [32, 128], strides = [1, 1]} : vector<64x128xf32> to vector<32x128xf32>
    %cst_102 = arith.constant dense<0.000000e+00> : vector<64x128xf32>
    %382 = tpu.matmul %374, %381, %cst_102 {dimension_numbers = #tpu.dot_dimension_numbers<[1], [0], [0], [1], [0, 0, 1, 1], [], []>} : vector<64x32xf32>, vector<32x128xf32>, vector<64x128xf32> -> vector<64x128xf32>
    %383 = vector.extract_strided_slice %379 {offsets = [32, 0], sizes = [32, 128], strides = [1, 1]} : vector<64x128xf32> to vector<32x128xf32>
    %cst_103 = arith.constant dense<0.000000e+00> : vector<64x128xf32>
    %384 = tpu.matmul %376, %383, %cst_103 {dimension_numbers = #tpu.dot_dimension_numbers<[1], [0], [0], [1], [0, 0, 1, 1], [], []>} : vector<64x32xf32>, vector<32x128xf32>, vector<64x128xf32> -> vector<64x128xf32>
    %385 = arith.addf %382, %384 : vector<64x128xf32>
    %386 = vector.broadcast %377 : vector<1x128xf32> to vector<64x128xf32>
    %387 = arith.addf %385, %386 : vector<64x128xf32>
    %388 = vector.extract_strided_slice %380 {offsets = [0, 0], sizes = [32, 128], strides = [1, 1]} : vector<64x128xf32> to vector<32x128xf32>
    %cst_104 = arith.constant dense<0.000000e+00> : vector<64x128xf32>
    %389 = tpu.matmul %374, %388, %cst_104 {dimension_numbers = #tpu.dot_dimension_numbers<[1], [0], [0], [1], [0, 0, 1, 1], [], []>} : vector<64x32xf32>, vector<32x128xf32>, vector<64x128xf32> -> vector<64x128xf32>
    %390 = vector.extract_strided_slice %380 {offsets = [32, 0], sizes = [32, 128], strides = [1, 1]} : vector<64x128xf32> to vector<32x128xf32>
    %cst_105 = arith.constant dense<0.000000e+00> : vector<64x128xf32>
    %391 = tpu.matmul %376, %390, %cst_105 {dimension_numbers = #tpu.dot_dimension_numbers<[1], [0], [0], [1], [0, 0, 1, 1], [], []>} : vector<64x32xf32>, vector<32x128xf32>, vector<64x128xf32> -> vector<64x128xf32>
    %392 = arith.addf %389, %391 : vector<64x128xf32>
    %393 = vector.broadcast %378 : vector<1x128xf32> to vector<64x128xf32>
    %394 = arith.addf %392, %393 : vector<64x128xf32>
    %c64 = arith.constant 64 : index
    %c0_106 = arith.constant 0 : index
    %395 = vector.load %arg3[%c64, %c0_106] : memref<128x256xf32, #tpu.memory_space<vmem>>, vector<64x256xf32>
    %c2_107 = arith.constant 2 : index
    %c0_108 = arith.constant 0 : index
    %c0_109 = arith.constant 0 : index
    %396 = vector.load %arg5[%c2_107, %c0_108, %c0_109] : memref<8x8x32xf32, #tpu.memory_space<vmem>>, vector<1x8x32xf32>
    %397 = vector.shape_cast %396 : vector<1x8x32xf32> to vector<8x32xf32>
    %c3_110 = arith.constant 3 : index
    %c0_111 = arith.constant 0 : index
    %c0_112 = arith.constant 0 : index
    %398 = vector.load %arg5[%c3_110, %c0_111, %c0_112] : memref<8x8x32xf32, #tpu.memory_space<vmem>>, vector<1x8x32xf32>
    %399 = vector.shape_cast %398 : vector<1x8x32xf32> to vector<8x32xf32>
    %c6_113 = arith.constant 6 : index
    %c0_114 = arith.constant 0 : index
    %c0_115 = arith.constant 0 : index
    %400 = vector.load %arg5[%c6_113, %c0_114, %c0_115] : memref<8x8x32xf32, #tpu.memory_space<vmem>>, vector<1x8x32xf32>
    %401 = vector.shape_cast %400 : vector<1x8x32xf32> to vector<8x32xf32>
    %c7_116 = arith.constant 7 : index
    %c0_117 = arith.constant 0 : index
    %c0_118 = arith.constant 0 : index
    %402 = vector.load %arg5[%c7_116, %c0_117, %c0_118] : memref<8x8x32xf32, #tpu.memory_space<vmem>>, vector<1x8x32xf32>
    %403 = vector.shape_cast %402 : vector<1x8x32xf32> to vector<8x32xf32>
    %cst_119 = arith.constant 0.000000e+00 : f32
    %404 = vector.broadcast %cst_119 : f32 to vector<8x32xf32>
    %cst_120 = arith.constant 0.000000e+00 : f32
    %405 = vector.broadcast %cst_120 : f32 to vector<8x32xf32>
    %406 = vector.extract_strided_slice %387 {offsets = [0, 0], sizes = [8, 128], strides = [1, 1]} : vector<64x128xf32> to vector<8x128xf32>
    %407 = vector.extract_strided_slice %394 {offsets = [56, 0], sizes = [8, 128], strides = [1, 1]} : vector<64x128xf32> to vector<8x128xf32>
    %408 = tpu.concatenate %397, %399 in 1 : vector<8x32xf32>, vector<8x32xf32> -> vector<8x64xf32>
    %cst_121 = arith.constant dense<0.000000e+00> : vector<8x256xf32>
    %409 = tpu.matmul %408, %395, %cst_121 {dimension_numbers = #tpu.dot_dimension_numbers<[1], [0], [0], [1], [0, 0, 1, 1], [], []>} : vector<8x64xf32>, vector<64x256xf32>, vector<8x256xf32> -> vector<8x256xf32>
    %410 = vector.extract_strided_slice %409 {offsets = [0, 0], sizes = [8, 128], strides = [1, 1]} : vector<8x256xf32> to vector<8x128xf32>
    %411 = arith.addf %406, %410 : vector<8x128xf32>
    %412 = vector.extract_strided_slice %409 {offsets = [0, 128], sizes = [8, 128], strides = [1, 1]} : vector<8x256xf32> to vector<8x128xf32>
    %413 = arith.addf %407, %412 : vector<8x128xf32>
    %414 = arith.negf %411 : vector<8x128xf32>
    %415 = math.exp %414 : vector<8x128xf32>
    %cst_122 = arith.constant 1.000000e+00 : f32
    %416 = vector.broadcast %cst_122 : f32 to vector<8x128xf32>
    %417 = arith.addf %416, %415 : vector<8x128xf32>
    %418 = arith.divf %416, %417 : vector<8x128xf32>
    %419 = math.tanh %411 : vector<8x128xf32>
    %420 = arith.negf %413 : vector<8x128xf32>
    %421 = math.exp %420 : vector<8x128xf32>
    %cst_123 = arith.constant 1.000000e+00 : f32
    %422 = vector.broadcast %cst_123 : f32 to vector<8x128xf32>
    %423 = arith.addf %422, %421 : vector<8x128xf32>
    %424 = arith.divf %422, %423 : vector<8x128xf32>
    %425 = math.tanh %413 : vector<8x128xf32>
    %426 = vector.extract_strided_slice %418 {offsets = [0, 32], sizes = [8, 32], strides = [1, 1]} : vector<8x128xf32> to vector<8x32xf32>
    %427 = arith.mulf %426, %401 : vector<8x32xf32>
    %428 = vector.extract_strided_slice %418 {offsets = [0, 0], sizes = [8, 32], strides = [1, 1]} : vector<8x128xf32> to vector<8x32xf32>
    %429 = vector.extract_strided_slice %419 {offsets = [0, 64], sizes = [8, 32], strides = [1, 1]} : vector<8x128xf32> to vector<8x32xf32>
    %430 = arith.mulf %428, %429 : vector<8x32xf32>
    %431 = arith.addf %427, %430 : vector<8x32xf32>
    %432 = vector.extract_strided_slice %424 {offsets = [0, 32], sizes = [8, 32], strides = [1, 1]} : vector<8x128xf32> to vector<8x32xf32>
    %433 = arith.mulf %432, %403 : vector<8x32xf32>
    %434 = vector.extract_strided_slice %424 {offsets = [0, 0], sizes = [8, 32], strides = [1, 1]} : vector<8x128xf32> to vector<8x32xf32>
    %435 = vector.extract_strided_slice %425 {offsets = [0, 64], sizes = [8, 32], strides = [1, 1]} : vector<8x128xf32> to vector<8x32xf32>
    %436 = arith.mulf %434, %435 : vector<8x32xf32>
    %437 = arith.addf %433, %436 : vector<8x32xf32>
    %438 = vector.extract_strided_slice %418 {offsets = [0, 96], sizes = [8, 32], strides = [1, 1]} : vector<8x128xf32> to vector<8x32xf32>
    %439 = math.tanh %431 : vector<8x32xf32>
    %440 = arith.mulf %438, %439 : vector<8x32xf32>
    %441 = vector.extract_strided_slice %424 {offsets = [0, 96], sizes = [8, 32], strides = [1, 1]} : vector<8x128xf32> to vector<8x32xf32>
    %442 = math.tanh %437 : vector<8x32xf32>
    %443 = arith.mulf %441, %442 : vector<8x32xf32>
    %c0_i32 = arith.constant 0 : i32
    %444 = vector.broadcast %c0_i32 : i32 to vector<8x1xi32>
    %445 = arith.cmpi eq, %0, %444 : vector<8x1xi32>
    %446 = vector.shape_cast %445 : vector<8x1xi1> to vector<8x1xi1>
    %447 = vector.broadcast %446 : vector<8x1xi1> to vector<8x32xi1>
    %448 = arith.select %447, %440, %404 : vector<8x32xi1>, vector<8x32xf32>
    %c7_i32 = arith.constant 7 : i32
    %449 = vector.broadcast %c7_i32 : i32 to vector<8x1xi32>
    %450 = arith.cmpi eq, %0, %449 : vector<8x1xi32>
    %451 = vector.shape_cast %450 : vector<8x1xi1> to vector<8x1xi1>
    %452 = vector.broadcast %451 : vector<8x1xi1> to vector<8x32xi1>
    %453 = arith.select %452, %443, %405 : vector<8x32xi1>, vector<8x32xf32>
    %454 = vector.extract_strided_slice %387 {offsets = [8, 0], sizes = [8, 128], strides = [1, 1]} : vector<64x128xf32> to vector<8x128xf32>
    %455 = vector.extract_strided_slice %394 {offsets = [48, 0], sizes = [8, 128], strides = [1, 1]} : vector<64x128xf32> to vector<8x128xf32>
    %456 = tpu.concatenate %440, %443 in 1 : vector<8x32xf32>, vector<8x32xf32> -> vector<8x64xf32>
    %cst_124 = arith.constant dense<0.000000e+00> : vector<8x256xf32>
    %457 = tpu.matmul %456, %395, %cst_124 {dimension_numbers = #tpu.dot_dimension_numbers<[1], [0], [0], [1], [0, 0, 1, 1], [], []>} : vector<8x64xf32>, vector<64x256xf32>, vector<8x256xf32> -> vector<8x256xf32>
    %458 = vector.extract_strided_slice %457 {offsets = [0, 0], sizes = [8, 128], strides = [1, 1]} : vector<8x256xf32> to vector<8x128xf32>
    %459 = arith.addf %454, %458 : vector<8x128xf32>
    %460 = vector.extract_strided_slice %457 {offsets = [0, 128], sizes = [8, 128], strides = [1, 1]} : vector<8x256xf32> to vector<8x128xf32>
    %461 = arith.addf %455, %460 : vector<8x128xf32>
    %462 = arith.negf %459 : vector<8x128xf32>
    %463 = math.exp %462 : vector<8x128xf32>
    %cst_125 = arith.constant 1.000000e+00 : f32
    %464 = vector.broadcast %cst_125 : f32 to vector<8x128xf32>
    %465 = arith.addf %464, %463 : vector<8x128xf32>
    %466 = arith.divf %464, %465 : vector<8x128xf32>
    %467 = math.tanh %459 : vector<8x128xf32>
    %468 = arith.negf %461 : vector<8x128xf32>
    %469 = math.exp %468 : vector<8x128xf32>
    %cst_126 = arith.constant 1.000000e+00 : f32
    %470 = vector.broadcast %cst_126 : f32 to vector<8x128xf32>
    %471 = arith.addf %470, %469 : vector<8x128xf32>
    %472 = arith.divf %470, %471 : vector<8x128xf32>
    %473 = math.tanh %461 : vector<8x128xf32>
    %474 = vector.extract_strided_slice %466 {offsets = [0, 32], sizes = [8, 32], strides = [1, 1]} : vector<8x128xf32> to vector<8x32xf32>
    %475 = arith.mulf %474, %431 : vector<8x32xf32>
    %476 = vector.extract_strided_slice %466 {offsets = [0, 0], sizes = [8, 32], strides = [1, 1]} : vector<8x128xf32> to vector<8x32xf32>
    %477 = vector.extract_strided_slice %467 {offsets = [0, 64], sizes = [8, 32], strides = [1, 1]} : vector<8x128xf32> to vector<8x32xf32>
    %478 = arith.mulf %476, %477 : vector<8x32xf32>
    %479 = arith.addf %475, %478 : vector<8x32xf32>
    %480 = vector.extract_strided_slice %472 {offsets = [0, 32], sizes = [8, 32], strides = [1, 1]} : vector<8x128xf32> to vector<8x32xf32>
    %481 = arith.mulf %480, %437 : vector<8x32xf32>
    %482 = vector.extract_strided_slice %472 {offsets = [0, 0], sizes = [8, 32], strides = [1, 1]} : vector<8x128xf32> to vector<8x32xf32>
    %483 = vector.extract_strided_slice %473 {offsets = [0, 64], sizes = [8, 32], strides = [1, 1]} : vector<8x128xf32> to vector<8x32xf32>
    %484 = arith.mulf %482, %483 : vector<8x32xf32>
    %485 = arith.addf %481, %484 : vector<8x32xf32>
    %486 = vector.extract_strided_slice %466 {offsets = [0, 96], sizes = [8, 32], strides = [1, 1]} : vector<8x128xf32> to vector<8x32xf32>
    %487 = math.tanh %479 : vector<8x32xf32>
    %488 = arith.mulf %486, %487 : vector<8x32xf32>
    %489 = vector.extract_strided_slice %472 {offsets = [0, 96], sizes = [8, 32], strides = [1, 1]} : vector<8x128xf32> to vector<8x32xf32>
    %490 = math.tanh %485 : vector<8x32xf32>
    %491 = arith.mulf %489, %490 : vector<8x32xf32>
    %c1_i32 = arith.constant 1 : i32
    %492 = vector.broadcast %c1_i32 : i32 to vector<8x1xi32>
    %493 = arith.cmpi eq, %0, %492 : vector<8x1xi32>
    %494 = vector.shape_cast %493 : vector<8x1xi1> to vector<8x1xi1>
    %495 = vector.broadcast %494 : vector<8x1xi1> to vector<8x32xi1>
    %496 = arith.select %495, %488, %448 : vector<8x32xi1>, vector<8x32xf32>
    %c6_i32 = arith.constant 6 : i32
    %497 = vector.broadcast %c6_i32 : i32 to vector<8x1xi32>
    %498 = arith.cmpi eq, %0, %497 : vector<8x1xi32>
    %499 = vector.shape_cast %498 : vector<8x1xi1> to vector<8x1xi1>
    %500 = vector.broadcast %499 : vector<8x1xi1> to vector<8x32xi1>
    %501 = arith.select %500, %491, %453 : vector<8x32xi1>, vector<8x32xf32>
    %502 = vector.extract_strided_slice %387 {offsets = [16, 0], sizes = [8, 128], strides = [1, 1]} : vector<64x128xf32> to vector<8x128xf32>
    %503 = vector.extract_strided_slice %394 {offsets = [40, 0], sizes = [8, 128], strides = [1, 1]} : vector<64x128xf32> to vector<8x128xf32>
    %504 = tpu.concatenate %488, %491 in 1 : vector<8x32xf32>, vector<8x32xf32> -> vector<8x64xf32>
    %cst_127 = arith.constant dense<0.000000e+00> : vector<8x256xf32>
    %505 = tpu.matmul %504, %395, %cst_127 {dimension_numbers = #tpu.dot_dimension_numbers<[1], [0], [0], [1], [0, 0, 1, 1], [], []>} : vector<8x64xf32>, vector<64x256xf32>, vector<8x256xf32> -> vector<8x256xf32>
    %506 = vector.extract_strided_slice %505 {offsets = [0, 0], sizes = [8, 128], strides = [1, 1]} : vector<8x256xf32> to vector<8x128xf32>
    %507 = arith.addf %502, %506 : vector<8x128xf32>
    %508 = vector.extract_strided_slice %505 {offsets = [0, 128], sizes = [8, 128], strides = [1, 1]} : vector<8x256xf32> to vector<8x128xf32>
    %509 = arith.addf %503, %508 : vector<8x128xf32>
    %510 = arith.negf %507 : vector<8x128xf32>
    %511 = math.exp %510 : vector<8x128xf32>
    %cst_128 = arith.constant 1.000000e+00 : f32
    %512 = vector.broadcast %cst_128 : f32 to vector<8x128xf32>
    %513 = arith.addf %512, %511 : vector<8x128xf32>
    %514 = arith.divf %512, %513 : vector<8x128xf32>
    %515 = math.tanh %507 : vector<8x128xf32>
    %516 = arith.negf %509 : vector<8x128xf32>
    %517 = math.exp %516 : vector<8x128xf32>
    %cst_129 = arith.constant 1.000000e+00 : f32
    %518 = vector.broadcast %cst_129 : f32 to vector<8x128xf32>
    %519 = arith.addf %518, %517 : vector<8x128xf32>
    %520 = arith.divf %518, %519 : vector<8x128xf32>
    %521 = math.tanh %509 : vector<8x128xf32>
    %522 = vector.extract_strided_slice %514 {offsets = [0, 32], sizes = [8, 32], strides = [1, 1]} : vector<8x128xf32> to vector<8x32xf32>
    %523 = arith.mulf %522, %479 : vector<8x32xf32>
    %524 = vector.extract_strided_slice %514 {offsets = [0, 0], sizes = [8, 32], strides = [1, 1]} : vector<8x128xf32> to vector<8x32xf32>
    %525 = vector.extract_strided_slice %515 {offsets = [0, 64], sizes = [8, 32], strides = [1, 1]} : vector<8x128xf32> to vector<8x32xf32>
    %526 = arith.mulf %524, %525 : vector<8x32xf32>
    %527 = arith.addf %523, %526 : vector<8x32xf32>
    %528 = vector.extract_strided_slice %520 {offsets = [0, 32], sizes = [8, 32], strides = [1, 1]} : vector<8x128xf32> to vector<8x32xf32>
    %529 = arith.mulf %528, %485 : vector<8x32xf32>
    %530 = vector.extract_strided_slice %520 {offsets = [0, 0], sizes = [8, 32], strides = [1, 1]} : vector<8x128xf32> to vector<8x32xf32>
    %531 = vector.extract_strided_slice %521 {offsets = [0, 64], sizes = [8, 32], strides = [1, 1]} : vector<8x128xf32> to vector<8x32xf32>
    %532 = arith.mulf %530, %531 : vector<8x32xf32>
    %533 = arith.addf %529, %532 : vector<8x32xf32>
    %534 = vector.extract_strided_slice %514 {offsets = [0, 96], sizes = [8, 32], strides = [1, 1]} : vector<8x128xf32> to vector<8x32xf32>
    %535 = math.tanh %527 : vector<8x32xf32>
    %536 = arith.mulf %534, %535 : vector<8x32xf32>
    %537 = vector.extract_strided_slice %520 {offsets = [0, 96], sizes = [8, 32], strides = [1, 1]} : vector<8x128xf32> to vector<8x32xf32>
    %538 = math.tanh %533 : vector<8x32xf32>
    %539 = arith.mulf %537, %538 : vector<8x32xf32>
    %c2_i32 = arith.constant 2 : i32
    %540 = vector.broadcast %c2_i32 : i32 to vector<8x1xi32>
    %541 = arith.cmpi eq, %0, %540 : vector<8x1xi32>
    %542 = vector.shape_cast %541 : vector<8x1xi1> to vector<8x1xi1>
    %543 = vector.broadcast %542 : vector<8x1xi1> to vector<8x32xi1>
    %544 = arith.select %543, %536, %496 : vector<8x32xi1>, vector<8x32xf32>
    %c5_i32 = arith.constant 5 : i32
    %545 = vector.broadcast %c5_i32 : i32 to vector<8x1xi32>
    %546 = arith.cmpi eq, %0, %545 : vector<8x1xi32>
    %547 = vector.shape_cast %546 : vector<8x1xi1> to vector<8x1xi1>
    %548 = vector.broadcast %547 : vector<8x1xi1> to vector<8x32xi1>
    %549 = arith.select %548, %539, %501 : vector<8x32xi1>, vector<8x32xf32>
    %550 = vector.extract_strided_slice %387 {offsets = [24, 0], sizes = [8, 128], strides = [1, 1]} : vector<64x128xf32> to vector<8x128xf32>
    %551 = vector.extract_strided_slice %394 {offsets = [32, 0], sizes = [8, 128], strides = [1, 1]} : vector<64x128xf32> to vector<8x128xf32>
    %552 = tpu.concatenate %536, %539 in 1 : vector<8x32xf32>, vector<8x32xf32> -> vector<8x64xf32>
    %cst_130 = arith.constant dense<0.000000e+00> : vector<8x256xf32>
    %553 = tpu.matmul %552, %395, %cst_130 {dimension_numbers = #tpu.dot_dimension_numbers<[1], [0], [0], [1], [0, 0, 1, 1], [], []>} : vector<8x64xf32>, vector<64x256xf32>, vector<8x256xf32> -> vector<8x256xf32>
    %554 = vector.extract_strided_slice %553 {offsets = [0, 0], sizes = [8, 128], strides = [1, 1]} : vector<8x256xf32> to vector<8x128xf32>
    %555 = arith.addf %550, %554 : vector<8x128xf32>
    %556 = vector.extract_strided_slice %553 {offsets = [0, 128], sizes = [8, 128], strides = [1, 1]} : vector<8x256xf32> to vector<8x128xf32>
    %557 = arith.addf %551, %556 : vector<8x128xf32>
    %558 = arith.negf %555 : vector<8x128xf32>
    %559 = math.exp %558 : vector<8x128xf32>
    %cst_131 = arith.constant 1.000000e+00 : f32
    %560 = vector.broadcast %cst_131 : f32 to vector<8x128xf32>
    %561 = arith.addf %560, %559 : vector<8x128xf32>
    %562 = arith.divf %560, %561 : vector<8x128xf32>
    %563 = math.tanh %555 : vector<8x128xf32>
    %564 = arith.negf %557 : vector<8x128xf32>
    %565 = math.exp %564 : vector<8x128xf32>
    %cst_132 = arith.constant 1.000000e+00 : f32
    %566 = vector.broadcast %cst_132 : f32 to vector<8x128xf32>
    %567 = arith.addf %566, %565 : vector<8x128xf32>
    %568 = arith.divf %566, %567 : vector<8x128xf32>
    %569 = math.tanh %557 : vector<8x128xf32>
    %570 = vector.extract_strided_slice %562 {offsets = [0, 32], sizes = [8, 32], strides = [1, 1]} : vector<8x128xf32> to vector<8x32xf32>
    %571 = arith.mulf %570, %527 : vector<8x32xf32>
    %572 = vector.extract_strided_slice %562 {offsets = [0, 0], sizes = [8, 32], strides = [1, 1]} : vector<8x128xf32> to vector<8x32xf32>
    %573 = vector.extract_strided_slice %563 {offsets = [0, 64], sizes = [8, 32], strides = [1, 1]} : vector<8x128xf32> to vector<8x32xf32>
    %574 = arith.mulf %572, %573 : vector<8x32xf32>
    %575 = arith.addf %571, %574 : vector<8x32xf32>
    %576 = vector.extract_strided_slice %568 {offsets = [0, 32], sizes = [8, 32], strides = [1, 1]} : vector<8x128xf32> to vector<8x32xf32>
    %577 = arith.mulf %576, %533 : vector<8x32xf32>
    %578 = vector.extract_strided_slice %568 {offsets = [0, 0], sizes = [8, 32], strides = [1, 1]} : vector<8x128xf32> to vector<8x32xf32>
    %579 = vector.extract_strided_slice %569 {offsets = [0, 64], sizes = [8, 32], strides = [1, 1]} : vector<8x128xf32> to vector<8x32xf32>
    %580 = arith.mulf %578, %579 : vector<8x32xf32>
    %581 = arith.addf %577, %580 : vector<8x32xf32>
    %582 = vector.extract_strided_slice %562 {offsets = [0, 96], sizes = [8, 32], strides = [1, 1]} : vector<8x128xf32> to vector<8x32xf32>
    %583 = math.tanh %575 : vector<8x32xf32>
    %584 = arith.mulf %582, %583 : vector<8x32xf32>
    %585 = vector.extract_strided_slice %568 {offsets = [0, 96], sizes = [8, 32], strides = [1, 1]} : vector<8x128xf32> to vector<8x32xf32>
    %586 = math.tanh %581 : vector<8x32xf32>
    %587 = arith.mulf %585, %586 : vector<8x32xf32>
    %c3_i32 = arith.constant 3 : i32
    %588 = vector.broadcast %c3_i32 : i32 to vector<8x1xi32>
    %589 = arith.cmpi eq, %0, %588 : vector<8x1xi32>
    %590 = vector.shape_cast %589 : vector<8x1xi1> to vector<8x1xi1>
    %591 = vector.broadcast %590 : vector<8x1xi1> to vector<8x32xi1>
    %592 = arith.select %591, %584, %544 : vector<8x32xi1>, vector<8x32xf32>
    %c4_i32 = arith.constant 4 : i32
    %593 = vector.broadcast %c4_i32 : i32 to vector<8x1xi32>
    %594 = arith.cmpi eq, %0, %593 : vector<8x1xi32>
    %595 = vector.shape_cast %594 : vector<8x1xi1> to vector<8x1xi1>
    %596 = vector.broadcast %595 : vector<8x1xi1> to vector<8x32xi1>
    %597 = arith.select %596, %587, %549 : vector<8x32xi1>, vector<8x32xf32>
    %598 = vector.extract_strided_slice %387 {offsets = [32, 0], sizes = [8, 128], strides = [1, 1]} : vector<64x128xf32> to vector<8x128xf32>
    %599 = vector.extract_strided_slice %394 {offsets = [24, 0], sizes = [8, 128], strides = [1, 1]} : vector<64x128xf32> to vector<8x128xf32>
    %600 = tpu.concatenate %584, %587 in 1 : vector<8x32xf32>, vector<8x32xf32> -> vector<8x64xf32>
    %cst_133 = arith.constant dense<0.000000e+00> : vector<8x256xf32>
    %601 = tpu.matmul %600, %395, %cst_133 {dimension_numbers = #tpu.dot_dimension_numbers<[1], [0], [0], [1], [0, 0, 1, 1], [], []>} : vector<8x64xf32>, vector<64x256xf32>, vector<8x256xf32> -> vector<8x256xf32>
    %602 = vector.extract_strided_slice %601 {offsets = [0, 0], sizes = [8, 128], strides = [1, 1]} : vector<8x256xf32> to vector<8x128xf32>
    %603 = arith.addf %598, %602 : vector<8x128xf32>
    %604 = vector.extract_strided_slice %601 {offsets = [0, 128], sizes = [8, 128], strides = [1, 1]} : vector<8x256xf32> to vector<8x128xf32>
    %605 = arith.addf %599, %604 : vector<8x128xf32>
    %606 = arith.negf %603 : vector<8x128xf32>
    %607 = math.exp %606 : vector<8x128xf32>
    %cst_134 = arith.constant 1.000000e+00 : f32
    %608 = vector.broadcast %cst_134 : f32 to vector<8x128xf32>
    %609 = arith.addf %608, %607 : vector<8x128xf32>
    %610 = arith.divf %608, %609 : vector<8x128xf32>
    %611 = math.tanh %603 : vector<8x128xf32>
    %612 = arith.negf %605 : vector<8x128xf32>
    %613 = math.exp %612 : vector<8x128xf32>
    %cst_135 = arith.constant 1.000000e+00 : f32
    %614 = vector.broadcast %cst_135 : f32 to vector<8x128xf32>
    %615 = arith.addf %614, %613 : vector<8x128xf32>
    %616 = arith.divf %614, %615 : vector<8x128xf32>
    %617 = math.tanh %605 : vector<8x128xf32>
    %618 = vector.extract_strided_slice %610 {offsets = [0, 32], sizes = [8, 32], strides = [1, 1]} : vector<8x128xf32> to vector<8x32xf32>
    %619 = arith.mulf %618, %575 : vector<8x32xf32>
    %620 = vector.extract_strided_slice %610 {offsets = [0, 0], sizes = [8, 32], strides = [1, 1]} : vector<8x128xf32> to vector<8x32xf32>
    %621 = vector.extract_strided_slice %611 {offsets = [0, 64], sizes = [8, 32], strides = [1, 1]} : vector<8x128xf32> to vector<8x32xf32>
    %622 = arith.mulf %620, %621 : vector<8x32xf32>
    %623 = arith.addf %619, %622 : vector<8x32xf32>
    %624 = vector.extract_strided_slice %616 {offsets = [0, 32], sizes = [8, 32], strides = [1, 1]} : vector<8x128xf32> to vector<8x32xf32>
    %625 = arith.mulf %624, %581 : vector<8x32xf32>
    %626 = vector.extract_strided_slice %616 {offsets = [0, 0], sizes = [8, 32], strides = [1, 1]} : vector<8x128xf32> to vector<8x32xf32>
    %627 = vector.extract_strided_slice %617 {offsets = [0, 64], sizes = [8, 32], strides = [1, 1]} : vector<8x128xf32> to vector<8x32xf32>
    %628 = arith.mulf %626, %627 : vector<8x32xf32>
    %629 = arith.addf %625, %628 : vector<8x32xf32>
    %630 = vector.extract_strided_slice %610 {offsets = [0, 96], sizes = [8, 32], strides = [1, 1]} : vector<8x128xf32> to vector<8x32xf32>
    %631 = math.tanh %623 : vector<8x32xf32>
    %632 = arith.mulf %630, %631 : vector<8x32xf32>
    %633 = vector.extract_strided_slice %616 {offsets = [0, 96], sizes = [8, 32], strides = [1, 1]} : vector<8x128xf32> to vector<8x32xf32>
    %634 = math.tanh %629 : vector<8x32xf32>
    %635 = arith.mulf %633, %634 : vector<8x32xf32>
    %c4_i32_136 = arith.constant 4 : i32
    %636 = vector.broadcast %c4_i32_136 : i32 to vector<8x1xi32>
    %637 = arith.cmpi eq, %0, %636 : vector<8x1xi32>
    %638 = vector.shape_cast %637 : vector<8x1xi1> to vector<8x1xi1>
    %639 = vector.broadcast %638 : vector<8x1xi1> to vector<8x32xi1>
    %640 = arith.select %639, %632, %592 : vector<8x32xi1>, vector<8x32xf32>
    %c3_i32_137 = arith.constant 3 : i32
    %641 = vector.broadcast %c3_i32_137 : i32 to vector<8x1xi32>
    %642 = arith.cmpi eq, %0, %641 : vector<8x1xi32>
    %643 = vector.shape_cast %642 : vector<8x1xi1> to vector<8x1xi1>
    %644 = vector.broadcast %643 : vector<8x1xi1> to vector<8x32xi1>
    %645 = arith.select %644, %635, %597 : vector<8x32xi1>, vector<8x32xf32>
    %646 = vector.extract_strided_slice %387 {offsets = [40, 0], sizes = [8, 128], strides = [1, 1]} : vector<64x128xf32> to vector<8x128xf32>
    %647 = vector.extract_strided_slice %394 {offsets = [16, 0], sizes = [8, 128], strides = [1, 1]} : vector<64x128xf32> to vector<8x128xf32>
    %648 = tpu.concatenate %632, %635 in 1 : vector<8x32xf32>, vector<8x32xf32> -> vector<8x64xf32>
    %cst_138 = arith.constant dense<0.000000e+00> : vector<8x256xf32>
    %649 = tpu.matmul %648, %395, %cst_138 {dimension_numbers = #tpu.dot_dimension_numbers<[1], [0], [0], [1], [0, 0, 1, 1], [], []>} : vector<8x64xf32>, vector<64x256xf32>, vector<8x256xf32> -> vector<8x256xf32>
    %650 = vector.extract_strided_slice %649 {offsets = [0, 0], sizes = [8, 128], strides = [1, 1]} : vector<8x256xf32> to vector<8x128xf32>
    %651 = arith.addf %646, %650 : vector<8x128xf32>
    %652 = vector.extract_strided_slice %649 {offsets = [0, 128], sizes = [8, 128], strides = [1, 1]} : vector<8x256xf32> to vector<8x128xf32>
    %653 = arith.addf %647, %652 : vector<8x128xf32>
    %654 = arith.negf %651 : vector<8x128xf32>
    %655 = math.exp %654 : vector<8x128xf32>
    %cst_139 = arith.constant 1.000000e+00 : f32
    %656 = vector.broadcast %cst_139 : f32 to vector<8x128xf32>
    %657 = arith.addf %656, %655 : vector<8x128xf32>
    %658 = arith.divf %656, %657 : vector<8x128xf32>
    %659 = math.tanh %651 : vector<8x128xf32>
    %660 = arith.negf %653 : vector<8x128xf32>
    %661 = math.exp %660 : vector<8x128xf32>
    %cst_140 = arith.constant 1.000000e+00 : f32
    %662 = vector.broadcast %cst_140 : f32 to vector<8x128xf32>
    %663 = arith.addf %662, %661 : vector<8x128xf32>
    %664 = arith.divf %662, %663 : vector<8x128xf32>
    %665 = math.tanh %653 : vector<8x128xf32>
    %666 = vector.extract_strided_slice %658 {offsets = [0, 32], sizes = [8, 32], strides = [1, 1]} : vector<8x128xf32> to vector<8x32xf32>
    %667 = arith.mulf %666, %623 : vector<8x32xf32>
    %668 = vector.extract_strided_slice %658 {offsets = [0, 0], sizes = [8, 32], strides = [1, 1]} : vector<8x128xf32> to vector<8x32xf32>
    %669 = vector.extract_strided_slice %659 {offsets = [0, 64], sizes = [8, 32], strides = [1, 1]} : vector<8x128xf32> to vector<8x32xf32>
    %670 = arith.mulf %668, %669 : vector<8x32xf32>
    %671 = arith.addf %667, %670 : vector<8x32xf32>
    %672 = vector.extract_strided_slice %664 {offsets = [0, 32], sizes = [8, 32], strides = [1, 1]} : vector<8x128xf32> to vector<8x32xf32>
    %673 = arith.mulf %672, %629 : vector<8x32xf32>
    %674 = vector.extract_strided_slice %664 {offsets = [0, 0], sizes = [8, 32], strides = [1, 1]} : vector<8x128xf32> to vector<8x32xf32>
    %675 = vector.extract_strided_slice %665 {offsets = [0, 64], sizes = [8, 32], strides = [1, 1]} : vector<8x128xf32> to vector<8x32xf32>
    %676 = arith.mulf %674, %675 : vector<8x32xf32>
    %677 = arith.addf %673, %676 : vector<8x32xf32>
    %678 = vector.extract_strided_slice %658 {offsets = [0, 96], sizes = [8, 32], strides = [1, 1]} : vector<8x128xf32> to vector<8x32xf32>
    %679 = math.tanh %671 : vector<8x32xf32>
    %680 = arith.mulf %678, %679 : vector<8x32xf32>
    %681 = vector.extract_strided_slice %664 {offsets = [0, 96], sizes = [8, 32], strides = [1, 1]} : vector<8x128xf32> to vector<8x32xf32>
    %682 = math.tanh %677 : vector<8x32xf32>
    %683 = arith.mulf %681, %682 : vector<8x32xf32>
    %c5_i32_141 = arith.constant 5 : i32
    %684 = vector.broadcast %c5_i32_141 : i32 to vector<8x1xi32>
    %685 = arith.cmpi eq, %0, %684 : vector<8x1xi32>
    %686 = vector.shape_cast %685 : vector<8x1xi1> to vector<8x1xi1>
    %687 = vector.broadcast %686 : vector<8x1xi1> to vector<8x32xi1>
    %688 = arith.select %687, %680, %640 : vector<8x32xi1>, vector<8x32xf32>
    %c2_i32_142 = arith.constant 2 : i32
    %689 = vector.broadcast %c2_i32_142 : i32 to vector<8x1xi32>
    %690 = arith.cmpi eq, %0, %689 : vector<8x1xi32>
    %691 = vector.shape_cast %690 : vector<8x1xi1> to vector<8x1xi1>
    %692 = vector.broadcast %691 : vector<8x1xi1> to vector<8x32xi1>
    %693 = arith.select %692, %683, %645 : vector<8x32xi1>, vector<8x32xf32>
    %694 = vector.extract_strided_slice %387 {offsets = [48, 0], sizes = [8, 128], strides = [1, 1]} : vector<64x128xf32> to vector<8x128xf32>
    %695 = vector.extract_strided_slice %394 {offsets = [8, 0], sizes = [8, 128], strides = [1, 1]} : vector<64x128xf32> to vector<8x128xf32>
    %696 = tpu.concatenate %680, %683 in 1 : vector<8x32xf32>, vector<8x32xf32> -> vector<8x64xf32>
    %cst_143 = arith.constant dense<0.000000e+00> : vector<8x256xf32>
    %697 = tpu.matmul %696, %395, %cst_143 {dimension_numbers = #tpu.dot_dimension_numbers<[1], [0], [0], [1], [0, 0, 1, 1], [], []>} : vector<8x64xf32>, vector<64x256xf32>, vector<8x256xf32> -> vector<8x256xf32>
    %698 = vector.extract_strided_slice %697 {offsets = [0, 0], sizes = [8, 128], strides = [1, 1]} : vector<8x256xf32> to vector<8x128xf32>
    %699 = arith.addf %694, %698 : vector<8x128xf32>
    %700 = vector.extract_strided_slice %697 {offsets = [0, 128], sizes = [8, 128], strides = [1, 1]} : vector<8x256xf32> to vector<8x128xf32>
    %701 = arith.addf %695, %700 : vector<8x128xf32>
    %702 = arith.negf %699 : vector<8x128xf32>
    %703 = math.exp %702 : vector<8x128xf32>
    %cst_144 = arith.constant 1.000000e+00 : f32
    %704 = vector.broadcast %cst_144 : f32 to vector<8x128xf32>
    %705 = arith.addf %704, %703 : vector<8x128xf32>
    %706 = arith.divf %704, %705 : vector<8x128xf32>
    %707 = math.tanh %699 : vector<8x128xf32>
    %708 = arith.negf %701 : vector<8x128xf32>
    %709 = math.exp %708 : vector<8x128xf32>
    %cst_145 = arith.constant 1.000000e+00 : f32
    %710 = vector.broadcast %cst_145 : f32 to vector<8x128xf32>
    %711 = arith.addf %710, %709 : vector<8x128xf32>
    %712 = arith.divf %710, %711 : vector<8x128xf32>
    %713 = math.tanh %701 : vector<8x128xf32>
    %714 = vector.extract_strided_slice %706 {offsets = [0, 32], sizes = [8, 32], strides = [1, 1]} : vector<8x128xf32> to vector<8x32xf32>
    %715 = arith.mulf %714, %671 : vector<8x32xf32>
    %716 = vector.extract_strided_slice %706 {offsets = [0, 0], sizes = [8, 32], strides = [1, 1]} : vector<8x128xf32> to vector<8x32xf32>
    %717 = vector.extract_strided_slice %707 {offsets = [0, 64], sizes = [8, 32], strides = [1, 1]} : vector<8x128xf32> to vector<8x32xf32>
    %718 = arith.mulf %716, %717 : vector<8x32xf32>
    %719 = arith.addf %715, %718 : vector<8x32xf32>
    %720 = vector.extract_strided_slice %712 {offsets = [0, 32], sizes = [8, 32], strides = [1, 1]} : vector<8x128xf32> to vector<8x32xf32>
    %721 = arith.mulf %720, %677 : vector<8x32xf32>
    %722 = vector.extract_strided_slice %712 {offsets = [0, 0], sizes = [8, 32], strides = [1, 1]} : vector<8x128xf32> to vector<8x32xf32>
    %723 = vector.extract_strided_slice %713 {offsets = [0, 64], sizes = [8, 32], strides = [1, 1]} : vector<8x128xf32> to vector<8x32xf32>
    %724 = arith.mulf %722, %723 : vector<8x32xf32>
    %725 = arith.addf %721, %724 : vector<8x32xf32>
    %726 = vector.extract_strided_slice %706 {offsets = [0, 96], sizes = [8, 32], strides = [1, 1]} : vector<8x128xf32> to vector<8x32xf32>
    %727 = math.tanh %719 : vector<8x32xf32>
    %728 = arith.mulf %726, %727 : vector<8x32xf32>
    %729 = vector.extract_strided_slice %712 {offsets = [0, 96], sizes = [8, 32], strides = [1, 1]} : vector<8x128xf32> to vector<8x32xf32>
    %730 = math.tanh %725 : vector<8x32xf32>
    %731 = arith.mulf %729, %730 : vector<8x32xf32>
    %c6_i32_146 = arith.constant 6 : i32
    %732 = vector.broadcast %c6_i32_146 : i32 to vector<8x1xi32>
    %733 = arith.cmpi eq, %0, %732 : vector<8x1xi32>
    %734 = vector.shape_cast %733 : vector<8x1xi1> to vector<8x1xi1>
    %735 = vector.broadcast %734 : vector<8x1xi1> to vector<8x32xi1>
    %736 = arith.select %735, %728, %688 : vector<8x32xi1>, vector<8x32xf32>
    %c1_i32_147 = arith.constant 1 : i32
    %737 = vector.broadcast %c1_i32_147 : i32 to vector<8x1xi32>
    %738 = arith.cmpi eq, %0, %737 : vector<8x1xi32>
    %739 = vector.shape_cast %738 : vector<8x1xi1> to vector<8x1xi1>
    %740 = vector.broadcast %739 : vector<8x1xi1> to vector<8x32xi1>
    %741 = arith.select %740, %731, %693 : vector<8x32xi1>, vector<8x32xf32>
    %742 = vector.extract_strided_slice %387 {offsets = [56, 0], sizes = [8, 128], strides = [1, 1]} : vector<64x128xf32> to vector<8x128xf32>
    %743 = vector.extract_strided_slice %394 {offsets = [0, 0], sizes = [8, 128], strides = [1, 1]} : vector<64x128xf32> to vector<8x128xf32>
    %744 = tpu.concatenate %728, %731 in 1 : vector<8x32xf32>, vector<8x32xf32> -> vector<8x64xf32>
    %cst_148 = arith.constant dense<0.000000e+00> : vector<8x256xf32>
    %745 = tpu.matmul %744, %395, %cst_148 {dimension_numbers = #tpu.dot_dimension_numbers<[1], [0], [0], [1], [0, 0, 1, 1], [], []>} : vector<8x64xf32>, vector<64x256xf32>, vector<8x256xf32> -> vector<8x256xf32>
    %746 = vector.extract_strided_slice %745 {offsets = [0, 0], sizes = [8, 128], strides = [1, 1]} : vector<8x256xf32> to vector<8x128xf32>
    %747 = arith.addf %742, %746 : vector<8x128xf32>
    %748 = vector.extract_strided_slice %745 {offsets = [0, 128], sizes = [8, 128], strides = [1, 1]} : vector<8x256xf32> to vector<8x128xf32>
    %749 = arith.addf %743, %748 : vector<8x128xf32>
    %750 = arith.negf %747 : vector<8x128xf32>
    %751 = math.exp %750 : vector<8x128xf32>
    %cst_149 = arith.constant 1.000000e+00 : f32
    %752 = vector.broadcast %cst_149 : f32 to vector<8x128xf32>
    %753 = arith.addf %752, %751 : vector<8x128xf32>
    %754 = arith.divf %752, %753 : vector<8x128xf32>
    %755 = math.tanh %747 : vector<8x128xf32>
    %756 = arith.negf %749 : vector<8x128xf32>
    %757 = math.exp %756 : vector<8x128xf32>
    %cst_150 = arith.constant 1.000000e+00 : f32
    %758 = vector.broadcast %cst_150 : f32 to vector<8x128xf32>
    %759 = arith.addf %758, %757 : vector<8x128xf32>
    %760 = arith.divf %758, %759 : vector<8x128xf32>
    %761 = math.tanh %749 : vector<8x128xf32>
    %762 = vector.extract_strided_slice %754 {offsets = [0, 32], sizes = [8, 32], strides = [1, 1]} : vector<8x128xf32> to vector<8x32xf32>
    %763 = arith.mulf %762, %719 : vector<8x32xf32>
    %764 = vector.extract_strided_slice %754 {offsets = [0, 0], sizes = [8, 32], strides = [1, 1]} : vector<8x128xf32> to vector<8x32xf32>
    %765 = vector.extract_strided_slice %755 {offsets = [0, 64], sizes = [8, 32], strides = [1, 1]} : vector<8x128xf32> to vector<8x32xf32>
    %766 = arith.mulf %764, %765 : vector<8x32xf32>
    %767 = arith.addf %763, %766 : vector<8x32xf32>
    %768 = vector.extract_strided_slice %760 {offsets = [0, 32], sizes = [8, 32], strides = [1, 1]} : vector<8x128xf32> to vector<8x32xf32>
    %769 = arith.mulf %768, %725 : vector<8x32xf32>
    %770 = vector.extract_strided_slice %760 {offsets = [0, 0], sizes = [8, 32], strides = [1, 1]} : vector<8x128xf32> to vector<8x32xf32>
    %771 = vector.extract_strided_slice %761 {offsets = [0, 64], sizes = [8, 32], strides = [1, 1]} : vector<8x128xf32> to vector<8x32xf32>
    %772 = arith.mulf %770, %771 : vector<8x32xf32>
    %773 = arith.addf %769, %772 : vector<8x32xf32>
    %774 = vector.extract_strided_slice %754 {offsets = [0, 96], sizes = [8, 32], strides = [1, 1]} : vector<8x128xf32> to vector<8x32xf32>
    %775 = math.tanh %767 : vector<8x32xf32>
    %776 = arith.mulf %774, %775 : vector<8x32xf32>
    %777 = vector.extract_strided_slice %760 {offsets = [0, 96], sizes = [8, 32], strides = [1, 1]} : vector<8x128xf32> to vector<8x32xf32>
    %778 = math.tanh %773 : vector<8x32xf32>
    %779 = arith.mulf %777, %778 : vector<8x32xf32>
    %c7_i32_151 = arith.constant 7 : i32
    %780 = vector.broadcast %c7_i32_151 : i32 to vector<8x1xi32>
    %781 = arith.cmpi eq, %0, %780 : vector<8x1xi32>
    %782 = vector.shape_cast %781 : vector<8x1xi1> to vector<8x1xi1>
    %783 = vector.broadcast %782 : vector<8x1xi1> to vector<8x32xi1>
    %784 = arith.select %783, %776, %736 : vector<8x32xi1>, vector<8x32xf32>
    %c0_i32_152 = arith.constant 0 : i32
    %785 = vector.broadcast %c0_i32_152 : i32 to vector<8x1xi32>
    %786 = arith.cmpi eq, %0, %785 : vector<8x1xi32>
    %787 = vector.shape_cast %786 : vector<8x1xi1> to vector<8x1xi1>
    %788 = vector.broadcast %787 : vector<8x1xi1> to vector<8x32xi1>
    %789 = arith.select %788, %779, %741 : vector<8x32xi1>, vector<8x32xf32>
    %c0_153 = arith.constant 0 : index
    %c0_154 = arith.constant 0 : index
    %790 = vector.load %arg6[%c0_153, %c0_154] : memref<72x16xf32, #tpu.memory_space<vmem>>, vector<32x16xf32>
    %c32 = arith.constant 32 : index
    %c0_155 = arith.constant 0 : index
    %791 = vector.load %arg6[%c32, %c0_155] : memref<72x16xf32, #tpu.memory_space<vmem>>, vector<32x16xf32>
    %c64_156 = arith.constant 64 : index
    %c0_157 = arith.constant 0 : index
    %792 = vector.load %arg6[%c64_156, %c0_157] : memref<72x16xf32, #tpu.memory_space<vmem>>, vector<1x16xf32>
    %cst_158 = arith.constant dense<0.000000e+00> : vector<8x16xf32>
    %793 = tpu.matmul %784, %790, %cst_158 {dimension_numbers = #tpu.dot_dimension_numbers<[1], [0], [0], [1], [0, 0, 1, 1], [], []>} : vector<8x32xf32>, vector<32x16xf32>, vector<8x16xf32> -> vector<8x16xf32>
    %cst_159 = arith.constant dense<0.000000e+00> : vector<8x16xf32>
    %794 = tpu.matmul %789, %791, %cst_159 {dimension_numbers = #tpu.dot_dimension_numbers<[1], [0], [0], [1], [0, 0, 1, 1], [], []>} : vector<8x32xf32>, vector<32x16xf32>, vector<8x16xf32> -> vector<8x16xf32>
    %795 = arith.addf %793, %794 : vector<8x16xf32>
    %796 = vector.broadcast %792 : vector<1x16xf32> to vector<8x16xf32>
    %797 = arith.addf %795, %796 : vector<8x16xf32>
    %798 = vector.extract_strided_slice %797 {offsets = [0, 0], sizes = [2, 16], strides = [1, 1]} : vector<8x16xf32> to vector<2x16xf32>
    %cst_160 = arith.constant 0.000000e+00 : f32
    %799 = vector.broadcast %cst_160 : f32 to vector<2x16xf32>
    %800 = arith.maximumf %798, %799 : vector<2x16xf32>
    %c0_161 = arith.constant 0 : index
    %c0_162 = arith.constant 0 : index
    %801 = vector.load %arg7[%c0_161, %c0_162] : memref<2x16xf32, #tpu.memory_space<vmem>>, vector<2x16xf32>
    tpu.vector_store %arg7[%c0_161, %c0_162], %800 {strides = array<i32>} : memref<2x16xf32, #tpu.memory_space<vmem>>, vector<2x16xf32>,
    return
  }
}

</mosaic_0001>

<bundles_post_ra>
// kernel: encoder_rnn_forward.1
= control target key start
LH: loop header
LB: loop body
LE: loop exit
PB: predicated region body
PF: predicated region fallthrough
CT: control target
= control target key end

     0   :  { %vm44_vm0 = vcmask 64512   ;;  %s4219_s30 = smov 32   ;;  %s5130_s0 = inlined_call_operand.vmem [shape: s32[8,1], index: 0, kind: input, shape index: {}]   ;;  %s5131_s1 = inlined_call_operand.vmem [shape: f32[64,8], index: 1, kind: input, shape index: {}]   ;;  %s5132_s2 = inlined_call_operand.vmem [shape: f32[144,128], index: 2, kind: input, shape index: {}]   ;;  %s5133_s3 = inlined_call_operand.vmem [shape: f32[128,256], index: 3, kind: input, shape index: {}]   ;;  %s5134_s4 = inlined_call_operand.vmem [shape: f32[4,128], index: 4, kind: input, shape index: {}]   ;;  %s5135_s5 = inlined_call_operand.vmem [shape: f32[8,8,32], index: 5, kind: input, shape index: {}]   ;;  %s5136_s6 = inlined_call_operand.vmem [shape: f32[72,16], index: 6, kind: input, shape index: {}]   ;;  %s5137_s7 = inlined_call_operand.hbm [shape: f32[2,16], index: 7, kind: output, shape index: {}]  }
   0x1   :  { %v3316_v0 = vld [vmem:[%s5135_s5 + $0x8] sm:$0xff]  ;;  %v38_v1 = vld [vmem:[%s5132_s2] sm:$0xff]  ;;  %v286_v5 = vld [vmem:[%s5133_s3 + $0x18] sm:$0xff] }
   0x2   :  { %v28_v2 = vld [vmem:[%s5131_s1] sm:$0xff]  ;;  %307 = vrot.lane.b32.xlu0 %v3316_v0, %s4219_s30  ;;  %3484 = vmatprep.subr.mxu0 %v38_v1  ;;  %v29_v3 = vld [vmem:[%s5131_s1 + $0x8] sm:$0xff]  ;;  %v285_v9 = vld [vmem:[%s5133_s3 + $0x10] sm:$0xff] }
   0x3   :  { %v284_v4 = vld [vmem:[%s5133_s3 + $0x8] sm:$0xff]  ;;  %3485 = vmatpush3.msra.mxu0 %v38_v1  ;;  %3486 = vmatprep.mubr.msk.f32.mxu0 %vm44_vm0, %v28_v2  ;;  %v283_v8 = vld [vmem:[%s5133_s3] sm:$0xff]  ;;  %v30_v11 = vld [vmem:[%s5131_s1 + $0x10] sm:$0xff] }
   0x4   :  { %v4286_v6 = vpack.c.bf16 %v286_v5, %v284_v4  ;;  %v39_v7 = vld [vmem:[%s5132_s2 + $0x8] sm:$0xff]  ;;  %3487 = vmatmul.mubr.msk.f32.vlgmr.msra.gmra.mrb[0].mxu0 %vm44_vm0, %v29_v3  ;;  %v4298_v10 = vpack.c.bf16 %v285_v9, %v283_v8  ;;  %v31_v12 = vld [vmem:[%s5131_s1 + $0x18] sm:$0xff]  ;;  %v287_v15 = vld [vmem:[%s5133_s3 + $0x20] sm:$0xff]  ;;  %3500 = vmatprep.mubr.msk.f32.mxu1 %vm44_vm0, %v28_v2 }
   0x5   :  { %3498 = vmatprep.subr.mxu1 %v39_v7  ;;  %v288_v13 = vld [vmem:[%s5133_s3 + $0x28] sm:$0xff]  ;;  %v290_v14 = vld [vmem:[%s5133_s3 + $0x38] sm:$0xff]  ;;  %v289_v16 = vld [vmem:[%s5133_s3 + $0x30] sm:$0xff]  ;;  %3489 = vmatprep.mubr.msk.f32.mxu0 %vm44_vm0, %v30_v11 }
   0x6   :  { %3615 = vmatprep.subr.bf16.mxu0 %v4286_v6  ;;  %3499 = vmatpush3.msra.mxu1 %v39_v7  ;;  %v4321_v17 = vpack.c.bf16 %v290_v14, %v288_v13  ;;  %v4323_v18 = vpack.c.bf16 %v289_v16, %v287_v15  ;;  %v32_v19 = vld [vmem:[%s5131_s1 + $0x20] sm:$0xff]  ;;  %v292_v20 = vld [vmem:[%s5133_s3 + $0x48] sm:$0xff]  ;;  %v294_v21 = vld [vmem:[%s5133_s3 + $0x58] sm:$0xff] }
   0x7   :  { %3617 = vmatpush1.bf16.msra.mxu0 %v4298_v10  ;;  %3501 = vmatmul.mubr.msk.f32.vlgmr.msra.gmra.mrb[0].mxu1 %vm44_vm0, %v29_v3  ;;  %v291_v22 = vld [vmem:[%s5133_s3 + $0x40] sm:$0xff]  ;;  %v293_v23 = vld [vmem:[%s5133_s3 + $0x50] sm:$0xff]  ;;  %v4344_v24 = vpack.c.bf16 %v294_v21, %v292_v20  ;;  %v296_v25 = vld [vmem:[%s5133_s3 + $0x68] sm:$0xff] }
   0x8   :  { %3490 = vmatmul.mubr.msk.f32.gmra.mrb[2].mxu0 %vm44_vm0, %v31_v12  ;;  %3619 = vmatprep.subr.bf16.mxu0 %v4321_v17  ;;  %v33_v26 = vld [vmem:[%s5131_s1 + $0x28] sm:$0xff]  ;;  %v298_v27 = vld [vmem:[%s5133_s3 + $0x78] sm:$0xff]  ;;  %v4358_v28 = vpack.c.bf16 %v293_v23, %v291_v22  ;;  %v34_v29 = vld [vmem:[%s5131_s1 + $0x30] sm:$0xff] }
   0x9   :  { %3503 = vmatprep.mubr.msk.f32.mxu1 %vm44_vm0, %v30_v11  ;;  %3492 = vmatprep.mubr.msk.f32.mxu0 %vm44_vm0, %v32_v19 }
   0xa   :  { %3631 = vmatprep.subr.bf16.mxu1 %v4286_v6 }
   0xb   :  { %3621 = vmatpush1.bf16.msra.mxu0 %v4323_v18 }
   0xc   :  { %12 = vsyncpa [#allocation5], 0  ;;  %3504 = vmatmul.mubr.msk.f32.gmra.mrb[2].mxu1 %vm44_vm0, %v31_v12  ;;  %3623 = vmatprep.subr.bf16.mxu0 %v4344_v24  ;;  %v4366_v30 = vpack.c.bf16 %v298_v27, %v296_v25  ;;  %v295_v31 = vld [vmem:[%s5133_s3 + $0x60] sm:$0xff]  ;;  %v297_v32 = vld [vmem:[%s5133_s3 + $0x70] sm:$0xff]  ;;  %v4220_v35 = vmov 0.0   ;;  %vm310_vm1 = vcmask 261120  }
   0xd   :  { %3493 = vmatmul.mubr.msk.f32.gmra.mrb[4].mxu0 %vm44_vm0, %v33_v26  ;;  %3506 = vmatprep.mubr.msk.f32.mxu1 %vm44_vm0, %v32_v19  ;;  %v35_v33 = vld [vmem:[%s5131_s1 + $0x38] sm:$0xff]  ;;  %v4382_v34 = vpack.c.bf16 %v297_v32, %v295_v31  ;;  %v299_v36 = vld [vmem:[%s5135_s5] sm:$0xff]  ;;  %vm312_vm2 = vcmask 523264   ;;  %s4221_s17 = smov 64   ;;  %v3318_v19 = vld [vmem:[%s5135_s5 + $0x28] sm:$0xff]  ;;  %vm4224_vm11 = vmmov 0  }
   0xe   :  { %3495 = vmatprep.mubr.msk.f32.mxu0 %vm44_vm0, %v34_v29  ;;  %3633 = vmatpush1.bf16.msra.mxu1 %v4298_v10  ;;  %v3298_v39 = vld [vmem:[%s5134_s4] ss:$0 sm:$0xff]  ;;  %v3307_v43 = vld [vmem:[%s5134_s4 + $0x1] ss:$0 sm:$0xff]  ;;  %s4225_s21 = smov [#allocation4]  }
   0xf   :  { %3625 = vmatpush1.bf16.msra.mxu0 %v4358_v28  ;;  %3635 = vmatprep.subr.bf16.mxu1 %v4321_v17  ;;  %v3317_v20 = vld [vmem:[%s5135_s5 + $0x20] sm:$0xff]  ;;  %s3290_s22 = sshll.u32 %s4225_s21, 4  ;;  %s3291_s22 = int_to_ptr.vmem [resolvable:$true] %s3290_s22 }
  0x10   :  { %3507 = vmatmul.mubr.msk.f32.gmra.mrb[4].mxu1 %vm44_vm0, %v33_v26  ;;  %3627 = vmatprep.subr.bf16.mxu0 %v4366_v30  ;;  %p4200_p1 = scmp.lt.s32.totalorder %s3291_s22, %s3291_s22 }
  0x11   :  { %3496 = vmatmul.mubr.msk.f32.gmra.mrb[6].mxu0 %vm44_vm0, %v35_v33  ;;  %3509 = vmatprep.mubr.msk.f32.mxu1 %vm44_vm0, %v34_v29 }
  0x12   :  { %380 = vmatprep.mubr.f32.mxu0 %v4220_v35  ;;  %3637 = vmatpush1.bf16.msra.mxu1 %v4323_v18 }
  0x13   :  { %3629 = vmatpush1.bf16.msra.mxu0 %v4382_v34  ;;  %3639 = vmatprep.subr.bf16.mxu1 %v4344_v24 }
  0x14   :  { %3510 = vmatmul.mubr.msk.f32.gmra.mrb[6].mxu1 %vm44_vm0, %v35_v33  ;;  %3647 = vmatprep.subr.bf16.mxu0 %v4286_v6 }
  0x15   :  { %527 = vmatprep.mubr.f32.mxu1 %v4220_v35 }
  0x16   :  { %3641 = vmatpush1.bf16.msra.mxu1 %v4358_v28 }
  0x17   :  { %3643 = vmatprep.subr.bf16.mxu1 %v4366_v30 }
  0x1a   :  { %3645 = vmatpush1.bf16.msra.mxu1 %v4382_v34 }
  0x1b   :  { %3663 = vmatprep.subr.bf16.mxu1 %v4286_v6 }
  0x74   :  { %v308_v37 = vpop.permute.xlu0 %307 }
  0x75   :  { %v311_v38 = vsel %vm310_vm1, %v299_v36, %v308_v37 }
  0x76   :  { %3319 = vmatmul.mubr.msk.f32.vlgmr.msra.gmra.mrb[8].mxu0 %vm312_vm2, %v311_v38 }
  0x77   :  { %3649 = vmatpush1.bf16.msra.mxu0 %v4298_v10  ;;  %667 = vmatprep.mubr.f32.mxu0 %v4220_v35 }
  0x78   :  { %3651 = vmatprep.subr.bf16.mxu0 %v4321_v17 }
  0x7b   :  { %3653 = vmatpush1.bf16.msra.mxu0 %v4323_v18 }
  0x7c   :  { %3655 = vmatprep.subr.bf16.mxu0 %v4344_v24 }
  0x7f   :  { %3657 = vmatpush1.bf16.msra.mxu0 %v4358_v28 }
  0x80   :  { %3659 = vmatprep.subr.bf16.mxu0 %v4366_v30 }
  0x83   :  { %3661 = vmatpush1.bf16.msra.mxu0 %v4382_v34 }
  0x84   :  { %3679 = vmatprep.subr.bf16.mxu0 %v4286_v6 }
  0xd7   :  { %v3488_v40 = vpop.f32.mrb[0].mxu0 }
  0xd8   :  { %v4417_v41 = vadd.f32 %v3488_v40, %v3298_v39  ;;  %v135_v42 = vpop.f32.mrb[1].mxu0 }
  0xd9   :  { %v136_v9 = vadd.f32 %v3298_v39, %v135_v42 }
  0xda   :  { %v3502_v44 = vpop.f32.mrb[0].mxu1 }
  0xdb   :  { %v4422_v45 = vadd.f32 %v3502_v44, %v3307_v43  ;;  %v3491_v46 = vpop.f32.mrb[2].mxu0  ;;  %v244_v47 = vpop.f32.mrb[1].mxu1 }
  0xdc   :  { %v4424_v48 = vadd.f32 %v3491_v46, %v3298_v39  ;;  %v4426_v49 = vadd.f32 %v3307_v43, %v244_v47  ;;  %v145_v50 = vpop.f32.mrb[3].mxu0 }
  0xdd   :  { %v4428_v51 = vadd.f32 %v3298_v39, %v145_v50 }
  0xdf   :  { %v3505_v52 = vpop.f32.mrb[2].mxu1 }
  0xe0   :  { %v4430_v53 = vadd.f32 %v3505_v52, %v3307_v43  ;;  %v3494_v54 = vpop.f32.mrb[4].mxu0  ;;  %v254_v55 = vpop.f32.mrb[3].mxu1 }
  0xe1   :  { %v4432_v56 = vadd.f32 %v3494_v54, %v3298_v39  ;;  %v4434_v57 = vadd.f32 %v3307_v43, %v254_v55  ;;  %v155_v58 = vpop.f32.mrb[5].mxu0 }
  0xe2   :  { %v4436_v59 = vadd.f32 %v3298_v39, %v155_v58 }
  0xe3   :  { %v3508_v60 = vpop.f32.mrb[4].mxu1 }
  0xe4   :  { %v4438_v61 = vadd.f32 %v3508_v60, %v3307_v43  ;;  %v3497_v62 = vpop.f32.mrb[6].mxu0  ;;  %v264_v63 = vpop.f32.mrb[5].mxu1 }
  0xe5   :  { %v4440_v0 = vadd.f32 %v3497_v62, %v3298_v39  ;;  %v4442_v1 = vadd.f32 %v3307_v43, %v264_v63  ;;  %v165_v2 = vpop.f32.mrb[7].mxu0 }
  0xe6   :  { %v4444_v3 = vadd.f32 %v3298_v39, %v165_v2 }
  0xe7   :  { %v3511_v4 = vpop.f32.mrb[6].mxu1 }
  0xe8   :  { %v274_v5 = vpop.f32.mrb[7].mxu1  ;;  %v280_v8 = vadd.f32 %v3511_v4, %v3307_v43 }
  0xe9   :  { %v4446_v7 = vadd.f32 %v3307_v43, %v274_v5 }
 0x149   :  { %v382_v11 = vpop.f32.mrb[8].mxu0 }
 0x14a   :  { %v387_v12 = vadd.f32 %v382_v11, %v136_v9  ;;  %v384_v13 = vpop.f32.mrb[9].mxu0 }
 0x14b   :  { %v388_v14 = vadd.f32 %v384_v13, %v280_v8 }
 0x14c   :  { %3939 = vtanh.f32 %v387_v12  ;;  %v3320_v21 = vmul.f32 -1.442695, %v387_v12 }
 0x14d   :  { %3941 = vtanh.f32 %v388_v14  ;;  %v3321_v22 = vmul.f32 -1.442695, %v388_v14 }
 0x14e   :  { %3943 = vpow2.f32 %v3320_v21 }
 0x14f   :  { %3945 = vpow2.f32 %v3321_v22 }
 0x156   :  { %v3940_v15 = vpop.eup %3939 }
 0x157   :  { %v3942_v16 = vpop.eup %3941  ;;  %409 = vrot.lane.b32.xlu0 %v3940_v15, %s4221_s17 }
 0x158   :  { %424 = vrot.lane.b32.xlu1 %v3942_v16, %s4221_s17  ;;  %v3944_v23 = vpop.eup %3943 }
 0x159   :  { %v3946_v25 = vpop.eup %3945  ;;  %v392_v26 = vadd.f32 1.0, %v3944_v23 }
 0x15a   :  { %v399_v27 = vadd.f32 1.0, %v3946_v25 }
 0x15b   :  { %419 = vrot.lane.b32.xlu0 %v3318_v19, %s4219_s30  ;;  %3947 = vrcp.f32 %v392_v26 }
 0x15c   :  { %404 = vrot.lane.b32.xlu1 %v3317_v20, %s4219_s30  ;;  %3949 = vrcp.f32 %v399_v27 }
 0x165   :  { %v3948_v29 = vpop.eup %3947 }
 0x166   :  { %v3950_v32 = vpop.eup %3949 }
 0x1c9   :  { %v410_v31 = vpop.permute.xlu0 %409 }
 0x1ca   :  { %v412_v33 = vmul.f32 %v3948_v29, %v410_v31  ;;  %v425_v36 = vpop.permute.xlu1 %424 }
 0x1cb   :  { %v427_v37 = vmul.f32 %v3950_v32, %v425_v36 }
 0x1cc   :  { %414 = vrot.lane.b32.xlu1 %v412_v33, %s4219_s30 }
 0x1cd   :  { %429 = vrot.lane.b32.xlu0 %v427_v37, %s4219_s30  ;;  %v420_v39 = vpop.permute.xlu0 %419 }
 0x1ce   :  { %v405_v38 = vpop.permute.xlu1 %404  ;;  %v422_v42 = vmul.f32 %v3950_v32, %v420_v39 }
 0x1cf   :  { %v407_v40 = vmul.f32 %v3948_v29, %v405_v38 }
 0x23e   :  { %v415_v43 = vpop.permute.xlu1 %414 }
 0x23f   :  { %v417_v44 = vadd.f32 %v415_v43, %v407_v40  ;;  %v430_v46 = vpop.permute.xlu0 %429 }
 0x240   :  { %v432_v47 = vadd.f32 %v430_v46, %v422_v42 }
 0x241   :  { %3951 = vtanh.f32 %v417_v44 }
 0x242   :  { %3953 = vtanh.f32 %v432_v47 }
 0x24b   :  { %v3952_v50 = vpop.eup %3951 }
 0x24c   :  { %v3954_v52 = vpop.eup %3953  ;;  %435 = vrot.lane.b32.xlu1 %v3952_v50, %s4221_s17 }
 0x24d   :  { %441 = vrot.lane.b32.xlu0 %v3954_v52, %s4221_s17 }
 0x2be   :  { %v436_v54 = vpop.permute.xlu1 %435 }
 0x2bf   :  { %v438_v55 = vmul.f32 %v3948_v29, %v436_v54  ;;  %v442_v58 = vpop.permute.xlu0 %441 }
 0x2c0   :  { %v4462_v60 = vmul.f32 %v3950_v32, %v442_v58 }
 0x2c1   :  { %446 = vrot.lane.b32.xlu1 %v438_v55, %s4219_s30 }
 0x2c2   :  { %456 = vrot.lane.b32.xlu0 %v4462_v60, %s4221_s17 }
 0x333   :  { %v447_v62 = vpop.permute.xlu1 %446 }
 0x334   :  { %449 = vst.msk [vmem:[#allocation2] sm:$0xff] %vm310_vm1, %v447_v62  ;;  %v457_v63 = vpop.permute.xlu0 %456 }
 0x335   :  { %v459_v2 = vsel %vm310_vm1, %v447_v62, %v457_v63 }
 0x336   :  { %3322 = vmatmul.mubr.msk.f32.vlgmr.msra.gmra.mrb[8].mxu1 %vm312_vm2, %v459_v2 }
 0x337   :  { %3665 = vmatpush1.bf16.msra.mxu1 %v4298_v10  ;;  %807 = vmatprep.mubr.f32.mxu1 %v4220_v35 }
 0x338   :  { %3667 = vmatprep.subr.bf16.mxu1 %v4321_v17 }
 0x33b   :  { %3669 = vmatpush1.bf16.msra.mxu1 %v4323_v18 }
 0x33c   :  { %3671 = vmatprep.subr.bf16.mxu1 %v4344_v24 }
 0x33f   :  { %3673 = vmatpush1.bf16.msra.mxu1 %v4358_v28 }
 0x340   :  { %3675 = vmatprep.subr.bf16.mxu1 %v4366_v30 }
 0x343   :  { %3677 = vmatpush1.bf16.msra.mxu1 %v4382_v34 }
 0x344   :  { %3695 = vmatprep.subr.bf16.mxu1 %v4286_v6 }
 0x409   :  { %v529_v4 = vpop.f32.mrb[8].mxu1 }
 0x40a   :  { %v534_v5 = vadd.f32 %v529_v4, %v4417_v41  ;;  %v531_v8 = vpop.f32.mrb[9].mxu1 }
 0x40b   :  { %v535_v9 = vadd.f32 %v531_v8, %v4446_v7 }
 0x40c   :  { %3955 = vtanh.f32 %v534_v5  ;;  %v3323_v13 = vmul.f32 -1.442695, %v534_v5 }
 0x40d   :  { %3957 = vtanh.f32 %v535_v9  ;;  %v3324_v14 = vmul.f32 -1.442695, %v535_v9 }
 0x40e   :  { %3959 = vpow2.f32 %v3323_v13 }
 0x40f   :  { %3961 = vpow2.f32 %v3324_v14 }
 0x416   :  { %v3956_v11 = vpop.eup %3955 }
 0x417   :  { %v3958_v12 = vpop.eup %3957  ;;  %552 = vrot.lane.b32.xlu1 %v3956_v11, %s4221_s17 }
 0x418   :  { %563 = vrot.lane.b32.xlu0 %v3958_v12, %s4221_s17  ;;  %v3960_v15 = vpop.eup %3959 }
 0x419   :  { %v3962_v16 = vpop.eup %3961  ;;  %v539_v19 = vadd.f32 1.0, %v3960_v15 }
 0x41a   :  { %v546_v20 = vadd.f32 1.0, %v3962_v16 }
 0x41b   :  { %3963 = vrcp.f32 %v539_v19 }
 0x41c   :  { %3965 = vrcp.f32 %v546_v20 }
 0x425   :  { %v3964_v41 = vpop.eup %3963 }
 0x426   :  { %v3966_v21 = vpop.eup %3965  ;;  %v550_v26 = vmul.f32 %v3964_v41, %v417_v44 }
 0x427   :  { %v561_v29 = vmul.f32 %v3966_v21, %v432_v47 }
 0x489   :  { %v553_v7 = vpop.permute.xlu1 %552 }
 0x48a   :  { %v555_v22 = vmul.f32 %v3964_v41, %v553_v7  ;;  %v564_v23 = vpop.permute.xlu0 %563 }
 0x48b   :  { %v566_v25 = vmul.f32 %v3966_v21, %v564_v23 }
 0x48c   :  { %557 = vrot.lane.b32.xlu1 %v555_v22, %s4219_s30 }
 0x48d   :  { %568 = vrot.lane.b32.xlu0 %v566_v25, %s4219_s30 }
 0x4fe   :  { %v558_v27 = vpop.permute.xlu1 %557 }
 0x4ff   :  { %v560_v31 = vadd.f32 %v558_v27, %v550_v26  ;;  %v569_v32 = vpop.permute.xlu0 %568 }
 0x500   :  { %v571_v33 = vadd.f32 %v569_v32, %v561_v29 }
 0x501   :  { %3967 = vtanh.f32 %v560_v31 }
 0x502   :  { %3969 = vtanh.f32 %v571_v33 }
 0x50b   :  { %v3968_v36 = vpop.eup %3967 }
 0x50c   :  { %v3970_v37 = vpop.eup %3969  ;;  %574 = vrot.lane.b32.xlu1 %v3968_v36, %s4221_s17 }
 0x50d   :  { %580 = vrot.lane.b32.xlu0 %v3970_v37, %s4221_s17 }
 0x57e   :  { %v575_v38 = vpop.permute.xlu1 %574 }
 0x57f   :  { %v577_v39 = vmul.f32 %v3964_v41, %v575_v38  ;;  %v581_v40 = vpop.permute.xlu0 %580 }
 0x580   :  { %v4487_v42 = vmul.f32 %v3966_v21, %v581_v40 }
 0x581   :  { %585 = vrot.lane.b32.xlu1 %v577_v39, %s4219_s30 }
 0x582   :  { %596 = vrot.lane.b32.xlu0 %v4487_v42, %s4221_s17 }
 0x5f3   :  { %v586_v43 = vpop.permute.xlu1 %585 }
 0x5f4   :  { %589 = vst.msk [vmem:[#allocation2 + $0x8] sm:$0xff] %vm310_vm1, %v586_v43  ;;  %v597_v44 = vpop.permute.xlu0 %596 }
 0x5f5   :  { %v599_v46 = vsel %vm310_vm1, %v586_v43, %v597_v44 }
 0x5f6   :  { %3325 = vmatmul.mubr.msk.f32.vlgmr.msra.gmra.mrb[10].mxu0 %vm312_vm2, %v599_v46 }
 0x5f7   :  { %3681 = vmatpush1.bf16.msra.mxu0 %v4298_v10  ;;  %947 = vmatprep.mubr.f32.mxu0 %v4220_v35 }
 0x5f8   :  { %3683 = vmatprep.subr.bf16.mxu0 %v4321_v17 }
 0x5fb   :  { %3685 = vmatpush1.bf16.msra.mxu0 %v4323_v18 }
 0x5fc   :  { %3687 = vmatprep.subr.bf16.mxu0 %v4344_v24 }
 0x5ff   :  { %3689 = vmatpush1.bf16.msra.mxu0 %v4358_v28 }
 0x600   :  { %3691 = vmatprep.subr.bf16.mxu0 %v4366_v30 }
 0x603   :  { %3693 = vmatpush1.bf16.msra.mxu0 %v4382_v34 }
 0x604   :  { %3711 = vmatprep.subr.bf16.mxu0 %v4286_v6 }
 0x6c9   :  { %v669_v47 = vpop.f32.mrb[10].mxu0 }
 0x6ca   :  { %v674_v50 = vadd.f32 %v669_v47, %v4428_v51  ;;  %v671_v52 = vpop.f32.mrb[11].mxu0 }
 0x6cb   :  { %v675_v54 = vadd.f32 %v671_v52, %v4438_v61 }
 0x6cc   :  { %3971 = vtanh.f32 %v674_v50  ;;  %v3326_v62 = vmul.f32 -1.442695, %v674_v50 }
 0x6cd   :  { %3973 = vtanh.f32 %v675_v54  ;;  %v3327_v63 = vmul.f32 -1.442695, %v675_v54 }
 0x6ce   :  { %3975 = vpow2.f32 %v3326_v62 }
 0x6cf   :  { %3977 = vpow2.f32 %v3327_v63 }
 0x6d6   :  { %v3972_v55 = vpop.eup %3971 }
 0x6d7   :  { %v3974_v58 = vpop.eup %3973  ;;  %692 = vrot.lane.b32.xlu1 %v3972_v55, %s4221_s17 }
 0x6d8   :  { %703 = vrot.lane.b32.xlu0 %v3974_v58, %s4221_s17  ;;  %v3976_v2 = vpop.eup %3975 }
 0x6d9   :  { %v3978_v4 = vpop.eup %3977  ;;  %v679_v5 = vadd.f32 1.0, %v3976_v2 }
 0x6da   :  { %v686_v8 = vadd.f32 1.0, %v3978_v4 }
 0x6db   :  { %3979 = vrcp.f32 %v679_v5 }
 0x6dc   :  { %3981 = vrcp.f32 %v686_v8 }
 0x6e5   :  { %v3980_v51 = vpop.eup %3979 }
 0x6e6   :  { %v3982_v9 = vpop.eup %3981  ;;  %v690_v14 = vmul.f32 %v3980_v51, %v560_v31 }
 0x6e7   :  { %v701_v16 = vmul.f32 %v3982_v9, %v571_v33 }
 0x749   :  { %v693_v61 = vpop.permute.xlu1 %692 }
 0x74a   :  { %v695_v11 = vmul.f32 %v3980_v51, %v693_v61  ;;  %v704_v12 = vpop.permute.xlu0 %703 }
 0x74b   :  { %v706_v13 = vmul.f32 %v3982_v9, %v704_v12 }
 0x74c   :  { %697 = vrot.lane.b32.xlu1 %v695_v11, %s4219_s30 }
 0x74d   :  { %708 = vrot.lane.b32.xlu0 %v706_v13, %s4219_s30 }
 0x7be   :  { %v698_v15 = vpop.permute.xlu1 %697 }
 0x7bf   :  { %v700_v19 = vadd.f32 %v698_v15, %v690_v14  ;;  %v709_v20 = vpop.permute.xlu0 %708 }
 0x7c0   :  { %v711_v41 = vadd.f32 %v709_v20, %v701_v16 }
 0x7c1   :  { %3983 = vtanh.f32 %v700_v19 }
 0x7c2   :  { %3985 = vtanh.f32 %v711_v41 }
 0x7cb   :  { %v3984_v7 = vpop.eup %3983 }
 0x7cc   :  { %v3986_v21 = vpop.eup %3985  ;;  %714 = vrot.lane.b32.xlu1 %v3984_v7, %s4221_s17 }
 0x7cd   :  { %720 = vrot.lane.b32.xlu0 %v3986_v21, %s4221_s17 }
 0x83e   :  { %v715_v22 = vpop.permute.xlu1 %714 }
 0x83f   :  { %v717_v23 = vmul.f32 %v3980_v51, %v715_v22  ;;  %v721_v25 = vpop.permute.xlu0 %720 }
 0x840   :  { %v4512_v26 = vmul.f32 %v3982_v9, %v721_v25 }
 0x841   :  { %725 = vrot.lane.b32.xlu1 %v717_v23, %s4219_s30 }
 0x842   :  { %736 = vrot.lane.b32.xlu0 %v4512_v26, %s4221_s17 }
 0x8b3   :  { %v726_v27 = vpop.permute.xlu1 %725 }
 0x8b4   :  { %729 = vst.msk [vmem:[#allocation2 + $0x10] sm:$0xff] %vm310_vm1, %v726_v27  ;;  %v737_v29 = vpop.permute.xlu0 %736 }
 0x8b5   :  { %v739_v31 = vsel %vm310_vm1, %v726_v27, %v737_v29 }
 0x8b6   :  { %3328 = vmatmul.mubr.msk.f32.vlgmr.msra.gmra.mrb[10].mxu1 %vm312_vm2, %v739_v31 }
 0x8b7   :  { %3697 = vmatpush1.bf16.msra.mxu1 %v4298_v10  ;;  %1087 = vmatprep.mubr.f32.mxu1 %v4220_v35 }
 0x8b8   :  { %3699 = vmatprep.subr.bf16.mxu1 %v4321_v17 }
 0x8bb   :  { %3701 = vmatpush1.bf16.msra.mxu1 %v4323_v18 }
 0x8bc   :  { %3703 = vmatprep.subr.bf16.mxu1 %v4344_v24 }
 0x8bf   :  { %3705 = vmatpush1.bf16.msra.mxu1 %v4358_v28 }
 0x8c0   :  { %3707 = vmatprep.subr.bf16.mxu1 %v4366_v30 }
 0x8c3   :  { %3709 = vmatpush1.bf16.msra.mxu1 %v4382_v34 }
 0x8c4   :  { %3727 = vmatprep.subr.bf16.mxu1 %v4286_v6 }
 0x989   :  { %v809_v32 = vpop.f32.mrb[10].mxu1 }
 0x98a   :  { %v814_v33 = vadd.f32 %v809_v32, %v4424_v48  ;;  %v811_v36 = vpop.f32.mrb[11].mxu1 }
 0x98b   :  { %v815_v37 = vadd.f32 %v811_v36, %v4442_v1 }
 0x98c   :  { %3987 = vtanh.f32 %v814_v33  ;;  %v3329_v40 = vmul.f32 -1.442695, %v814_v33 }
 0x98d   :  { %3989 = vtanh.f32 %v815_v37  ;;  %v3330_v43 = vmul.f32 -1.442695, %v815_v37 }
 0x98e   :  { %3991 = vpow2.f32 %v3329_v40 }
 0x98f   :  { %3993 = vpow2.f32 %v3330_v43 }
 0x996   :  { %v3988_v38 = vpop.eup %3987 }
 0x997   :  { %v3990_v39 = vpop.eup %3989  ;;  %832 = vrot.lane.b32.xlu1 %v3988_v38, %s4221_s17 }
 0x998   :  { %843 = vrot.lane.b32.xlu0 %v3990_v39, %s4221_s17  ;;  %v3992_v44 = vpop.eup %3991 }
 0x999   :  { %v3994_v6 = vpop.eup %3993  ;;  %v819_v46 = vadd.f32 1.0, %v3992_v44 }
 0x99a   :  { %v826_v47 = vadd.f32 1.0, %v3994_v6 }
 0x99b   :  { %3995 = vrcp.f32 %v819_v46 }
 0x99c   :  { %3997 = vrcp.f32 %v826_v47 }
 0x9a5   :  { %v3996_v48 = vpop.eup %3995 }
 0x9a6   :  { %v3998_v50 = vpop.eup %3997  ;;  %v830_v58 = vmul.f32 %v3996_v48, %v700_v19 }
 0x9a7   :  { %v841_v63 = vmul.f32 %v3998_v50, %v711_v41 }
 0xa09   :  { %v833_v1 = vpop.permute.xlu1 %832 }
 0xa0a   :  { %v835_v52 = vmul.f32 %v3996_v48, %v833_v1  ;;  %v844_v54 = vpop.permute.xlu0 %843 }
 0xa0b   :  { %v846_v55 = vmul.f32 %v3998_v50, %v844_v54 }
 0xa0c   :  { %837 = vrot.lane.b32.xlu1 %v835_v52, %s4219_s30 }
 0xa0d   :  { %848 = vrot.lane.b32.xlu0 %v846_v55, %s4219_s30 }
 0xa7e   :  { %v838_v62 = vpop.permute.xlu1 %837 }
 0xa7f   :  { %v840_v2 = vadd.f32 %v838_v62, %v830_v58  ;;  %v849_v4 = vpop.permute.xlu0 %848 }
 0xa80   :  { %v851_v5 = vadd.f32 %v849_v4, %v841_v63 }
 0xa81   :  { %3999 = vtanh.f32 %v840_v2 }
 0xa82   :  { %4001 = vtanh.f32 %v851_v5 }
 0xa8b   :  { %v4000_v8 = vpop.eup %3999 }
 0xa8c   :  { %v4002_v51 = vpop.eup %4001  ;;  %854 = vrot.lane.b32.xlu1 %v4000_v8, %s4221_s17 }
 0xa8d   :  { %860 = vrot.lane.b32.xlu0 %v4002_v51, %s4221_s17 }
 0xafe   :  { %v855_v61 = vpop.permute.xlu1 %854 }
 0xaff   :  { %v857_v9 = vmul.f32 %v3996_v48, %v855_v61  ;;  %v861_v11 = vpop.permute.xlu0 %860 }
 0xb00   :  { %v4537_v12 = vmul.f32 %v3998_v50, %v861_v11 }
 0xb01   :  { %865 = vrot.lane.b32.xlu1 %v857_v9, %s4219_s30 }
 0xb02   :  { %876 = vrot.lane.b32.xlu0 %v4537_v12, %s4221_s17 }
 0xb73   :  { %v866_v13 = vpop.permute.xlu1 %865 }
 0xb74   :  { %869 = vst.msk [vmem:[#allocation2 + $0x18] sm:$0xff] %vm310_vm1, %v866_v13  ;;  %v877_v14 = vpop.permute.xlu0 %876 }
 0xb75   :  { %v879_v15 = vsel %vm310_vm1, %v866_v13, %v877_v14 }
 0xb76   :  { %3331 = vmatmul.mubr.msk.f32.vlgmr.msra.gmra.mrb[12].mxu0 %vm312_vm2, %v879_v15 }
 0xb77   :  { %3713 = vmatpush1.bf16.msra.mxu0 %v4298_v10  ;;  %1227 = vmatprep.mubr.f32.mxu0 %v4220_v35 }
 0xb78   :  { %3715 = vmatprep.subr.bf16.mxu0 %v4321_v17 }
 0xb7b   :  { %3717 = vmatpush1.bf16.msra.mxu0 %v4323_v18 }
 0xb7c   :  { %3719 = vmatprep.subr.bf16.mxu0 %v4344_v24 }
 0xb7f   :  { %3721 = vmatpush1.bf16.msra.mxu0 %v4358_v28 }
 0xb80   :  { %3723 = vmatprep.subr.bf16.mxu0 %v4366_v30 }
 0xb83   :  { %3725 = vmatpush1.bf16.msra.mxu0 %v4382_v34 }
 0xc49   :  { %v949_v16 = vpop.f32.mrb[12].mxu0 }
 0xc4a   :  { %v954_v19 = vadd.f32 %v949_v16, %v4436_v59  ;;  %v951_v20 = vpop.f32.mrb[13].mxu0 }
 0xc4b   :  { %v955_v41 = vadd.f32 %v951_v20, %v4430_v53 }
 0xc4c   :  { %4003 = vtanh.f32 %v954_v19  ;;  %v3332_v22 = vmul.f32 -1.442695, %v954_v19 }
 0xc4d   :  { %4005 = vtanh.f32 %v955_v41  ;;  %v3333_v23 = vmul.f32 -1.442695, %v955_v41 }
 0xc4e   :  { %4007 = vpow2.f32 %v3332_v22 }
 0xc4f   :  { %4009 = vpow2.f32 %v3333_v23 }
 0xc56   :  { %v4004_v7 = vpop.eup %4003 }
 0xc57   :  { %v4006_v21 = vpop.eup %4005  ;;  %972 = vrot.lane.b32.xlu1 %v4004_v7, %s4221_s17 }
 0xc58   :  { %983 = vrot.lane.b32.xlu0 %v4006_v21, %s4221_s17  ;;  %v4008_v25 = vpop.eup %4007 }
 0xc59   :  { %v4010_v27 = vpop.eup %4009  ;;  %v959_v29 = vadd.f32 1.0, %v4008_v25 }
 0xc5a   :  { %v966_v31 = vadd.f32 1.0, %v4010_v27 }
 0xc5b   :  { %4011 = vrcp.f32 %v959_v29 }
 0xc5c   :  { %4013 = vrcp.f32 %v966_v31 }
 0xc65   :  { %v4012_v59 = vpop.eup %4011 }
 0xc66   :  { %v4014_v32 = vpop.eup %4013  ;;  %v970_v38 = vmul.f32 %v4012_v59, %v840_v2 }
 0xc67   :  { %v981_v40 = vmul.f32 %v4014_v32, %v851_v5 }
 0xcc9   :  { %v973_v53 = vpop.permute.xlu1 %972 }
 0xcca   :  { %v975_v33 = vmul.f32 %v4012_v59, %v973_v53  ;;  %v984_v36 = vpop.permute.xlu0 %983 }
 0xccb   :  { %v986_v37 = vmul.f32 %v4014_v32, %v984_v36 }
 0xccc   :  { %977 = vrot.lane.b32.xlu1 %v975_v33, %s4219_s30 }
 0xccd   :  { %988 = vrot.lane.b32.xlu0 %v986_v37, %s4219_s30 }
 0xd3e   :  { %v978_v39 = vpop.permute.xlu1 %977 }
 0xd3f   :  { %v980_v43 = vadd.f32 %v978_v39, %v970_v38  ;;  %v989_v44 = vpop.permute.xlu0 %988 }
 0xd40   :  { %v991_v6 = vadd.f32 %v989_v44, %v981_v40 }
 0xd41   :  { %4015 = vtanh.f32 %v980_v43 }
 0xd42   :  { %4017 = vtanh.f32 %v991_v6 }
 0xd4b   :  { %v4016_v46 = vpop.eup %4015 }
 0xd4c   :  { %v4018_v47 = vpop.eup %4017  ;;  %994 = vrot.lane.b32.xlu1 %v4016_v46, %s4221_s17 }
 0xd4d   :  { %1000 = vrot.lane.b32.xlu0 %v4018_v47, %s4221_s17 }
 0xdbe   :  { %v995_v48 = vpop.permute.xlu1 %994 }
 0xdbf   :  { %v997_v1 = vmul.f32 %v4012_v59, %v995_v48  ;;  %v1001_v50 = vpop.permute.xlu0 %1000 }
 0xdc0   :  { %v4561_v52 = vmul.f32 %v4014_v32, %v1001_v50 }
 0xdc1   :  { %1005 = vrot.lane.b32.xlu1 %v997_v1, %s4219_s30 }
 0xdc2   :  { %1016 = vrot.lane.b32.xlu0 %v4561_v52, %s4221_s17 }
 0xe33   :  { %v1006_v54 = vpop.permute.xlu1 %1005 }
 0xe34   :  { %1009 = vst.msk [vmem:[#allocation2 + $0x20] sm:$0xff] %vm310_vm1, %v1006_v54  ;;  %v1017_v55 = vpop.permute.xlu0 %1016 }
 0xe35   :  { %v1019_v58 = vsel %vm310_vm1, %v1006_v54, %v1017_v55 }
 0xe36   :  { %3334 = vmatmul.mubr.msk.f32.vlgmr.msra.gmra.mrb[12].mxu1 %vm312_vm2, %v1019_v58 }
 0xe37   :  { %3729 = vmatpush1.bf16.msra.mxu1 %v4298_v10  ;;  %1367 = vmatprep.mubr.f32.mxu1 %v4220_v35 }
 0xe38   :  { %3731 = vmatprep.subr.bf16.mxu1 %v4321_v17 }
 0xe3b   :  { %3733 = vmatpush1.bf16.msra.mxu1 %v4323_v18 }
 0xe3c   :  { %3735 = vmatprep.subr.bf16.mxu1 %v4344_v24 }
 0xe3f   :  { %3737 = vmatpush1.bf16.msra.mxu1 %v4358_v28 }
 0xe40   :  { %3739 = vmatprep.subr.bf16.mxu1 %v4366_v30 }
 0xe43   :  { %3741 = vmatpush1.bf16.msra.mxu1 %v4382_v34 }
 0xf09   :  { %v1089_v62 = vpop.f32.mrb[12].mxu1 }
 0xf0a   :  { %v1094_v63 = vadd.f32 %v1089_v62, %v4432_v56  ;;  %v1091_v2 = vpop.f32.mrb[13].mxu1 }
 0xf0b   :  { %v1095_v10 = vadd.f32 %v1091_v2, %v4434_v57 }
 0xf0c   :  { %4019 = vtanh.f32 %v1094_v63  ;;  %v3335_v18 = vmul.f32 -1.442695, %v1094_v63 }
 0xf0d   :  { %4021 = vtanh.f32 %v1095_v10  ;;  %v3336_v24 = vmul.f32 -1.442695, %v1095_v10 }
 0xf0e   :  { %4023 = vpow2.f32 %v3335_v18 }
 0xf0f   :  { %4025 = vpow2.f32 %v3336_v24 }
 0xf16   :  { %v4020_v4 = vpop.eup %4019 }
 0xf17   :  { %v4022_v17 = vpop.eup %4021  ;;  %1112 = vrot.lane.b32.xlu1 %v4020_v4, %s4221_s17 }
 0xf18   :  { %1123 = vrot.lane.b32.xlu0 %v4022_v17, %s4221_s17  ;;  %v4024_v28 = vpop.eup %4023 }
 0xf19   :  { %v4026_v30 = vpop.eup %4025  ;;  %v1099_v34 = vadd.f32 1.0, %v4024_v28 }
 0xf1a   :  { %v1106_v5 = vadd.f32 1.0, %v4026_v30 }
 0xf1b   :  { %4027 = vrcp.f32 %v1099_v34 }
 0xf1c   :  { %4029 = vrcp.f32 %v1106_v5 }
 0xf25   :  { %v4028_v56 = vpop.eup %4027 }
 0xf26   :  { %v4030_v8 = vpop.eup %4029  ;;  %v1110_v11 = vmul.f32 %v4028_v56, %v980_v43 }
 0xf27   :  { %v1121_v14 = vmul.f32 %v4030_v8, %v991_v6 }
 0xf89   :  { %v1113_v57 = vpop.permute.xlu1 %1112 }
 0xf8a   :  { %v1115_v51 = vmul.f32 %v4028_v56, %v1113_v57  ;;  %v1124_v61 = vpop.permute.xlu0 %1123 }
 0xf8b   :  { %v1126_v9 = vmul.f32 %v4030_v8, %v1124_v61 }
 0xf8c   :  { %1117 = vrot.lane.b32.xlu1 %v1115_v51, %s4219_s30 }
 0xf8d   :  { %1128 = vrot.lane.b32.xlu0 %v1126_v9, %s4219_s30 }
 0xffe   :  { %v1118_v13 = vpop.permute.xlu1 %1117 }
 0xfff   :  { %v1120_v15 = vadd.f32 %v1118_v13, %v1110_v11  ;;  %v1129_v16 = vpop.permute.xlu0 %1128 }
0x1000   :  { %v1131_v19 = vadd.f32 %v1129_v16, %v1121_v14 }
0x1001   :  { %4031 = vtanh.f32 %v1120_v15 }
0x1002   :  { %4033 = vtanh.f32 %v1131_v19 }
0x100b   :  { %v4032_v20 = vpop.eup %4031 }
0x100c   :  { %v4034_v41 = vpop.eup %4033  ;;  %1134 = vrot.lane.b32.xlu1 %v4032_v20, %s4221_s17 }
0x100d   :  { %1140 = vrot.lane.b32.xlu0 %v4034_v41, %s4221_s17 }
0x107e   :  { %v1135_v7 = vpop.permute.xlu1 %1134 }
0x107f   :  { %v1137_v21 = vmul.f32 %v4028_v56, %v1135_v7  ;;  %v1141_v22 = vpop.permute.xlu0 %1140 }
0x1080   :  { %v4585_v23 = vmul.f32 %v4030_v8, %v1141_v22 }
0x1081   :  { %1145 = vrot.lane.b32.xlu1 %v1137_v21, %s4219_s30 }
0x1082   :  { %1156 = vrot.lane.b32.xlu0 %v4585_v23, %s4221_s17 }
0x10f3   :  { %v1146_v25 = vpop.permute.xlu1 %1145 }
0x10f4   :  { %1149 = vst.msk [vmem:[#allocation2 + $0x28] sm:$0xff] %vm310_vm1, %v1146_v25  ;;  %v1157_v27 = vpop.permute.xlu0 %1156 }
0x10f5   :  { %v1159_v29 = vsel %vm310_vm1, %v1146_v25, %v1157_v27 }
0x10f6   :  { %3337 = vmatmul.mubr.msk.f32.vlgmr.msra.gmra.mrb[14].mxu0 %vm312_vm2, %v1159_v29 }
0x11c9   :  { %v1229_v31 = vpop.f32.mrb[14].mxu0 }
0x11ca   :  { %v1234_v59 = vadd.f32 %v1229_v31, %v4444_v3  ;;  %v1231_v53 = vpop.f32.mrb[15].mxu0 }
0x11cb   :  { %v1235_v32 = vadd.f32 %v1231_v53, %v4422_v45  ;;  %v3378_v53 = vld [vmem:[%s5135_s5 + $0x18] sm:$0xff] }
0x11cc   :  { %4035 = vtanh.f32 %v1234_v59  ;;  %v3338_v37 = vmul.f32 -1.442695, %v1234_v59 }
0x11cd   :  { %4037 = vtanh.f32 %v1235_v32  ;;  %v3339_v38 = vmul.f32 -1.442695, %v1235_v32  ;;  %v1457_v32 = vld [vmem:[%s5132_s2 + $0x30] sm:$0xff] }
0x11ce   :  { %4039 = vpow2.f32 %v3338_v37  ;;  %v1459_v37 = vld [vmem:[%s5132_s2 + $0x40] sm:$0xff] }
0x11cf   :  { %4041 = vpow2.f32 %v3339_v38  ;;  %v1460_v38 = vld [vmem:[%s5132_s2 + $0x48] sm:$0xff] }
0x11d6   :  { %v4036_v33 = vpop.eup %4035 }
0x11d7   :  { %v4038_v36 = vpop.eup %4037  ;;  %1252 = vrot.lane.b32.xlu1 %v4036_v33, %s4221_s17 }
0x11d8   :  { %1263 = vrot.lane.b32.xlu0 %v4038_v36, %s4221_s17  ;;  %v4040_v39 = vpop.eup %4039 }
0x11d9   :  { %v4042_v40 = vpop.eup %4041  ;;  %v1239_v43 = vadd.f32 1.0, %v4040_v39  ;;  %v1467_v39 = vld [vmem:[%s5132_s2 + $0x80] sm:$0xff] }
0x11da   :  { %v1246_v44 = vadd.f32 1.0, %v4042_v40  ;;  %v3746_v40 = vpack.c.bf16 %v1460_v38, %v1459_v37 }
0x11db   :  { %4043 = vrcp.f32 %v1239_v43  ;;  %v1468_v43 = vld [vmem:[%s5132_s2 + $0x88] sm:$0xff] }
0x11dc   :  { %4045 = vrcp.f32 %v1246_v44  ;;  %v3762_v44 = vpack.c.bf16 %v1468_v43, %v1467_v39  ;;  %v1973_v39 = vld [vmem:[%s5133_s3 + $0xe0] sm:$0xff]  ;;  %v1440_v43 = vld [vmem:[#allocation2 + $0x28] sm:$0xff] }
0x11e5   :  { %v4044_v3 = vpop.eup %4043 }
0x11e6   :  { %v4046_v6 = vpop.eup %4045  ;;  %v1250_v1 = vmul.f32 %v4044_v3, %v1120_v15 }
0x11e7   :  { %v1261_v54 = vmul.f32 %v4046_v6, %v1131_v19 }
0x1249   :  { %v1253_v45 = vpop.permute.xlu1 %1252 }
0x124a   :  { %v1255_v46 = vmul.f32 %v4044_v3, %v1253_v45  ;;  %v1264_v47 = vpop.permute.xlu0 %1263  ;;  %v1454_v45 = vld [vmem:[%s5132_s2 + $0x18] sm:$0xff] }
0x124b   :  { %v1266_v48 = vmul.f32 %v4046_v6, %v1264_v47 }
0x124c   :  { %1257 = vrot.lane.b32.xlu1 %v1255_v46, %s4219_s30 }
0x124d   :  { %1268 = vrot.lane.b32.xlu0 %v1266_v48, %s4219_s30  ;;  %v1461_v48 = vld [vmem:[%s5132_s2 + $0x50] sm:$0xff] }
0x12be   :  { %v1258_v50 = vpop.permute.xlu1 %1257 }
0x12bf   :  { %v1260_v55 = vadd.f32 %v1258_v50, %v1250_v1  ;;  %v1269_v58 = vpop.permute.xlu0 %1268  ;;  %v1462_v1 = vld [vmem:[%s5132_s2 + $0x58] sm:$0xff] }
0x12c0   :  { %v1271_v62 = vadd.f32 %v1269_v58, %v1261_v54  ;;  %v3766_v54 = vpack.c.bf16 %v1462_v1, %v1461_v48  ;;  %v3359_v48 = vld [vmem:[%s5134_s4 + $0x2] ss:$0 sm:$0xff]  ;;  %v3376_v1 = vld [vmem:[%s5134_s4 + $0x3] ss:$0 sm:$0xff] }
0x12c1   :  { %4047 = vtanh.f32 %v1260_v55 }
0x12c2   :  { %4049 = vtanh.f32 %v1271_v62 }
0x12cb   :  { %v4048_v63 = vpop.eup %4047 }
0x12cc   :  { %v4050_v2 = vpop.eup %4049  ;;  %1274 = vrot.lane.b32.xlu1 %v4048_v63, %s4221_s17 }
0x12cd   :  { %1280 = vrot.lane.b32.xlu0 %v4050_v2, %s4221_s17 }
0x133e   :  { %v1275_v10 = vpop.permute.xlu1 %1274 }
0x133f   :  { %v1277_v4 = vmul.f32 %v4044_v3, %v1275_v10  ;;  %v1281_v17 = vpop.permute.xlu0 %1280  ;;  %v1453_v3 = vld [vmem:[%s5132_s2 + $0x10] sm:$0xff] }
0x1340   :  { %v1283_v18 = vmul.f32 %v4046_v6, %v1281_v17  ;;  %v3750_v46 = vpack.c.bf16 %v1454_v45, %v1453_v3  ;;  %v1464_v17 = vld [vmem:[%s5132_s2 + $0x68] sm:$0xff]  ;;  %v3377_v45 = vld [vmem:[%s5135_s5 + $0x10] sm:$0xff] }
0x1341   :  { %1285 = vrot.lane.b32.xlu1 %v1277_v4, %s4219_s30  ;;  %v1463_v4 = vld [vmem:[%s5132_s2 + $0x60] sm:$0xff] }
0x1342   :  { %1296 = vrot.lane.b32.xlu0 %v1283_v18, %s4221_s17 }
0x13b3   :  { %v1286_v24 = vpop.permute.xlu1 %1285 }
0x13b4   :  { %1289 = vst.msk [vmem:[#allocation2 + $0x30] sm:$0xff] %vm310_vm1, %v1286_v24  ;;  %v1297_v28 = vpop.permute.xlu0 %1296 }
0x13b5   :  { %v1299_v30 = vsel %vm310_vm1, %v1286_v24, %v1297_v28 }
0x13b6   :  { %3340 = vmatmul.mubr.msk.f32.vlgmr.msra.gmra.mrb[14].mxu1 %vm312_vm2, %v1299_v30  ;;  %v3770_v30 = vpack.c.bf16 %v1464_v17, %v1463_v4 }
0x1489   :  { %v1369_v34 = vpop.f32.mrb[14].mxu1 }
0x148a   :  { %v1374_v5 = vadd.f32 %v1369_v34, %v4440_v0  ;;  %v1371_v56 = vpop.f32.mrb[15].mxu1 }
0x148b   :  { %v1375_v57 = vadd.f32 %v1371_v56, %v4426_v49  ;;  %v1964_v56 = vld [vmem:[%s5133_s3 + $0x98] sm:$0xff] }
0x148c   :  { %4051 = vtanh.f32 %v1374_v5  ;;  %v3341_v61 = vmul.f32 -1.442695, %v1374_v5  ;;  %v1962_v5 = vld [vmem:[%s5133_s3 + $0x88] sm:$0xff] }
0x148d   :  { %4053 = vtanh.f32 %v1375_v57  ;;  %v3342_v9 = vmul.f32 -1.442695, %v1375_v57 }
0x148e   :  { %4055 = vpow2.f32 %v3341_v61 }
0x148f   :  { %4057 = vpow2.f32 %v3342_v9 }
0x1496   :  { %v4052_v8 = vpop.eup %4051 }
0x1497   :  { %v4054_v51 = vpop.eup %4053  ;;  %1392 = vrot.lane.b32.xlu0 %v4052_v8, %s4221_s17 }
0x1498   :  { %1403 = vrot.lane.b32.xlu1 %v4054_v51, %s4221_s17  ;;  %v4056_v11 = vpop.eup %4055  ;;  %v4703_v51 = vpack.c.bf16 %v1964_v56, %v1962_v5 }
0x1499   :  { %v4058_v13 = vpop.eup %4057  ;;  %v1379_v14 = vadd.f32 1.0, %v4056_v11 }
0x149a   :  { %v1386_v15 = vadd.f32 1.0, %v4058_v13 }
0x149b   :  { %4059 = vrcp.f32 %v1379_v14 }
0x149c   :  { %4061 = vrcp.f32 %v1386_v15  ;;  %v1961_v15 = vld [vmem:[%s5133_s3 + $0x80] sm:$0xff] }
0x14a5   :  { %v4610_v0 = vpop.eup %4059 }
0x14a6   :  { %v4062_v16 = vpop.eup %4061  ;;  %v1390_v7 = vmul.f32 %v4610_v0, %v1260_v55 }
0x14a7   :  { %v1401_v22 = vmul.f32 %v4062_v16, %v1271_v62 }
0x1509   :  { %v1393_v49 = vpop.permute.xlu0 %1392 }
0x150a   :  { %v1395_v19 = vmul.f32 %v4610_v0, %v1393_v49  ;;  %v1404_v20 = vpop.permute.xlu1 %1403 }
0x150b   :  { %v1406_v41 = vmul.f32 %v4062_v16, %v1404_v20  ;;  %v1435_v20 = vld [vmem:[#allocation2] sm:$0xff] }
0x150c   :  { %1397 = vrot.lane.b32.xlu0 %v1395_v19, %s4219_s30  ;;  %v1968_v19 = vld [vmem:[%s5133_s3 + $0xb8] sm:$0xff] }
0x150d   :  { %1408 = vrot.lane.b32.xlu1 %v1406_v41, %s4219_s30 }
0x157e   :  { %v1398_v21 = vpop.permute.xlu0 %1397 }
0x157f   :  { %v1400_v25 = vadd.f32 %v1398_v21, %v1390_v7  ;;  %v1409_v27 = vpop.permute.xlu1 %1408  ;;  %v1965_v21 = vld [vmem:[%s5133_s3 + $0xa0] sm:$0xff] }
0x1580   :  { %v1411_v29 = vadd.f32 %v1409_v27, %v1401_v22  ;;  %v1967_v22 = vld [vmem:[%s5133_s3 + $0xb0] sm:$0xff]  ;;  %v1970_v27 = vld [vmem:[%s5133_s3 + $0xc8] sm:$0xff] }
0x1581   :  { %4063 = vtanh.f32 %v1400_v25  ;;  %v1436_v25 = vld [vmem:[#allocation2 + $0x8] sm:$0xff] }
0x1582   :  { %4065 = vtanh.f32 %v1411_v29  ;;  %v1972_v29 = vld [vmem:[%s5133_s3 + $0xd8] sm:$0xff] }
0x158b   :  { %v4064_v31 = vpop.eup %4063 }
0x158c   :  { %v4066_v59 = vpop.eup %4065  ;;  %1414 = vrot.lane.b32.xlu0 %v4064_v31, %s4221_s17  ;;  %v1437_v31 = vld [vmem:[#allocation2 + $0x10] sm:$0xff] }
0x158d   :  { %1420 = vrot.lane.b32.xlu1 %v4066_v59, %s4221_s17  ;;  %v4755_v59 = vpack.c.bf16 %v1967_v22, %v1965_v21 }
0x1590   :  { %1291 = vrot.lane.b32.xlu0 %v1283_v18, %s4219_s30 }
0x1594   :  { %1011 = vrot.lane.b32.xlu0 %v4561_v52, %s4219_s30  ;;  %v1458_v52 = vld [vmem:[%s5132_s2 + $0x38] sm:$0xff] }
0x1595   :  { %v3742_v33 = vpack.c.bf16 %v1458_v52, %v1457_v32  ;;  %v1969_v32 = vld [vmem:[%s5133_s3 + $0xc0] sm:$0xff]  ;;  %v1971_v52 = vld [vmem:[%s5133_s3 + $0xd0] sm:$0xff] }
0x1596   :  { %v4778_v37 = vpack.c.bf16 %v1971_v52, %v1969_v32  ;;  %v3380_v32 = vld [vmem:[%s5135_s5 + $0x38] sm:$0xff] }
0x1597   :  { %3743 = vmatprep.subr.bf16.mxu0 %v3742_v33 }
0x1598   :  { %731 = vrot.lane.b32.xlu0 %v4512_v26, %s4219_s30  ;;  %v1465_v26 = vld [vmem:[%s5132_s2 + $0x70] sm:$0xff]  ;;  %3745 = vmatpush3.bf16.msra.mxu0 %v3742_v33  ;;  %v1974_v33 = vld [vmem:[%s5133_s3 + $0xe8] sm:$0xff] }
0x1599   :  { %3747 = vmatprep.subr.bf16.mxu0 %v3746_v40 }
0x159c   :  { %451 = vrot.lane.b32.xlu0 %v4462_v60, %s4219_s30  ;;  %v1466_v60 = vld [vmem:[%s5132_s2 + $0x78] sm:$0xff]  ;;  %3749 = vmatpush3.bf16.msra.mxu0 %v3746_v40  ;;  %v1975_v40 = vld [vmem:[%s5133_s3 + $0xf0] sm:$0xff] }
0x159d   :  { %v3758_v36 = vpack.c.bf16 %v1466_v60, %v1465_v26  ;;  %3751 = vmatprep.subr.bf16.mxu0 %v3750_v46  ;;  %v1438_v26 = vld [vmem:[#allocation2 + $0x18] sm:$0xff]  ;;  %v4795_v3 = vpack.c.bf16 %v1975_v40, %v1973_v39 }
0x159e   :  { %v1976_v60 = vld [vmem:[%s5133_s3 + $0xf8] sm:$0xff] }
0x159f   :  { %3759 = vmatprep.subr.bf16.mxu1 %v3758_v36  ;;  %v4782_v38 = vpack.c.bf16 %v1976_v60, %v1974_v33 }
0x15a0   :  { %1986 = vrot.lane.b32.xlu0 %v3378_v53, %s4219_s30  ;;  %3761 = vmatpush3.bf16.msra.mxu1 %v3758_v36  ;;  %v4759_v53 = vpack.c.bf16 %v1972_v29, %v1970_v27  ;;  %v1439_v36 = vld [vmem:[#allocation2 + $0x20] sm:$0xff] }
0x15a1   :  { %3763 = vmatprep.subr.bf16.mxu1 %v3762_v44 }
0x15a4   :  { %3765 = vmatpush3.bf16.msra.mxu1 %v3762_v44  ;;  %v1441_v44 = vld [vmem:[#allocation2 + $0x30] sm:$0xff] }
0x15a5   :  { %3767 = vmatprep.subr.bf16.mxu1 %v3766_v54 }
0x15fe   :  { %v1415_v6 = vpop.permute.xlu0 %1414 }
0x15ff   :  { %v1421_v47 = vpop.permute.xlu1 %1420  ;;  %v1417_v2 = vmul.f32 %v4610_v0, %v1415_v6  ;;  %v1963_v0 = vld [vmem:[%s5133_s3 + $0x90] sm:$0xff] }
0x1600   :  { %v1423_v50 = vmul.f32 %v4062_v16, %v1421_v47  ;;  %v1966_v16 = vld [vmem:[%s5133_s3 + $0xa8] sm:$0xff]  ;;  %v4735_v41 = vpack.c.bf16 %v1963_v0, %v1961_v15 }
0x1601   :  { %v4737_v7 = vpack.c.bf16 %v1968_v19, %v1966_v16 }
0x1602   :  { %v1292_v55 = vpop.permute.xlu0 %1291  ;;  %1431 = vrot.lane.b32.xlu1 %v1423_v50, %s4219_s30 }
0x1603   :  { %1295 = vst.msk [vmem:[#allocation3 + $0x8] sm:$0xff] %vm310_vm1, %v1292_v55 }
0x1606   :  { %v1012_v58 = vpop.permute.xlu0 %1011  ;;  %1151 = vrot.lane.b32.xlu1 %v4585_v23, %s4219_s30 }
0x1607   :  { %1015 = vst.msk [vmem:[#allocation3 + $0x18] sm:$0xff] %vm310_vm1, %v1012_v58 }
0x160a   :  { %v732_v62 = vpop.permute.xlu0 %731  ;;  %871 = vrot.lane.b32.xlu1 %v4537_v12, %s4219_s30  ;;  %v1455_v12 = vld [vmem:[%s5132_s2 + $0x20] sm:$0xff]  ;;  %v1444_v34 = vld [vmem:[#allocation3 + $0x8] sm:$0xff] }
0x160b   :  { %735 = vst.msk [vmem:[#allocation3 + $0x28] sm:$0xff] %vm310_vm1, %v732_v62 }
0x160e   :  { %v452_v63 = vpop.permute.xlu0 %451  ;;  %591 = vrot.lane.b32.xlu1 %v4487_v42, %s4219_s30  ;;  %v1456_v42 = vld [vmem:[%s5132_s2 + $0x28] sm:$0xff]  ;;  %v1446_v61 = vld [vmem:[#allocation3 + $0x18] sm:$0xff] }
0x160f   :  { %455 = vst.msk [vmem:[#allocation3 + $0x38] sm:$0xff] %vm310_vm1, %v452_v63  ;;  %v3754_v28 = vpack.c.bf16 %v1456_v42, %v1455_v12 }
0x1612   :  { %1425 = vrot.lane.b32.xlu1 %v1417_v2, %s4219_s30  ;;  %v1448_v13 = vld [vmem:[#allocation3 + $0x28] sm:$0xff]  ;;  %v1987_v6 = vpop.permute.xlu0 %1986 }
0x1613   :  { %v1989_v47 = vsel %vm310_vm1, %v3377_v45, %v1987_v6 }
0x1616   :  { %v1450_v49 = vld [vmem:[#allocation3 + $0x38] sm:$0xff] }
0x1674   :  { %v1432_v10 = vpop.permute.xlu1 %1431 }
0x1675   :  { %1434 = vst.msk [vmem:[#allocation3] sm:$0xff] %vm310_vm1, %v1432_v10 }
0x1678   :  { %v1152_v23 = vpop.permute.xlu1 %1151 }
0x1679   :  { %1155 = vst.msk [vmem:[#allocation3 + $0x10] sm:$0xff] %vm310_vm1, %v1152_v23 }
0x167c   :  { %v872_v18 = vpop.permute.xlu1 %871  ;;  %v1443_v24 = vld [vmem:[#allocation3] sm:$0xff] }
0x167d   :  { %875 = vst.msk [vmem:[#allocation3 + $0x20] sm:$0xff] %vm310_vm1, %v872_v18  ;;  %3520 = vmatprep.mubr.msk.f32.mxu0 %vm310_vm1, %v1443_v24  ;;  %3560 = vmatprep.mubr.msk.f32.mxu1 %vm310_vm1, %v1443_v24 }
0x167e   :  { %3521 = vmatmul.mubr.msk.f32.vlgmr.msra.gmra.mrb[16].mxu0 %vm310_vm1, %v1444_v34  ;;  %3561 = vmatmul.mubr.msk.f32.vlgmr.msra.gmra.mrb[16].mxu1 %vm310_vm1, %v1444_v34 }
0x167f   :  { %3753 = vmatpush3.bf16.msra.mxu0 %v3750_v46  ;;  %3769 = vmatpush3.bf16.msra.mxu1 %v3766_v54 }
0x1680   :  { %v592_v57 = vpop.permute.xlu1 %591  ;;  %v1445_v8 = vld [vmem:[#allocation3 + $0x10] sm:$0xff]  ;;  %3755 = vmatprep.subr.bf16.mxu0 %v3754_v28  ;;  %3771 = vmatprep.subr.bf16.mxu1 %v3770_v30 }
0x1681   :  { %595 = vst.msk [vmem:[#allocation3 + $0x30] sm:$0xff] %vm310_vm1, %v592_v57  ;;  %3523 = vmatprep.mubr.msk.f32.mxu0 %vm310_vm1, %v1445_v8  ;;  %3563 = vmatprep.mubr.msk.f32.mxu1 %vm310_vm1, %v1445_v8 }
0x1682   :  { %3524 = vmatmul.mubr.msk.f32.gmra.mrb[18].mxu0 %vm310_vm1, %v1446_v61  ;;  %3564 = vmatmul.mubr.msk.f32.gmra.mrb[18].mxu1 %vm310_vm1, %v1446_v61 }
0x1683   :  { %3757 = vmatpush3.bf16.msra.mxu0 %v3754_v28  ;;  %3773 = vmatpush3.bf16.msra.mxu1 %v3770_v30 }
0x1684   :  { %v1426_v9 = vpop.permute.xlu1 %1425  ;;  %v1447_v11 = vld [vmem:[#allocation3 + $0x20] sm:$0xff]  ;;  %3775 = vmatprep.subr.bf16.mxu0 %v4703_v51  ;;  %3791 = vmatprep.subr.bf16.mxu1 %v4703_v51 }
0x1685   :  { %1429 = vst.msk [vmem:[#allocation2 + $0x38] sm:$0xff] %vm310_vm1, %v1426_v9  ;;  %3526 = vmatprep.mubr.msk.f32.mxu0 %vm310_vm1, %v1447_v11  ;;  %3566 = vmatprep.mubr.msk.f32.mxu1 %vm310_vm1, %v1447_v11 }
0x1686   :  { %3527 = vmatmul.mubr.msk.f32.gmra.mrb[20].mxu0 %vm310_vm1, %v1448_v13  ;;  %3567 = vmatmul.mubr.msk.f32.gmra.mrb[20].mxu1 %vm310_vm1, %v1448_v13 }
0x1688   :  { %v1449_v14 = vld [vmem:[#allocation3 + $0x30] sm:$0xff] }
0x1689   :  { %3529 = vmatprep.mubr.msk.f32.mxu0 %vm310_vm1, %v1449_v14  ;;  %3569 = vmatprep.mubr.msk.f32.mxu1 %vm310_vm1, %v1449_v14 }
0x168a   :  { %3530 = vmatmul.mubr.msk.f32.gmra.mrb[22].mxu0 %vm310_vm1, %v1450_v49  ;;  %3570 = vmatmul.mubr.msk.f32.gmra.mrb[22].mxu1 %vm310_vm1, %v1450_v49 }
0x168b   :  { %3540 = vmatprep.mubr.msk.f32.mxu0 %vm310_vm1, %v1435_v20  ;;  %3580 = vmatprep.mubr.msk.f32.mxu1 %vm310_vm1, %v1435_v20 }
0x168c   :  { %v1442_v46 = vld [vmem:[#allocation2 + $0x38] sm:$0xff] }
0x168e   :  { %3541 = vmatmul.mubr.msk.f32.vlgmr.msra.gmra.mrb[16].mxu0 %vm310_vm1, %v1436_v25  ;;  %3581 = vmatmul.mubr.msk.f32.vlgmr.msra.gmra.mrb[16].mxu1 %vm310_vm1, %v1436_v25 }
0x168f   :  { %3777 = vmatpush1.bf16.msra.mxu0 %v4735_v41  ;;  %3543 = vmatprep.mubr.msk.f32.mxu0 %vm310_vm1, %v1437_v31 }
0x1690   :  { %3583 = vmatprep.mubr.msk.f32.mxu1 %vm310_vm1, %v1437_v31  ;;  %3779 = vmatprep.subr.bf16.mxu0 %v4737_v7  ;;  %v3379_v31 = vld [vmem:[%s5135_s5 + $0x30] sm:$0xff] }
0x1691   :  { %3793 = vmatpush1.bf16.msra.mxu1 %v4735_v41 }
0x1692   :  { %3544 = vmatmul.mubr.msk.f32.gmra.mrb[18].mxu0 %vm310_vm1, %v1438_v26  ;;  %3584 = vmatmul.mubr.msk.f32.gmra.mrb[18].mxu1 %vm310_vm1, %v1438_v26 }
0x1693   :  { %3781 = vmatpush1.bf16.msra.mxu0 %v4755_v59  ;;  %3546 = vmatprep.mubr.msk.f32.mxu0 %vm310_vm1, %v1439_v36 }
0x1694   :  { %3586 = vmatprep.mubr.msk.f32.mxu1 %vm310_vm1, %v1439_v36  ;;  %3783 = vmatprep.subr.bf16.mxu0 %v4759_v53 }
0x1695   :  { %3795 = vmatprep.subr.bf16.mxu1 %v4737_v7 }
0x1696   :  { %3547 = vmatmul.mubr.msk.f32.gmra.mrb[20].mxu0 %vm310_vm1, %v1440_v43  ;;  %3587 = vmatmul.mubr.msk.f32.gmra.mrb[20].mxu1 %vm310_vm1, %v1440_v43 }
0x1697   :  { %3785 = vmatpush1.bf16.msra.mxu0 %v4778_v37  ;;  %3549 = vmatprep.mubr.msk.f32.mxu0 %vm310_vm1, %v1441_v44 }
0x1698   :  { %3589 = vmatprep.mubr.msk.f32.mxu1 %vm310_vm1, %v1441_v44  ;;  %3787 = vmatprep.subr.bf16.mxu0 %v4782_v38 }
0x1699   :  { %3797 = vmatpush1.bf16.msra.mxu1 %v4755_v59 }
0x169a   :  { %3550 = vmatmul.mubr.msk.f32.gmra.mrb[22].mxu0 %vm310_vm1, %v1442_v46  ;;  %3590 = vmatmul.mubr.msk.f32.gmra.mrb[22].mxu1 %vm310_vm1, %v1442_v46 }
0x169b   :  { %3789 = vmatpush1.bf16.msra.mxu0 %v4795_v3  ;;  %2057 = vmatprep.mubr.f32.mxu0 %v4220_v35 }
0x169c   :  { %3799 = vmatprep.subr.bf16.mxu1 %v4759_v53  ;;  %2212 = vmatprep.mubr.f32.mxu1 %v4220_v35 }
0x169d   :  { %3801 = vmatpush1.bf16.msra.mxu1 %v4778_v37  ;;  %3807 = vmatprep.subr.bf16.mxu0 %v4703_v51 }
0x169e   :  { %3381 = vmatmul.mubr.msk.f32.vlgmr.msra.gmra.mrb[24].mxu0 %vm312_vm2, %v1989_v47  ;;  %3803 = vmatprep.subr.bf16.mxu1 %v4782_v38 }
0x169f   :  { %3809 = vmatpush1.bf16.msra.mxu0 %v4735_v41  ;;  %2359 = vmatprep.mubr.f32.mxu0 %v4220_v35 }
0x16a0   :  { %3811 = vmatprep.subr.bf16.mxu0 %v4737_v7 }
0x16a1   :  { %3805 = vmatpush1.bf16.msra.mxu1 %v4795_v3 }
0x16a2   :  { %3823 = vmatprep.subr.bf16.mxu1 %v4703_v51 }
0x16a3   :  { %3813 = vmatpush1.bf16.msra.mxu0 %v4755_v59 }
0x16a4   :  { %3815 = vmatprep.subr.bf16.mxu0 %v4759_v53 }
0x16a7   :  { %3817 = vmatpush1.bf16.msra.mxu0 %v4778_v37 }
0x16a8   :  { %3819 = vmatprep.subr.bf16.mxu0 %v4782_v38 }
0x16ab   :  { %3821 = vmatpush1.bf16.msra.mxu0 %v4795_v3 }
0x16ac   :  { %3839 = vmatprep.subr.bf16.mxu0 %v4703_v51 }
0x1761   :  { %v3542_v50 = vpop.f32.mrb[16].mxu0  ;;  %v3582_v54 = vpop.f32.mrb[16].mxu1 }
0x1762   :  { %v4831_v55 = vadd.f32 %v3542_v50, %v3359_v48  ;;  %v4833_v58 = vadd.f32 %v3582_v54, %v3376_v1  ;;  %v1688_v62 = vpop.f32.mrb[17].mxu0  ;;  %v1910_v63 = vpop.f32.mrb[17].mxu1 }
0x1763   :  { %v4835_v2 = vadd.f32 %v3376_v1, %v1910_v63  ;;  %v1731_v16 = vadd.f32 %v3359_v48, %v1688_v62 }
0x1765   :  { %v3545_v10 = vpop.f32.mrb[18].mxu0  ;;  %v3585_v23 = vpop.f32.mrb[18].mxu1 }
0x1766   :  { %v4837_v12 = vadd.f32 %v3545_v10, %v3359_v48  ;;  %v4839_v42 = vadd.f32 %v3585_v23, %v3376_v1  ;;  %v1698_v4 = vpop.f32.mrb[19].mxu0  ;;  %v1920_v17 = vpop.f32.mrb[19].mxu1 }
0x1767   :  { %v4841_v18 = vadd.f32 %v3359_v48, %v1698_v4  ;;  %v4843_v24 = vadd.f32 %v3376_v1, %v1920_v17 }
0x1769   :  { %v3548_v28 = vpop.f32.mrb[20].mxu0  ;;  %v3588_v30 = vpop.f32.mrb[20].mxu1 }
0x176a   :  { %v4845_v34 = vadd.f32 %v3548_v28, %v3359_v48  ;;  %v4847_v5 = vadd.f32 %v3588_v30, %v3376_v1  ;;  %v1708_v56 = vpop.f32.mrb[21].mxu0  ;;  %v1930_v57 = vpop.f32.mrb[21].mxu1 }
0x176b   :  { %v4849_v8 = vadd.f32 %v3359_v48, %v1708_v56  ;;  %v4851_v61 = vadd.f32 %v3376_v1, %v1930_v57 }
0x176d   :  { %v3551_v9 = vpop.f32.mrb[22].mxu0  ;;  %v3591_v11 = vpop.f32.mrb[22].mxu1 }
0x176e   :  { %v4853_v13 = vadd.f32 %v3551_v9, %v3359_v48  ;;  %v1718_v14 = vpop.f32.mrb[23].mxu0  ;;  %v1940_v15 = vpop.f32.mrb[23].mxu1  ;;  %v1960_v19 = vadd.f32 %v3591_v11, %v3376_v1 }
0x176f   :  { %v4855_v0 = vadd.f32 %v3359_v48, %v1718_v14  ;;  %v4857_v49 = vadd.f32 %v3376_v1, %v1940_v15 }
0x1771   :  { %v2059_v20 = vpop.f32.mrb[24].mxu0 }
0x1772   :  { %v2064_v21 = vadd.f32 %v2059_v20, %v1731_v16  ;;  %v2061_v22 = vpop.f32.mrb[25].mxu0 }
0x1773   :  { %v2065_v25 = vadd.f32 %v2061_v22, %v1960_v19 }
0x1774   :  { %4067 = vtanh.f32 %v2064_v21  ;;  %v3382_v52 = vmul.f32 -1.442695, %v2064_v21 }
0x1775   :  { %4069 = vtanh.f32 %v2065_v25  ;;  %v3383_v26 = vmul.f32 -1.442695, %v2065_v25 }
0x1776   :  { %4071 = vpow2.f32 %v3382_v52 }
0x1777   :  { %4073 = vpow2.f32 %v3383_v26 }
0x177e   :  { %v4068_v27 = vpop.eup %4067 }
0x177f   :  { %v4070_v29 = vpop.eup %4069  ;;  %2086 = vrot.lane.b32.xlu1 %v4068_v27, %s4221_s17 }
0x1780   :  { %2101 = vrot.lane.b32.xlu0 %v4070_v29, %s4221_s17  ;;  %v4072_v33 = vpop.eup %4071 }
0x1781   :  { %v4074_v60 = vpop.eup %4073  ;;  %v2069_v36 = vadd.f32 1.0, %v4072_v33 }
0x1782   :  { %v2076_v39 = vadd.f32 1.0, %v4074_v60 }
0x1783   :  { %2081 = vrot.lane.b32.xlu1 %v3379_v31, %s4219_s30  ;;  %4075 = vrcp.f32 %v2069_v36 }
0x1784   :  { %2096 = vrot.lane.b32.xlu0 %v3380_v32, %s4219_s30  ;;  %4077 = vrcp.f32 %v2076_v39 }
0x178d   :  { %v4076_v40 = vpop.eup %4075 }
0x178e   :  { %v4078_v44 = vpop.eup %4077 }
0x17f1   :  { %v2087_v43 = vpop.permute.xlu1 %2086 }
0x17f2   :  { %v2089_v45 = vmul.f32 %v4076_v40, %v2087_v43  ;;  %v2102_v6 = vpop.permute.xlu0 %2101 }
0x17f3   :  { %v2104_v46 = vmul.f32 %v4078_v44, %v2102_v6 }
0x17f4   :  { %2091 = vrot.lane.b32.xlu1 %v2089_v45, %s4219_s30 }
0x17f5   :  { %2106 = vrot.lane.b32.xlu0 %v2104_v46, %s4219_s30  ;;  %v2082_v47 = vpop.permute.xlu1 %2081 }
0x17f6   :  { %v2097_v48 = vpop.permute.xlu0 %2096  ;;  %v2084_v1 = vmul.f32 %v4076_v40, %v2082_v47 }
0x17f7   :  { %v2099_v50 = vmul.f32 %v4078_v44, %v2097_v48 }
0x1866   :  { %v2092_v54 = vpop.permute.xlu1 %2091 }
0x1867   :  { %v2094_v62 = vadd.f32 %v2092_v54, %v2084_v1  ;;  %v2107_v63 = vpop.permute.xlu0 %2106 }
0x1868   :  { %v2109_v10 = vadd.f32 %v2107_v63, %v2099_v50 }
0x1869   :  { %4079 = vtanh.f32 %v2094_v62 }
0x186a   :  { %4081 = vtanh.f32 %v2109_v10 }
0x1873   :  { %v4080_v23 = vpop.eup %4079 }
0x1874   :  { %v4082_v4 = vpop.eup %4081  ;;  %2112 = vrot.lane.b32.xlu1 %v4080_v23, %s4221_s17 }
0x1875   :  { %2118 = vrot.lane.b32.xlu0 %v4082_v4, %s4221_s17 }
0x18e6   :  { %v2113_v17 = vpop.permute.xlu1 %2112 }
0x18e7   :  { %v4873_v28 = vmul.f32 %v4076_v40, %v2113_v17  ;;  %v2119_v30 = vpop.permute.xlu0 %2118 }
0x18e8   :  { %v4875_v56 = vmul.f32 %v4078_v44, %v2119_v30 }
0x18e9   :  { %2137 = vrot.lane.b32.xlu1 %v4873_v28, %s4219_s30 }
0x18ea   :  { %2141 = vrot.lane.b32.xlu0 %v4875_v56, %s4221_s17 }
0x195b   :  { %v2138_v57 = vpop.permute.xlu1 %2137 }
0x195c   :  { %v2142_v9 = vpop.permute.xlu0 %2141 }
0x195d   :  { %v2144_v11 = vsel %vm310_vm1, %v2138_v57, %v2142_v9 }
0x195e   :  { %3384 = vmatmul.mubr.msk.f32.vlgmr.msra.gmra.mrb[24].mxu1 %vm312_vm2, %v2144_v11 }
0x195f   :  { %3825 = vmatpush1.bf16.msra.mxu1 %v4735_v41  ;;  %2506 = vmatprep.mubr.f32.mxu1 %v4220_v35 }
0x1960   :  { %3827 = vmatprep.subr.bf16.mxu1 %v4737_v7 }
0x1963   :  { %3829 = vmatpush1.bf16.msra.mxu1 %v4755_v59 }
0x1964   :  { %3831 = vmatprep.subr.bf16.mxu1 %v4759_v53 }
0x1967   :  { %3833 = vmatpush1.bf16.msra.mxu1 %v4778_v37 }
0x1968   :  { %3835 = vmatprep.subr.bf16.mxu1 %v4782_v38 }
0x196b   :  { %3837 = vmatpush1.bf16.msra.mxu1 %v4795_v3 }
0x196c   :  { %3855 = vmatprep.subr.bf16.mxu1 %v4703_v51 }
0x1a31   :  { %v2214_v14 = vpop.f32.mrb[24].mxu1 }
0x1a32   :  { %v2219_v15 = vadd.f32 %v2214_v14, %v4831_v55  ;;  %v2216_v16 = vpop.f32.mrb[25].mxu1 }
0x1a33   :  { %v2220_v19 = vadd.f32 %v2216_v16, %v4857_v49 }
0x1a34   :  { %4083 = vtanh.f32 %v2219_v15  ;;  %v3385_v22 = vmul.f32 -1.442695, %v2219_v15 }
0x1a35   :  { %4085 = vtanh.f32 %v2220_v19  ;;  %v3386_v25 = vmul.f32 -1.442695, %v2220_v19 }
0x1a36   :  { %4087 = vpow2.f32 %v3385_v22 }
0x1a37   :  { %4089 = vpow2.f32 %v3386_v25 }
0x1a3e   :  { %v4084_v20 = vpop.eup %4083 }
0x1a3f   :  { %v4086_v21 = vpop.eup %4085  ;;  %2237 = vrot.lane.b32.xlu1 %v4084_v20, %s4221_s17 }
0x1a40   :  { %2248 = vrot.lane.b32.xlu0 %v4086_v21, %s4221_s17  ;;  %v4088_v27 = vpop.eup %4087 }
0x1a41   :  { %v4090_v29 = vpop.eup %4089  ;;  %v2224_v31 = vadd.f32 1.0, %v4088_v27 }
0x1a42   :  { %v2231_v32 = vadd.f32 1.0, %v4090_v29 }
0x1a43   :  { %4091 = vrcp.f32 %v2224_v31 }
0x1a44   :  { %4093 = vrcp.f32 %v2231_v32 }
0x1a4d   :  { %v4092_v55 = vpop.eup %4091 }
0x1a4e   :  { %v4094_v52 = vpop.eup %4093  ;;  %v2235_v36 = vmul.f32 %v4092_v55, %v2094_v62 }
0x1a4f   :  { %v2246_v40 = vmul.f32 %v4094_v52, %v2109_v10 }
0x1ab1   :  { %v2238_v49 = vpop.permute.xlu1 %2237 }
0x1ab2   :  { %v2240_v26 = vmul.f32 %v4092_v55, %v2238_v49  ;;  %v2249_v33 = vpop.permute.xlu0 %2248 }
0x1ab3   :  { %v2251_v60 = vmul.f32 %v4094_v52, %v2249_v33 }
0x1ab4   :  { %2242 = vrot.lane.b32.xlu1 %v2240_v26, %s4219_s30 }
0x1ab5   :  { %2253 = vrot.lane.b32.xlu0 %v2251_v60, %s4219_s30 }
0x1b26   :  { %v2243_v39 = vpop.permute.xlu1 %2242 }
0x1b27   :  { %v2245_v43 = vadd.f32 %v2243_v39, %v2235_v36  ;;  %v2254_v44 = vpop.permute.xlu0 %2253 }
0x1b28   :  { %v2256_v45 = vadd.f32 %v2254_v44, %v2246_v40 }
0x1b29   :  { %4095 = vtanh.f32 %v2245_v43 }
0x1b2a   :  { %4097 = vtanh.f32 %v2256_v45 }
0x1b33   :  { %v4096_v6 = vpop.eup %4095 }
0x1b34   :  { %v4098_v46 = vpop.eup %4097  ;;  %2259 = vrot.lane.b32.xlu1 %v4096_v6, %s4221_s17 }
0x1b35   :  { %2265 = vrot.lane.b32.xlu0 %v4098_v46, %s4221_s17 }
0x1ba6   :  { %v2260_v47 = vpop.permute.xlu1 %2259 }
0x1ba7   :  { %v4900_v48 = vmul.f32 %v4092_v55, %v2260_v47  ;;  %v2266_v1 = vpop.permute.xlu0 %2265 }
0x1ba8   :  { %v4902_v50 = vmul.f32 %v4094_v52, %v2266_v1 }
0x1ba9   :  { %2284 = vrot.lane.b32.xlu1 %v4900_v48, %s4219_s30 }
0x1baa   :  { %2288 = vrot.lane.b32.xlu0 %v4902_v50, %s4221_s17 }
0x1c1b   :  { %v2285_v54 = vpop.permute.xlu1 %2284 }
0x1c1c   :  { %v2289_v62 = vpop.permute.xlu0 %2288 }
0x1c1d   :  { %v2291_v63 = vsel %vm310_vm1, %v2285_v54, %v2289_v62 }
0x1c1e   :  { %3387 = vmatmul.mubr.msk.f32.vlgmr.msra.gmra.mrb[26].mxu0 %vm312_vm2, %v2291_v63 }
0x1c1f   :  { %3841 = vmatpush1.bf16.msra.mxu0 %v4735_v41  ;;  %2653 = vmatprep.mubr.f32.mxu0 %v4220_v35 }
0x1c20   :  { %3843 = vmatprep.subr.bf16.mxu0 %v4737_v7 }
0x1c23   :  { %3845 = vmatpush1.bf16.msra.mxu0 %v4755_v59 }
0x1c24   :  { %3847 = vmatprep.subr.bf16.mxu0 %v4759_v53 }
0x1c27   :  { %3849 = vmatpush1.bf16.msra.mxu0 %v4778_v37 }
0x1c28   :  { %3851 = vmatprep.subr.bf16.mxu0 %v4782_v38 }
0x1c2b   :  { %3853 = vmatpush1.bf16.msra.mxu0 %v4795_v3 }
0x1c2c   :  { %3871 = vmatprep.subr.bf16.mxu0 %v4703_v51 }
0x1cf1   :  { %v2361_v10 = vpop.f32.mrb[26].mxu0 }
0x1cf2   :  { %v2366_v23 = vadd.f32 %v2361_v10, %v4841_v18  ;;  %v2363_v4 = vpop.f32.mrb[27].mxu0 }
0x1cf3   :  { %v2367_v17 = vadd.f32 %v2363_v4, %v4847_v5 }
0x1cf4   :  { %4099 = vtanh.f32 %v2366_v23  ;;  %v3388_v9 = vmul.f32 -1.442695, %v2366_v23 }
0x1cf5   :  { %4101 = vtanh.f32 %v2367_v17  ;;  %v3389_v11 = vmul.f32 -1.442695, %v2367_v17 }
0x1cf6   :  { %4103 = vpow2.f32 %v3388_v9 }
0x1cf7   :  { %4105 = vpow2.f32 %v3389_v11 }
0x1cfe   :  { %v4100_v30 = vpop.eup %4099 }
0x1cff   :  { %v4102_v57 = vpop.eup %4101  ;;  %2384 = vrot.lane.b32.xlu1 %v4100_v30, %s4221_s17 }
0x1d00   :  { %2395 = vrot.lane.b32.xlu0 %v4102_v57, %s4221_s17  ;;  %v4104_v14 = vpop.eup %4103 }
0x1d01   :  { %v4106_v15 = vpop.eup %4105  ;;  %v2371_v16 = vadd.f32 1.0, %v4104_v14 }
0x1d02   :  { %v2378_v19 = vadd.f32 1.0, %v4106_v15 }
0x1d03   :  { %4107 = vrcp.f32 %v2371_v16 }
0x1d04   :  { %4109 = vrcp.f32 %v2378_v19 }
0x1d0d   :  { %v4108_v18 = vpop.eup %4107 }
0x1d0e   :  { %v4110_v20 = vpop.eup %4109  ;;  %v2382_v27 = vmul.f32 %v4108_v18, %v2245_v43 }
0x1d0f   :  { %v2393_v31 = vmul.f32 %v4110_v20, %v2256_v45 }
0x1d71   :  { %v2385_v5 = vpop.permute.xlu1 %2384 }
0x1d72   :  { %v2387_v21 = vmul.f32 %v4108_v18, %v2385_v5  ;;  %v2396_v22 = vpop.permute.xlu0 %2395 }
0x1d73   :  { %v2398_v25 = vmul.f32 %v4110_v20, %v2396_v22 }
0x1d74   :  { %2389 = vrot.lane.b32.xlu1 %v2387_v21, %s4219_s30 }
0x1d75   :  { %2400 = vrot.lane.b32.xlu0 %v2398_v25, %s4219_s30 }
0x1de6   :  { %v2390_v29 = vpop.permute.xlu1 %2389 }
0x1de7   :  { %v2392_v32 = vadd.f32 %v2390_v29, %v2382_v27  ;;  %v2401_v55 = vpop.permute.xlu0 %2400 }
0x1de8   :  { %v2403_v49 = vadd.f32 %v2401_v55, %v2393_v31 }
0x1de9   :  { %4111 = vtanh.f32 %v2392_v32 }
0x1dea   :  { %4113 = vtanh.f32 %v2403_v49 }
0x1df3   :  { %v4112_v52 = vpop.eup %4111 }
0x1df4   :  { %v4114_v26 = vpop.eup %4113  ;;  %2406 = vrot.lane.b32.xlu1 %v4112_v52, %s4221_s17 }
0x1df5   :  { %2412 = vrot.lane.b32.xlu0 %v4114_v26, %s4221_s17 }
0x1e66   :  { %v2407_v33 = vpop.permute.xlu1 %2406 }
0x1e67   :  { %v4927_v60 = vmul.f32 %v4108_v18, %v2407_v33  ;;  %v2413_v36 = vpop.permute.xlu0 %2412 }
0x1e68   :  { %v4929_v39 = vmul.f32 %v4110_v20, %v2413_v36 }
0x1e69   :  { %2431 = vrot.lane.b32.xlu1 %v4927_v60, %s4219_s30 }
0x1e6a   :  { %2435 = vrot.lane.b32.xlu0 %v4929_v39, %s4221_s17 }
0x1edb   :  { %v2432_v40 = vpop.permute.xlu1 %2431 }
0x1edc   :  { %v2436_v43 = vpop.permute.xlu0 %2435 }
0x1edd   :  { %v2438_v44 = vsel %vm310_vm1, %v2432_v40, %v2436_v43 }
0x1ede   :  { %3390 = vmatmul.mubr.msk.f32.vlgmr.msra.gmra.mrb[26].mxu1 %vm312_vm2, %v2438_v44 }
0x1edf   :  { %3857 = vmatpush1.bf16.msra.mxu1 %v4735_v41  ;;  %2788 = vmatprep.mubr.f32.mxu1 %v4220_v35 }
0x1ee0   :  { %3859 = vmatprep.subr.bf16.mxu1 %v4737_v7 }
0x1ee3   :  { %3861 = vmatpush1.bf16.msra.mxu1 %v4755_v59 }
0x1ee4   :  { %3863 = vmatprep.subr.bf16.mxu1 %v4759_v53 }
0x1ee7   :  { %3865 = vmatpush1.bf16.msra.mxu1 %v4778_v37 }
0x1ee8   :  { %3867 = vmatprep.subr.bf16.mxu1 %v4782_v38 }
0x1eeb   :  { %3869 = vmatpush1.bf16.msra.mxu1 %v4795_v3 }
0x1eec   :  { %3887 = vmatprep.subr.bf16.mxu1 %v4703_v51 }
0x1fb1   :  { %v2508_v45 = vpop.f32.mrb[26].mxu1 }
0x1fb2   :  { %v2513_v6 = vadd.f32 %v2508_v45, %v4837_v12  ;;  %v2510_v46 = vpop.f32.mrb[27].mxu1 }
0x1fb3   :  { %v2514_v47 = vadd.f32 %v2510_v46, %v4851_v61 }
0x1fb4   :  { %4115 = vtanh.f32 %v2513_v6  ;;  %v3391_v62 = vmul.f32 -1.442695, %v2513_v6 }
0x1fb5   :  { %4117 = vtanh.f32 %v2514_v47  ;;  %v3392_v63 = vmul.f32 -1.442695, %v2514_v47 }
0x1fb6   :  { %4119 = vpow2.f32 %v3391_v62 }
0x1fb7   :  { %4121 = vpow2.f32 %v3392_v63 }
0x1fbe   :  { %v4116_v1 = vpop.eup %4115 }
0x1fbf   :  { %v4118_v54 = vpop.eup %4117  ;;  %2531 = vrot.lane.b32.xlu1 %v4116_v1, %s4221_s17 }
0x1fc0   :  { %2542 = vrot.lane.b32.xlu0 %v4118_v54, %s4221_s17  ;;  %v4120_v10 = vpop.eup %4119 }
0x1fc1   :  { %v4122_v51 = vpop.eup %4121  ;;  %v2518_v23 = vadd.f32 1.0, %v4120_v10 }
0x1fc2   :  { %v2525_v4 = vadd.f32 1.0, %v4122_v51 }
0x1fc3   :  { %4123 = vrcp.f32 %v2518_v23 }
0x1fc4   :  { %4125 = vrcp.f32 %v2525_v4 }
0x1fcd   :  { %v4124_v12 = vpop.eup %4123 }
0x1fce   :  { %v4126_v17 = vpop.eup %4125  ;;  %v2529_v11 = vmul.f32 %v4124_v12, %v2392_v32 }
0x1fcf   :  { %v2540_v15 = vmul.f32 %v4126_v17, %v2403_v49 }
0x2031   :  { %v2532_v61 = vpop.permute.xlu1 %2531 }
0x2032   :  { %v2534_v30 = vmul.f32 %v4124_v12, %v2532_v61  ;;  %v2543_v57 = vpop.permute.xlu0 %2542 }
0x2033   :  { %v2545_v9 = vmul.f32 %v4126_v17, %v2543_v57 }
0x2034   :  { %2536 = vrot.lane.b32.xlu1 %v2534_v30, %s4219_s30 }
0x2035   :  { %2547 = vrot.lane.b32.xlu0 %v2545_v9, %s4219_s30 }
0x20a6   :  { %v2537_v14 = vpop.permute.xlu1 %2536 }
0x20a7   :  { %v2539_v16 = vadd.f32 %v2537_v14, %v2529_v11  ;;  %v2548_v19 = vpop.permute.xlu0 %2547 }
0x20a8   :  { %v2550_v18 = vadd.f32 %v2548_v19, %v2540_v15 }
0x20a9   :  { %4127 = vtanh.f32 %v2539_v16 }
0x20aa   :  { %4129 = vtanh.f32 %v2550_v18 }
0x20b3   :  { %v4128_v5 = vpop.eup %4127 }
0x20b4   :  { %v4130_v20 = vpop.eup %4129  ;;  %2553 = vrot.lane.b32.xlu1 %v4128_v5, %s4221_s17 }
0x20b5   :  { %2559 = vrot.lane.b32.xlu0 %v4130_v20, %s4221_s17 }
0x2126   :  { %v2554_v21 = vpop.permute.xlu1 %2553 }
0x2127   :  { %v4954_v22 = vmul.f32 %v4124_v12, %v2554_v21  ;;  %v2560_v25 = vpop.permute.xlu0 %2559 }
0x2128   :  { %v4956_v27 = vmul.f32 %v4126_v17, %v2560_v25 }
0x2129   :  { %2578 = vrot.lane.b32.xlu1 %v4954_v22, %s4219_s30 }
0x212a   :  { %2582 = vrot.lane.b32.xlu0 %v4956_v27, %s4221_s17 }
0x219b   :  { %v2579_v29 = vpop.permute.xlu1 %2578 }
0x219c   :  { %v2583_v31 = vpop.permute.xlu0 %2582 }
0x219d   :  { %v2585_v32 = vsel %vm310_vm1, %v2579_v29, %v2583_v31 }
0x219e   :  { %3393 = vmatmul.mubr.msk.f32.vlgmr.msra.gmra.mrb[28].mxu0 %vm312_vm2, %v2585_v32 }
0x219f   :  { %3873 = vmatpush1.bf16.msra.mxu0 %v4735_v41  ;;  %2923 = vmatprep.mubr.f32.mxu0 %v4220_v35 }
0x21a0   :  { %3875 = vmatprep.subr.bf16.mxu0 %v4737_v7 }
0x21a3   :  { %3877 = vmatpush1.bf16.msra.mxu0 %v4755_v59 }
0x21a4   :  { %3879 = vmatprep.subr.bf16.mxu0 %v4759_v53 }
0x21a7   :  { %3881 = vmatpush1.bf16.msra.mxu0 %v4778_v37 }
0x21a8   :  { %3883 = vmatprep.subr.bf16.mxu0 %v4782_v38 }
0x21ab   :  { %3885 = vmatpush1.bf16.msra.mxu0 %v4795_v3 }
0x2271   :  { %v2655_v55 = vpop.f32.mrb[28].mxu0 }
0x2272   :  { %v2660_v49 = vadd.f32 %v2655_v55, %v4849_v8  ;;  %v2657_v52 = vpop.f32.mrb[29].mxu0 }
0x2273   :  { %v2661_v26 = vadd.f32 %v2657_v52, %v4839_v42 }
0x2274   :  { %4131 = vtanh.f32 %v2660_v49  ;;  %v3394_v40 = vmul.f32 -1.442695, %v2660_v49 }
0x2275   :  { %4133 = vtanh.f32 %v2661_v26  ;;  %v3395_v43 = vmul.f32 -1.442695, %v2661_v26 }
0x2276   :  { %4135 = vpow2.f32 %v3394_v40 }
0x2277   :  { %4137 = vpow2.f32 %v3395_v43 }
0x227e   :  { %v4132_v33 = vpop.eup %4131 }
0x227f   :  { %v4134_v36 = vpop.eup %4133  ;;  %2678 = vrot.lane.b32.xlu1 %v4132_v33, %s4221_s17 }
0x2280   :  { %2689 = vrot.lane.b32.xlu0 %v4134_v36, %s4221_s17  ;;  %v4136_v44 = vpop.eup %4135 }
0x2281   :  { %v4138_v45 = vpop.eup %4137  ;;  %v2665_v6 = vadd.f32 1.0, %v4136_v44 }
0x2282   :  { %v2672_v46 = vadd.f32 1.0, %v4138_v45 }
0x2283   :  { %4139 = vrcp.f32 %v2665_v6 }
0x2284   :  { %4141 = vrcp.f32 %v2672_v46 }
0x228d   :  { %v4140_v8 = vpop.eup %4139 }
0x228e   :  { %v4142_v47 = vpop.eup %4141  ;;  %v2676_v63 = vmul.f32 %v4140_v8, %v2539_v16 }
0x228f   :  { %v2687_v51 = vmul.f32 %v4142_v47, %v2550_v18 }
0x22f1   :  { %v2679_v42 = vpop.permute.xlu1 %2678 }
0x22f2   :  { %v2681_v1 = vmul.f32 %v4140_v8, %v2679_v42  ;;  %v2690_v54 = vpop.permute.xlu0 %2689 }
0x22f3   :  { %v2692_v62 = vmul.f32 %v4142_v47, %v2690_v54 }
0x22f4   :  { %2683 = vrot.lane.b32.xlu1 %v2681_v1, %s4219_s30 }
0x22f5   :  { %2694 = vrot.lane.b32.xlu0 %v2692_v62, %s4219_s30 }
0x2366   :  { %v2684_v10 = vpop.permute.xlu1 %2683 }
0x2367   :  { %v2686_v23 = vadd.f32 %v2684_v10, %v2676_v63  ;;  %v2695_v4 = vpop.permute.xlu0 %2694 }
0x2368   :  { %v2697_v12 = vadd.f32 %v2695_v4, %v2687_v51 }
0x2369   :  { %4143 = vtanh.f32 %v2686_v23 }
0x236a   :  { %4145 = vtanh.f32 %v2697_v12 }
0x2373   :  { %v4144_v61 = vpop.eup %4143 }
0x2374   :  { %v4146_v17 = vpop.eup %4145  ;;  %2700 = vrot.lane.b32.xlu1 %v4144_v61, %s4221_s17 }
0x2375   :  { %2706 = vrot.lane.b32.xlu0 %v4146_v17, %s4221_s17 }
0x23e6   :  { %v2701_v30 = vpop.permute.xlu1 %2700 }
0x23e7   :  { %v4980_v57 = vmul.f32 %v4140_v8, %v2701_v30  ;;  %v2707_v9 = vpop.permute.xlu0 %2706 }
0x23e8   :  { %v4982_v11 = vmul.f32 %v4142_v47, %v2707_v9 }
0x23e9   :  { %2713 = vrot.lane.b32.xlu1 %v4980_v57, %s4219_s30 }
0x23ea   :  { %2717 = vrot.lane.b32.xlu0 %v4982_v11, %s4221_s17 }
0x245b   :  { %v2714_v14 = vpop.permute.xlu1 %2713 }
0x245c   :  { %v2718_v15 = vpop.permute.xlu0 %2717 }
0x245d   :  { %v2720_v16 = vsel %vm310_vm1, %v2714_v14, %v2718_v15 }
0x245e   :  { %3396 = vmatmul.mubr.msk.f32.vlgmr.msra.gmra.mrb[28].mxu1 %vm312_vm2, %v2720_v16 }
0x245f   :  { %3889 = vmatpush1.bf16.msra.mxu1 %v4735_v41  ;;  %3058 = vmatprep.mubr.f32.mxu1 %v4220_v35 }
0x2460   :  { %3891 = vmatprep.subr.bf16.mxu1 %v4737_v7 }
0x2463   :  { %3893 = vmatpush1.bf16.msra.mxu1 %v4755_v59 }
0x2464   :  { %3895 = vmatprep.subr.bf16.mxu1 %v4759_v53 }
0x2467   :  { %3897 = vmatpush1.bf16.msra.mxu1 %v4778_v37 }
0x2468   :  { %3899 = vmatprep.subr.bf16.mxu1 %v4782_v38 }
0x246b   :  { %3901 = vmatpush1.bf16.msra.mxu1 %v4795_v3 }
0x2531   :  { %v2790_v19 = vpop.f32.mrb[28].mxu1 }
0x2532   :  { %v2795_v18 = vadd.f32 %v2790_v19, %v4845_v34  ;;  %v2792_v5 = vpop.f32.mrb[29].mxu1 }
0x2533   :  { %v2796_v41 = vadd.f32 %v2792_v5, %v4843_v24 }
0x2534   :  { %4147 = vtanh.f32 %v2795_v18  ;;  %v3397_v59 = vmul.f32 -1.442695, %v2795_v18 }
0x2535   :  { %4149 = vtanh.f32 %v2796_v41  ;;  %v3398_v53 = vmul.f32 -1.442695, %v2796_v41 }
0x2536   :  { %4151 = vpow2.f32 %v3397_v59 }
0x2537   :  { %4153 = vpow2.f32 %v3398_v53 }
0x253e   :  { %v4148_v20 = vpop.eup %4147 }
0x253f   :  { %v4150_v7 = vpop.eup %4149  ;;  %2813 = vrot.lane.b32.xlu1 %v4148_v20, %s4221_s17 }
0x2540   :  { %2824 = vrot.lane.b32.xlu0 %v4150_v7, %s4221_s17  ;;  %v4152_v37 = vpop.eup %4151 }
0x2541   :  { %v4154_v38 = vpop.eup %4153  ;;  %v2800_v3 = vadd.f32 1.0, %v4152_v37 }
0x2542   :  { %v2807_v21 = vadd.f32 1.0, %v4154_v38 }
0x2543   :  { %4155 = vrcp.f32 %v2800_v3 }
0x2544   :  { %4157 = vrcp.f32 %v2807_v21 }
0x254d   :  { %v4156_v34 = vpop.eup %4155 }
0x254e   :  { %v4158_v25 = vpop.eup %4157  ;;  %v2811_v55 = vmul.f32 %v4156_v34, %v2686_v23 }
0x254f   :  { %v2822_v52 = vmul.f32 %v4158_v25, %v2697_v12 }
0x25b1   :  { %v2814_v24 = vpop.permute.xlu1 %2813 }
0x25b2   :  { %v2816_v29 = vmul.f32 %v4156_v34, %v2814_v24  ;;  %v2825_v31 = vpop.permute.xlu0 %2824 }
0x25b3   :  { %v2827_v32 = vmul.f32 %v4158_v25, %v2825_v31 }
0x25b4   :  { %2818 = vrot.lane.b32.xlu1 %v2816_v29, %s4219_s30 }
0x25b5   :  { %2829 = vrot.lane.b32.xlu0 %v2827_v32, %s4219_s30 }
0x2626   :  { %v2819_v49 = vpop.permute.xlu1 %2818 }
0x2627   :  { %v2821_v26 = vadd.f32 %v2819_v49, %v2811_v55  ;;  %v2830_v33 = vpop.permute.xlu0 %2829  ;;  %v4222_v49 = vmov 0  }
0x2628   :  { %v2832_v36 = vadd.f32 %v2830_v33, %v2822_v52  ;;  %3937 = vset.pattern.permute.xlu1 %v4222_v49  ;;  %3938 = vset.pattern.permute.xlu0 %v4222_v49 }
0x2629   :  { %4159 = vtanh.f32 %v2821_v26 }
0x262a   :  { %4161 = vtanh.f32 %v2832_v36 }
0x2633   :  { %v4160_v40 = vpop.eup %4159 }
0x2634   :  { %v4162_v43 = vpop.eup %4161  ;;  %2835 = vrot.lane.b32.xlu1 %v4160_v40, %s4221_s17 }
0x2635   :  { %2841 = vrot.lane.b32.xlu0 %v4162_v43, %s4221_s17 }
0x26a6   :  { %v2836_v44 = vpop.permute.xlu1 %2835 }
0x26a7   :  { %v5006_v45 = vmul.f32 %v4156_v34, %v2836_v44  ;;  %v2842_v6 = vpop.permute.xlu0 %2841 }
0x26a8   :  { %v5008_v46 = vmul.f32 %v4158_v25, %v2842_v6 }
0x26a9   :  { %2848 = vrot.lane.b32.xlu1 %v5006_v45, %s4219_s30 }
0x26aa   :  { %2852 = vrot.lane.b32.xlu0 %v5008_v46, %s4221_s17 }
0x271b   :  { %v2849_v8 = vpop.permute.xlu1 %2848 }
0x271c   :  { %v2853_v42 = vpop.permute.xlu0 %2852 }
0x271d   :  { %v2855_v47 = vsel %vm310_vm1, %v2849_v8, %v2853_v42 }
0x271e   :  { %3399 = vmatmul.mubr.msk.f32.vlgmr.msra.gmra.mrb[30].mxu0 %vm312_vm2, %v2855_v47 }
0x271f   :  { %3600 = vmatprep.mubr.msk.f32.mxu0 %vm4224_vm11, %v4220_v35 }
0x27f1   :  { %v2925_v1 = vpop.f32.mrb[30].mxu0 }
0x27f2   :  { %v2930_v54 = vadd.f32 %v2925_v1, %v4855_v0  ;;  %v2927_v62 = vpop.f32.mrb[31].mxu0 }
0x27f3   :  { %v2931_v63 = vadd.f32 %v2927_v62, %v4833_v58 }
0x27f4   :  { %4163 = vtanh.f32 %v2930_v54  ;;  %v3400_v23 = vmul.f32 -1.442695, %v2930_v54 }
0x27f5   :  { %4165 = vtanh.f32 %v2931_v63  ;;  %v3401_v4 = vmul.f32 -1.442695, %v2931_v63 }
0x27f6   :  { %4167 = vpow2.f32 %v3400_v23 }
0x27f7   :  { %4169 = vpow2.f32 %v3401_v4 }
0x27fe   :  { %v4164_v10 = vpop.eup %4163 }
0x27ff   :  { %v4166_v51 = vpop.eup %4165  ;;  %2948 = vrot.lane.b32.xlu1 %v4164_v10, %s4221_s17 }
0x2800   :  { %2959 = vrot.lane.b32.xlu0 %v4166_v51, %s4221_s17  ;;  %v4168_v12 = vpop.eup %4167 }
0x2801   :  { %v4170_v61 = vpop.eup %4169  ;;  %v2935_v17 = vadd.f32 1.0, %v4168_v12 }
0x2802   :  { %v2942_v30 = vadd.f32 1.0, %v4170_v61 }
0x2803   :  { %4171 = vrcp.f32 %v2935_v17 }
0x2804   :  { %4173 = vrcp.f32 %v2942_v30 }
0x280d   :  { %v4172_v0 = vpop.eup %4171 }
0x280e   :  { %v4174_v9 = vpop.eup %4173  ;;  %v2946_v19 = vmul.f32 %v4172_v0, %v2821_v26 }
0x280f   :  { %v2957_v5 = vmul.f32 %v4174_v9, %v2832_v36 }
0x2871   :  { %v2949_v58 = vpop.permute.xlu1 %2948 }
0x2872   :  { %v2951_v14 = vmul.f32 %v4172_v0, %v2949_v58  ;;  %v2960_v15 = vpop.permute.xlu0 %2959 }
0x2873   :  { %v2962_v16 = vmul.f32 %v4174_v9, %v2960_v15  ;;  %v3117_v15 = vld [vmem:[%s5136_s6] sm:$0xff] }
0x2874   :  { %2953 = vrot.lane.b32.xlu1 %v2951_v14, %s4219_s30 }
0x2875   :  { %2964 = vrot.lane.b32.xlu0 %v2962_v16, %s4219_s30  ;;  %v3118_v16 = vld [vmem:[%s5136_s6 + $0x8] sm:$0xff] }
0x28e6   :  { %v2954_v18 = vpop.permute.xlu1 %2953 }
0x28e7   :  { %v5022_v41 = vadd.f32 %v2954_v18, %v2946_v19  ;;  %v2965_v20 = vpop.permute.xlu0 %2964  ;;  %v3121_v19 = vld [vmem:[%s5136_s6 + $0x20] sm:$0xff]  ;;  %v4223_v18 = vmov 0.0|0.0  }
0x28e8   :  { %v5024_v7 = vadd.f32 %v2965_v20, %v2957_v5  ;;  %3908 = vmatprep.subr.bf16.mxu1 %v4223_v18  ;;  %3902 = vmatprep.subr.bf16.mxu0 %v4223_v18  ;;  %v3909_v5 = vpack.c.bf16 %v3118_v16, %v3117_v15  ;;  %v3119_v20 = vld [vmem:[%s5136_s6 + $0x10] sm:$0xff] }
0x28e9   :  { %4175 = vtanh.f32 %v5022_v41 }
0x28ea   :  { %4177 = vtanh.f32 %v5024_v7 }
0x28f3   :  { %v4176_v59 = vpop.eup %4175 }
0x28f4   :  { %v4178_v53 = vpop.eup %4177  ;;  %2970 = vrot.lane.b32.xlu1 %v4176_v59, %s4221_s17 }
0x28f5   :  { %2976 = vrot.lane.b32.xlu0 %v4178_v53, %s4221_s17  ;;  %v3123_v53 = vld [vmem:[%s5136_s6 + $0x30] sm:$0xff] }
0x2966   :  { %v2971_v37 = vpop.permute.xlu1 %2970 }
0x2967   :  { %v5030_v38 = vmul.f32 %v4172_v0, %v2971_v37  ;;  %v2977_v3 = vpop.permute.xlu0 %2976  ;;  %v3124_v37 = vld [vmem:[%s5136_s6 + $0x38] sm:$0xff] }
0x2968   :  { %v5032_v21 = vmul.f32 %v4174_v9, %v2977_v3 }
0x2969   :  { %2983 = vrot.lane.b32.xlu1 %v5030_v38, %s4219_s30 }
0x296a   :  { %2987 = vrot.lane.b32.xlu0 %v5032_v21, %s4221_s17 }
0x29db   :  { %v2984_v34 = vpop.permute.xlu1 %2983 }
0x29dc   :  { %v2988_v24 = vpop.permute.xlu0 %2987 }
0x29dd   :  { %v2990_v25 = vsel %vm310_vm1, %v2984_v34, %v2988_v24  ;;  %v3906_v34 = vpack.c.bf16 %v3124_v37, %v3123_v53 }
0x29de   :  { %3402 = vmatmul.mubr.msk.f32.vlgmr.msra.gmra.mrb[30].mxu1 %vm312_vm2, %v2990_v25 }
0x29df   :  { %3611 = vmatprep.mubr.msk.f32.mxu1 %vm4224_vm11, %v4220_v35  ;;  %3910 = vmatpush3.bf16.msra.mxu1 %v3909_v5 }
0x29e0   :  { %3911 = vmatprep.subr.bf16.mxu1 %v4223_v18 }
0x2ab1   :  { %v3060_v29 = vpop.f32.mrb[30].mxu1 }
0x2ab2   :  { %v3065_v31 = vadd.f32 %v3060_v29, %v4853_v13  ;;  %v3062_v32 = vpop.f32.mrb[31].mxu1 }
0x2ab3   :  { %v3066_v55 = vadd.f32 %v3062_v32, %v4835_v2  ;;  %v27_v2 = vld [vmem:[%s5130_s0] sm:$0xff] }
0x2ab4   :  { %4179 = vtanh.f32 %v3065_v31  ;;  %v3403_v33 = vmul.f32 -1.442695, %v3065_v31  ;;  %vm2122_vm3 = vcmp.eq.s32.totalorder %v27_v2, 0  ;;  %vm2129_vm4 = vcmp.eq.s32.totalorder %v27_v2, 7 }
0x2ab5   :  { %4181 = vtanh.f32 %v3066_v55  ;;  %v3404_v36 = vmul.f32 -1.442695, %v3066_v55  ;;  %v2123_v62 = vsel %vm2122_vm3, 1, %v4222_v49  ;;  %v2130_v63 = vsel %vm2129_vm4, 1, %v4222_v49 }
0x2ab6   :  { %4183 = vpow2.f32 %v3403_v33  ;;  %vm2269_vm5 = vcmp.eq.s32.totalorder %v27_v2, 1  ;;  %vm2416_vm6 = vcmp.eq.s32.totalorder %v27_v2, 2  ;;  %vm2276_vm7 = vcmp.eq.s32.totalorder %v27_v2, 6 }
0x2ab7   :  { %4185 = vpow2.f32 %v3404_v36  ;;  %v2270_v10 = vsel %vm2269_vm5, 1, %v4222_v49  ;;  %v2417_v51 = vsel %vm2416_vm6, 1, %v4222_v49  ;;  %vm2563_vm8 = vcmp.eq.s32.totalorder %v27_v2, 3 }
0x2ab8   :  { %v2277_v23 = vsel %vm2276_vm7, 1, %v4222_v49  ;;  %v2564_v4 = vsel %vm2563_vm8, 1, %v4222_v49  ;;  %vm2423_vm9 = vcmp.eq.s32.totalorder %v27_v2, 5  ;;  %vm2570_vm10 = vcmp.eq.s32.totalorder %v27_v2, 4 }
0x2ab9   :  { %v2424_v12 = vsel %vm2423_vm9, 1, %v4222_v49  ;;  %v2571_v61 = vsel %vm2570_vm10, 1, %v4222_v49  ;;  %vm3282_vm5 = vcmask 123904  }
0x2abe   :  { %v4180_v52 = vpop.eup %4179 }
0x2abf   :  { %v4182_v26 = vpop.eup %4181  ;;  %3083 = vrot.lane.b32.xlu1 %v4180_v52, %s4221_s17 }
0x2ac0   :  { %3094 = vrot.lane.b32.xlu0 %v4182_v26, %s4221_s17  ;;  %v4184_v40 = vpop.eup %4183 }
0x2ac1   :  { %v4186_v13 = vpop.eup %4185  ;;  %v3070_v43 = vadd.f32 1.0, %v4184_v40 }
0x2ac2   :  { %v3077_v44 = vadd.f32 1.0, %v4186_v13 }
0x2ac3   :  { %4187 = vrcp.f32 %v3070_v43 }
0x2ac4   :  { %4189 = vrcp.f32 %v3077_v44 }
0x2acd   :  { %v5047_v6 = vpop.eup %4187 }
0x2ace   :  { %v5049_v42 = vpop.eup %4189  ;;  %v3081_v17 = vmul.f32 %v5047_v6, %v5022_v41  ;;  %v3122_v41 = vld [vmem:[%s5136_s6 + $0x28] sm:$0xff] }
0x2acf   :  { %v3092_v0 = vmul.f32 %v5049_v42, %v5024_v7  ;;  %v3120_v7 = vld [vmem:[%s5136_s6 + $0x18] sm:$0xff]  ;;  %v3903_v59 = vpack.c.bf16 %v3122_v41, %v3121_v19 }
0x2ad0   :  { %v3912_v3 = vpack.c.bf16 %v3120_v7, %v3119_v20 }
0x2ad1   :  { %3904 = vmatpush3.bf16.msra.mxu0 %v3903_v59 }
0x2ad2   :  { %3905 = vmatprep.subr.bf16.mxu0 %v4223_v18  ;;  %3913 = vmatpush3.bf16.msra.mxu1 %v3912_v3 }
0x2ad5   :  { %3907 = vmatpush3.bf16.msra.mxu0 %v3906_v34 }
0x2b31   :  { %v3084_v8 = vpop.permute.xlu1 %3083 }
0x2b32   :  { %v3086_v47 = vmul.f32 %v5047_v6, %v3084_v8  ;;  %v3095_v1 = vpop.permute.xlu0 %3094 }
0x2b33   :  { %v3097_v54 = vmul.f32 %v5049_v42, %v3095_v1 }
0x2b34   :  { %3088 = vrot.lane.b32.xlu1 %v3086_v47, %s4219_s30 }
0x2b35   :  { %3099 = vrot.lane.b32.xlu0 %v3097_v54, %s4219_s30 }
0x2b38   :  { %2125 = vperm.xlu1 %3937, %v2123_v62  }
0x2b39   :  { %2132 = vperm.xlu0 %3938, %v2130_v63  }
0x2b3c   :  { %2272 = vperm.xlu1 %3937, %v2270_v10  }
0x2b3d   :  { %2419 = vperm.xlu0 %3938, %v2417_v51  }
0x2b40   :  { %2279 = vperm.xlu1 %3937, %v2277_v23  }
0x2b41   :  { %2566 = vperm.xlu0 %3938, %v2564_v4  }
0x2b44   :  { %2426 = vperm.xlu1 %3937, %v2424_v12  }
0x2b48   :  { %2573 = vperm.xlu1 %3937, %v2571_v61  }
0x2ba6   :  { %v3089_v30 = vpop.permute.xlu1 %3088 }
0x2ba7   :  { %v3091_v58 = vadd.f32 %v3089_v30, %v3081_v17  ;;  %v3100_v9 = vpop.permute.xlu0 %3099 }
0x2ba8   :  { %v3102_v14 = vadd.f32 %v3100_v9, %v3092_v0 }
0x2ba9   :  { %4191 = vtanh.f32 %v3091_v58 }
0x2baa   :  { %4193 = vtanh.f32 %v3102_v14 }
0x2bb3   :  { %v4192_v24 = vpop.eup %4191 }
0x2bb4   :  { %v4194_v25 = vpop.eup %4193  ;;  %3105 = vrot.lane.b32.xlu0 %v4192_v24, %s4221_s17 }
0x2bb5   :  { %3111 = vrot.lane.b32.xlu1 %v4194_v25, %s4221_s17 }
0x2bb7   :  { %v2126_v29 = vpop.permute.xlu1 %2125 }
0x2bb8   :  { %v2133_v55 = vpop.permute.xlu0 %2132  ;;  %vm2127_vm12 = vcmp.eq.s32.totalorder %v2126_v29, 1 }
0x2bb9   :  { %vm2134_vm13 = vcmp.eq.s32.totalorder %v2133_v55, 1  ;;  %v2128_v33 = vsel %vm2127_vm12, %v4873_v28, 0.0 }
0x2bba   :  { %v2135_v36 = vsel %vm2134_vm13, %v4875_v56, 0.0 }
0x2bbb   :  { %v2273_v31 = vpop.permute.xlu1 %2272 }
0x2bbc   :  { %v2420_v35 = vpop.permute.xlu0 %2419  ;;  %vm2274_vm14 = vcmp.eq.s32.totalorder %v2273_v31, 1 }
0x2bbd   :  { %v2275_v40 = vsel %vm2274_vm14, %v4900_v48, %v2128_v33  ;;  %vm2421_vm2 = vcmp.eq.s32.totalorder %v2420_v35, 1 }
0x2bbe   :  { %v2422_v44 = vsel %vm2421_vm2, %v4927_v60, %v2275_v40 }
0x2bbf   :  { %v2280_v32 = vpop.permute.xlu1 %2279 }
0x2bc0   :  { %vm2281_vm15 = vcmp.eq.s32.totalorder %v2280_v32, 1  ;;  %v2567_v26 = vpop.permute.xlu0 %2566 }
0x2bc1   :  { %v2282_v13 = vsel %vm2281_vm15, %v4902_v50, %v2135_v36  ;;  %vm2568_vm4 = vcmp.eq.s32.totalorder %v2567_v26, 1 }
0x2bc2   :  { %v2569_v28 = vsel %vm2568_vm4, %v4954_v22, %v2422_v44 }
0x2bc3   :  { %v2427_v49 = vpop.permute.xlu1 %2426 }
0x2bc4   :  { %vm2428_vm0 = vcmp.eq.s32.totalorder %v2427_v49, 1 }
0x2bc5   :  { %v2429_v43 = vsel %vm2428_vm0, %v4929_v39, %v2282_v13 }
0x2bc7   :  { %v2574_v52 = vpop.permute.xlu1 %2573 }
0x2bc8   :  { %vm2575_vm3 = vcmp.eq.s32.totalorder %v2574_v52, 1 }
0x2bc9   :  { %v2576_v2 = vsel %vm2575_vm3, %v4956_v27, %v2429_v43  ;;  %v2710_v8 = vsel %vm2575_vm3, %v4980_v57, %v2569_v28 }
0x2bca   :  { %v2711_v56 = vsel %vm2568_vm4, %v4982_v11, %v2576_v2  ;;  %v2845_v48 = vsel %vm2428_vm0, %v5006_v45, %v2710_v8 }
0x2bcb   :  { %v2846_v47 = vsel %vm2421_vm2, %v5008_v46, %v2711_v56  ;;  %v2980_v60 = vsel %vm2281_vm15, %v5030_v38, %v2845_v48  ;;  %v3407_v38 = vld [vmem:[%s5136_s6 + $0x40] ss:$0 sm:$0xff] }
0x2bcc   :  { %v2981_v22 = vsel %vm2274_vm14, %v5032_v21, %v2846_v47 }
0x2c26   :  { %v3106_v1 = vpop.permute.xlu0 %3105 }
0x2c27   :  { %v3108_v50 = vmul.f32 %v5047_v6, %v3106_v1  ;;  %v3112_v54 = vpop.permute.xlu1 %3111 }
0x2c28   :  { %v3114_v39 = vmul.f32 %v5049_v42, %v3112_v54 }
0x2c29   :  { %v3115_v27 = vsel %vm2134_vm13, %v3108_v50, %v2980_v60 }
0x2c2a   :  { %3202 = vrot.lane.b32.xlu1 %v3115_v27, %s4219_s30  ;;  %v3116_v57 = vsel %vm2127_vm12, %v3114_v39, %v2981_v22 }
0x2c2b   :  { %3127 = vrot.lane.b32.xlu0 %v3116_v57, %s4219_s30  ;;  %s4195_s30 = scalar_lea.vmem %s3291_s22, 32 }
0x2c2c   :  { %p4196_p0 = scmp.ne.s32.totalorder %s3291_s22, %s4195_s30  ;;  %p4201_p2 = scmp.lt.s32.totalorder %s4195_s30, %s4195_s30 }
0x2c2e   :  { %p4202_p3 = por %p4201_p2, %p4200_p1 }
0x2c30   :  { %p4203_p4 = pnand %p4202_p3, %p4196_p0 }
0x2c9c   :  { %v3203_v11 = vpop.permute.xlu1 %3202 }
0x2c9d   :  { %v3128_v45 = vpop.permute.xlu0 %3127  ;;  %3612 = vmatmul.mubr.msk.f32.vlgmr.msra.gmra.mrb[32].mxu1 %vm310_vm1, %v3203_v11 }
0x2c9e   :  { %3601 = vmatmul.mubr.msk.f32.vlgmr.msra.gmra.mrb[32].mxu0 %vm310_vm1, %v3128_v45 }
0x2d70   :  { %v3272_v46 = vpop.f32.mrb[32].mxu1 }
0x2d71   :  { %v3197_v6 = vpop.f32.mrb[32].mxu0  ;;  %v3613_v42 = vpop.f32.mrb[33].mxu1 }
0x2d72   :  { %v3273_v21 = vadd.f32 %v3272_v46, %v3197_v6  ;;  %v3602_v62 = vpop.f32.mrb[33].mxu0 }
0x2d74   :  { %v3280_v63 = vadd.f32 %v3407_v38, %v3273_v21 }
0x2d76   :  { %v3281_v10 = vmax.f32 %v3280_v63, 0.0 }
0x2d78   :  { %3283 = vst.msk [vmem:[#allocation4] sm:$0x3] %vm3282_vm5, %v3281_v10 }
0x2d79   :  { %4206 = shalt.err (!%p4203_p4)
}
0x2d7a   :  { %s4207_s24 = scalar_lea.hbm %s5137_s7, 32 }
0x2d7b   :  { %p4208_p5 = scmp.ne.s32.totalorder %s5137_s7, %s4207_s24  ;;  %p4211_p6 = scmp.lt.u32.totalorder %s4207_s24, %s5137_s7 }
0x2d7d   :  { %p4213_p7 = pnand %p4211_p6, %p4208_p5 }
0x2d7f   :  { %4216 = shalt.err (!%p4213_p7)
}
0x2d80   :  { %3293 = dma.vmem_to_hbm [thread:$0]  %s3291_s22, 32, %s5137_s7, [#allocation5]  }
0x2d81   :  { %4217 = dma.done.wait [#allocation5], 32  }
0x2d82   :  { %4218 = vsyncadd [#allocation5], 4294967264 }
0x2d83   :  { %3297 = vsyncpa [#allocation5], 1 }

</bundles_post_ra>
